<compile_context>
chip_gen: v7x
topology: tpu7x:2x2x1
jax: 0.10.0
libtpu: 0.0.40
codegen_flags: <defaults>
</compile_context>

<pallas_src>
import functools
import math

import jax
import jax.numpy as jnp
from jax.experimental import pallas as pl
from jax.experimental.pallas import tpu as pltpu


def birnn_kernel(x_ref, wih0_ref, bih0_ref, whh0_ref, bhh0_ref,
                 w1cat_ref, b1cat_ref, sel_ref,
                 w1_ref, b1_ref, s1_ref, t1_ref,
                 w2_ref, b2_ref, s2_ref, t2_ref,
                 w3_ref, b3_ref,
                 o_ref, gi0_sc):
    """Fused forward: 2-layer GRU recurrence + .view(B,-1) + embed head, one launch.

    x_ref:     (T*B, Cin)   time-major input, row index = t*B + b
    wih0_ref:  (Cin, 3H)    layer-0 input weights (pre-transposed, gate order r,z,n)
    whh0_ref:  (H, 3H)      layer-0 recurrent weights
    w1cat_ref: (2H, 6H)     layer-1 block-diag weights [[wih1^T, 0], [0, whh1^T]]
    b*_ref:    (1, k)       biases / BN scale+shift rows
    sel_ref:   (2B, 2B)     0/1 permutation reproducing hn.view(batch_size, -1)
    o_ref:     (B, 2)       final logits
    gi0_sc:    (T*B, 3H)    VMEM scratch: precomputed layer-0 input projections
    """
    H = whh0_ref.shape[0]
    B = sel_ref.shape[0] // 2
    T = x_ref.shape[0] // B

    # ---- hoisted layer-0 input projection: single well-shaped MXU matmul ----
    gi0_sc[...] = (jnp.dot(x_ref[...], wih0_ref[...],
                           preferred_element_type=jnp.float32) + bih0_ref[...])

    whh0 = whh0_ref[...]
    bhh0 = bhh0_ref[...]
    w1cat = w1cat_ref[...]
    b1cat = b1cat_ref[...]

    def gates(i_r, i_z, i_n, h_r, h_z, h_n, h_prev):
        # sigmoid(v) == 0.5*tanh(0.5*v) + 0.5  (one EUP op instead of exp+divide)
        r = 0.5 * jnp.tanh(0.5 * (i_r + h_r)) + 0.5
        z = 0.5 * jnp.tanh(0.5 * (i_z + h_z)) + 0.5
        n = jnp.tanh(i_n + r * h_n)
        return n + z * (h_prev - n)          # == (1 - z) * n + z * h_prev

    def step(t, carry):
        h0, h1 = carry
        # layer 0: only the recurrent gemm sits on the per-step critical path
        row = pl.multiple_of(t * B, B)
        gi0 = gi0_sc[pl.ds(row, B), :]                                    # (B, 3H)
        gh0 = jnp.dot(h0, whh0, preferred_element_type=jnp.float32) + bhh0
        h0 = gates(gi0[:, :H], gi0[:, H:2 * H], gi0[:, 2 * H:],
                   gh0[:, :H], gh0[:, H:2 * H], gh0[:, 2 * H:], h0)
        # layer 1: one fused matmul producing [gi1 | gh1] side by side
        hcat = jnp.concatenate([h0, h1], axis=1)                          # (B, 2H)
        g1 = jnp.dot(hcat, w1cat, preferred_element_type=jnp.float32) + b1cat
        h1 = gates(g1[:, 0:H], g1[:, H:2 * H], g1[:, 2 * H:3 * H],
                   g1[:, 3 * H:4 * H], g1[:, 4 * H:5 * H], g1[:, 5 * H:6 * H], h1)
        return h0, h1

    h0 = jnp.zeros((B, H), jnp.float32)
    h1 = jnp.zeros((B, H), jnp.float32)
    h0, h1 = jax.lax.fori_loop(0, T, step, (h0, h1), unroll=True)

    # ---- reproduce x = hn.view(batch_size, -1) EXACTLY ----
    # hn is (2,B,H); its row-major view interleaves batch rows: emb[b] = [X[2b], X[2b+1]]
    # with X = vstack(h0, h1).  Done via a constant 0/1 permutation matmul.
    hn2 = jnp.concatenate([h0, h1], axis=0)                               # (2B, H)
    perm = jnp.dot(sel_ref[...], hn2, preferred_element_type=jnp.float32) # (2B, H)
    emb = jnp.concatenate([perm[:B], perm[B:]], axis=1)                   # (B, 2H)

    # ---- embed head: Linear -> BN -> (Dropout=id) -> ReLU -> Linear -> BN -> ReLU -> Linear
    y = jnp.dot(emb, w1_ref[...], preferred_element_type=jnp.float32) + b1_ref[...]
    y = jnp.maximum(y * s1_ref[...] + t1_ref[...], 0.0)
    y = jnp.dot(y, w2_ref[...], preferred_element_type=jnp.float32) + b2_ref[...]
    y = jnp.maximum(y * s2_ref[...] + t2_ref[...], 0.0)
    o_ref[...] = jnp.dot(y, w3_ref[...], preferred_element_type=jnp.float32) + b3_ref[...]


_VMEM = pl.BlockSpec(memory_space=pltpu.MemorySpace.VMEM)


def init_params(key, num_in, num_hidden):
    """Deterministic parameter init matching the module's shapes (large=True)."""
    H = num_hidden
    sz = 18
    embed_sz = 2 * H            # layers > 1  ->  num_hidden * 2
    hid1 = sz + 14              # 32
    ks = jax.random.split(key, 14)
    kscale = 1.0 / math.sqrt(H)

    def u(k, shape, bound):
        return jax.random.uniform(k, shape, jnp.float32, -bound, bound)

    p = {}
    # GRU: layer 0 (input = num_in), layer 1 (input = H). PyTorch gate order r,z,n.
    p['wih0'] = u(ks[0], (3 * H, num_in), kscale)
    p['whh0'] = u(ks[1], (3 * H, H), kscale)
    p['bih0'] = u(ks[2], (3 * H,), kscale)
    p['bhh0'] = u(ks[3], (3 * H,), kscale)
    p['wih1'] = u(ks[4], (3 * H, H), kscale)
    p['whh1'] = u(ks[5], (3 * H, H), kscale)
    p['bih1'] = u(ks[6], (3 * H,), kscale)
    p['bhh1'] = u(ks[7], (3 * H,), kscale)
    # embed: Linear(64,32) BN(32) Dropout ReLU Linear(32,18) BN(18) Dropout ReLU Linear(18,2)
    p['w1'] = u(ks[8], (hid1, embed_sz), 1.0 / math.sqrt(embed_sz))
    p['b1'] = u(ks[9], (hid1,), 1.0 / math.sqrt(embed_sz))
    p['w2'] = u(ks[10], (sz, hid1), 1.0 / math.sqrt(hid1))
    p['b2'] = u(ks[11], (sz,), 1.0 / math.sqrt(hid1))
    p['w3'] = u(ks[12], (2, sz), 1.0 / math.sqrt(sz))
    p['b3'] = u(ks[13], (2,), 1.0 / math.sqrt(sz))
    # BatchNorm1d defaults: gamma=1, beta=0, running_mean=0, running_var=1, eps=1e-5
    eps = 1e-5
    for name, n in (('bn1', hid1), ('bn2', sz)):
        gamma = jnp.ones((n,), jnp.float32)
        beta = jnp.zeros((n,), jnp.float32)
        mean = jnp.zeros((n,), jnp.float32)
        var = jnp.ones((n,), jnp.float32)
        scale = gamma / jnp.sqrt(var + eps)
        p[name + '_scale'] = scale
        p[name + '_shift'] = beta - mean * scale
    return p


def prepare_kernel_params(params):
    """One-time repack: pre-transpose, pre-fuse layer-1 weights, reshape biases."""
    H = params['whh0'].shape[1]
    w1cat = jnp.zeros((2 * H, 6 * H), jnp.float32)
    w1cat = w1cat.at[:H, :3 * H].set(params['wih1'].T)       # gi1 = h0 @ wih1^T
    w1cat = w1cat.at[H:, 3 * H:].set(params['whh1'].T)       # gh1 = h1 @ whh1^T
    return dict(
        wih0_t=params['wih0'].T,
        bih0=params['bih0'][None, :],
        whh0_t=params['whh0'].T,
        bhh0=params['bhh0'][None, :],
        w1cat=w1cat,
        b1cat=jnp.concatenate([params['bih1'], params['bhh1']])[None, :],
        w1=params['w1'].T, b1=params['b1'][None, :],
        s1=params['bn1_scale'][None, :], t1=params['bn1_shift'][None, :],
        w2=params['w2'].T, b2=params['b2'][None, :],
        s2=params['bn2_scale'][None, :], t2=params['bn2_shift'][None, :],
        w3=params['w3'].T, b3=params['b3'][None, :],
    )


@functools.partial(jax.jit, static_argnames=('batch_size',))
def birnn_forward(x, kp, batch_size):
    """x: (B, num_in, T) float32 (PyTorch NCL). Returns (batch_size, 2)."""
    B, Cin, T = x.shape
    H = kp['whh0_t'].shape[0]
    # PyTorch's `.view(self.batch_size, -1)` feeding Linear(2H, .) is only
    # shape-consistent when batch_size == B.
    assert batch_size == B

    # x.permute(0,2,1) -> (B,T,Cin); flatten time-major to (T*B, Cin) so the layer-0
    # input projection becomes a single MXU matmul inside the kernel.
    xt = jnp.transpose(x, (2, 0, 1)).reshape(T * B, Cin).astype(jnp.float32)

    # Constant 0/1 permutation reproducing hn.view(B, -1): row b picks flat row 2b,
    # row B+b picks flat row 2b+1 of vstack(h0, h1).  Constant-folds under jit.
    rows = jnp.arange(2 * B)
    src = jnp.where(rows < B, 2 * rows, 2 * (rows - B) + 1)
    sel = jax.nn.one_hot(src, 2 * B, dtype=jnp.float32)

    args = (xt, kp['wih0_t'], kp['bih0'], kp['whh0_t'], kp['bhh0'],
            kp['w1cat'], kp['b1cat'], sel,
            kp['w1'], kp['b1'], kp['s1'], kp['t1'],
            kp['w2'], kp['b2'], kp['s2'], kp['t2'],
            kp['w3'], kp['b3'])
    return pl.pallas_call(
        birnn_kernel,
        out_shape=jax.ShapeDtypeStruct((batch_size, 2), jnp.float32),
        in_specs=[_VMEM] * len(args),
        out_specs=_VMEM,
        scratch_shapes=[pltpu.VMEM((T * B, 3 * H), jnp.float32)],
    )(*args)


def birnn_reference(x, params, batch_size):
    """Pure-JAX reference of the same forward (eval mode)."""
    B, _, T = x.shape
    H = params['whh0'].shape[1]
    xs = jnp.transpose(x, (0, 2, 1))
    hp = jax.lax.Precision.HIGHEST

    def cell(x_t, h, wih, whh, bih, bhh):
        gi = jnp.dot(x_t, wih.T, precision=hp) + bih
        gh = jnp.dot(h, whh.T, precision=hp) + bhh
        r = jax.nn.sigmoid(gi[:, :H] + gh[:, :H])
        z = jax.nn.sigmoid(gi[:, H:2 * H] + gh[:, H:2 * H])
        n = jnp.tanh(gi[:, 2 * H:] + r * gh[:, 2 * H:])
        return (1 - z) * n + z * h

    h0 = jnp.zeros((B, H), jnp.float32)
    h1 = jnp.zeros((B, H), jnp.float32)
    for t in range(T):
        h0 = cell(xs[:, t], h0, params['wih0'], params['whh0'], params['bih0'], params['bhh0'])
        h1 = cell(h0, h1, params['wih1'], params['whh1'], params['bih1'], params['bhh1'])
    emb = jnp.stack([h0, h1]).reshape(batch_size, -1)
    y = jnp.dot(emb, params['w1'].T, precision=hp) + params['b1']
    y = jnp.maximum(y * params['bn1_scale'] + params['bn1_shift'], 0.0)
    y = jnp.dot(y, params['w2'].T, precision=hp) + params['b2']
    y = jnp.maximum(y * params['bn2_scale'] + params['bn2_shift'], 0.0)
    return jnp.dot(y, params['w3'].T, precision=hp) + params['b3']


if __name__ == "__main__":
    # batch_size must equal the actual batch for `.view(batch_size, -1)` to be valid.
    B, NUM_IN, T, H = 8, 4, 16, 32
    key = jax.random.PRNGKey(0)
    kx, kp_key = jax.random.split(key)
    x = jax.random.normal(kx, (B, NUM_IN, T), jnp.float32)
    params = init_params(kp_key, NUM_IN, H)
    kparams = prepare_kernel_params(params)

    out = jax.block_until_ready(birnn_forward(x, kparams, batch_size=B))
    ref = jax.block_until_ready(birnn_reference(x, params, batch_size=B))

    assert out.shape == (B, 2)
    assert jnp.allclose(out, ref, atol=1e-3, rtol=1e-3)
    print("KERNEL_OK")
</pallas_src>

<mosaic_0001>
module attributes {stable_mosaic.version = 11 : i64} {
  func.func @birnn_kernel(%arg0: memref<128x4xf32, #tpu.memory_space<vmem>>, %arg1: memref<4x96xf32, #tpu.memory_space<vmem>>, %arg2: memref<1x96xf32, #tpu.memory_space<vmem>>, %arg3: memref<32x96xf32, #tpu.memory_space<vmem>>, %arg4: memref<1x96xf32, #tpu.memory_space<vmem>>, %arg5: memref<64x192xf32, #tpu.memory_space<vmem>>, %arg6: memref<1x192xf32, #tpu.memory_space<vmem>>, %arg7: memref<16x16xf32, #tpu.memory_space<vmem>>, %arg8: memref<64x32xf32, #tpu.memory_space<vmem>>, %arg9: memref<1x32xf32, #tpu.memory_space<vmem>>, %arg10: memref<1x32xf32, #tpu.memory_space<vmem>>, %arg11: memref<1x32xf32, #tpu.memory_space<vmem>>, %arg12: memref<32x18xf32, #tpu.memory_space<vmem>>, %arg13: memref<1x18xf32, #tpu.memory_space<vmem>>, %arg14: memref<1x18xf32, #tpu.memory_space<vmem>>, %arg15: memref<1x18xf32, #tpu.memory_space<vmem>>, %arg16: memref<18x2xf32, #tpu.memory_space<vmem>>, %arg17: memref<1x2xf32, #tpu.memory_space<vmem>>, %arg18: memref<8x2xf32, #tpu.memory_space<vmem>>, %arg19: memref<128x96xf32, #tpu.memory_space<vmem>>) attributes {dimension_semantics = [], scalar_prefetch = 0 : i64, scratch_operands = 1 : i64, tpu.core_type = #tpu.core_type<tc>} {
    %c0 = arith.constant 0 : index
    %c0_0 = arith.constant 0 : index
    %0 = vector.load %arg0[%c0, %c0_0] : memref<128x4xf32, #tpu.memory_space<vmem>>, vector<128x4xf32>
    %c0_1 = arith.constant 0 : index
    %c0_2 = arith.constant 0 : index
    %1 = vector.load %arg1[%c0_1, %c0_2] : memref<4x96xf32, #tpu.memory_space<vmem>>, vector<4x96xf32>
    %cst = arith.constant dense<0.000000e+00> : vector<128x96xf32>
    %2 = tpu.matmul %0, %1, %cst {dimension_numbers = #tpu.dot_dimension_numbers<[1], [0], [0], [1], [0, 0, 1, 1], [], []>} : vector<128x4xf32>, vector<4x96xf32>, vector<128x96xf32> -> vector<128x96xf32>
    %c0_3 = arith.constant 0 : index
    %c0_4 = arith.constant 0 : index
    %3 = vector.load %arg2[%c0_3, %c0_4] : memref<1x96xf32, #tpu.memory_space<vmem>>, vector<1x96xf32>
    %4 = vector.broadcast %3 : vector<1x96xf32> to vector<128x96xf32>
    %5 = arith.addf %2, %4 : vector<128x96xf32>
    %c0_5 = arith.constant 0 : index
    %c0_6 = arith.constant 0 : index
    %6 = vector.load %arg19[%c0_5, %c0_6] : memref<128x96xf32, #tpu.memory_space<vmem>>, vector<128x96xf32>
    tpu.vector_store %arg19[%c0_5, %c0_6], %5 {strides = array<i32>} : memref<128x96xf32, #tpu.memory_space<vmem>>, vector<128x96xf32>,
    %c0_7 = arith.constant 0 : index
    %c0_8 = arith.constant 0 : index
    %7 = vector.load %arg3[%c0_7, %c0_8] : memref<32x96xf32, #tpu.memory_space<vmem>>, vector<32x96xf32>
    %c0_9 = arith.constant 0 : index
    %c0_10 = arith.constant 0 : index
    %8 = vector.load %arg4[%c0_9, %c0_10] : memref<1x96xf32, #tpu.memory_space<vmem>>, vector<1x96xf32>
    %c0_11 = arith.constant 0 : index
    %c0_12 = arith.constant 0 : index
    %9 = vector.load %arg5[%c0_11, %c0_12] : memref<64x192xf32, #tpu.memory_space<vmem>>, vector<64x192xf32>
    %c0_13 = arith.constant 0 : index
    %c0_14 = arith.constant 0 : index
    %10 = vector.load %arg6[%c0_13, %c0_14] : memref<1x192xf32, #tpu.memory_space<vmem>>, vector<1x192xf32>
    %cst_15 = arith.constant 0.000000e+00 : f32
    %11 = vector.broadcast %cst_15 : f32 to vector<8x32xf32>
    %cst_16 = arith.constant 0.000000e+00 : f32
    %12 = vector.broadcast %cst_16 : f32 to vector<8x32xf32>
    %c0_i32 = arith.constant 0 : i32
    %c8_i32 = arith.constant 8 : i32
    %13 = arith.muli %c0_i32, %c8_i32 : i32
    %14 = tpu.assume_multiple %13, 8 : i32
    %15 = arith.index_cast %14 : i32 to index
    %c0_17 = arith.constant 0 : index
    %16 = vector.load %arg19[%15, %c0_17] : memref<128x96xf32, #tpu.memory_space<vmem>>, vector<8x96xf32>
    %cst_18 = arith.constant dense<0.000000e+00> : vector<8x96xf32>
    %17 = tpu.matmul %11, %7, %cst_18 {dimension_numbers = #tpu.dot_dimension_numbers<[1], [0], [0], [1], [0, 0, 1, 1], [], []>} : vector<8x32xf32>, vector<32x96xf32>, vector<8x96xf32> -> vector<8x96xf32>
    %18 = vector.broadcast %8 : vector<1x96xf32> to vector<8x96xf32>
    %19 = arith.addf %17, %18 : vector<8x96xf32>
    %20 = vector.extract_strided_slice %16 {offsets = [0, 0], sizes = [8, 32], strides = [1, 1]} : vector<8x96xf32> to vector<8x32xf32>
    %21 = vector.extract_strided_slice %16 {offsets = [0, 32], sizes = [8, 32], strides = [1, 1]} : vector<8x96xf32> to vector<8x32xf32>
    %22 = vector.extract_strided_slice %16 {offsets = [0, 64], sizes = [8, 32], strides = [1, 1]} : vector<8x96xf32> to vector<8x32xf32>
    %23 = vector.extract_strided_slice %19 {offsets = [0, 0], sizes = [8, 32], strides = [1, 1]} : vector<8x96xf32> to vector<8x32xf32>
    %24 = vector.extract_strided_slice %19 {offsets = [0, 32], sizes = [8, 32], strides = [1, 1]} : vector<8x96xf32> to vector<8x32xf32>
    %25 = vector.extract_strided_slice %19 {offsets = [0, 64], sizes = [8, 32], strides = [1, 1]} : vector<8x96xf32> to vector<8x32xf32>
    %26 = arith.addf %20, %23 : vector<8x32xf32>
    %cst_19 = arith.constant 5.000000e-01 : f32
    %27 = vector.broadcast %cst_19 : f32 to vector<8x32xf32>
    %28 = arith.mulf %27, %26 : vector<8x32xf32>
    %29 = math.tanh %28 : vector<8x32xf32>
    %cst_20 = arith.constant 5.000000e-01 : f32
    %30 = vector.broadcast %cst_20 : f32 to vector<8x32xf32>
    %31 = arith.mulf %30, %29 : vector<8x32xf32>
    %cst_21 = arith.constant 5.000000e-01 : f32
    %32 = vector.broadcast %cst_21 : f32 to vector<8x32xf32>
    %33 = arith.addf %31, %32 : vector<8x32xf32>
    %34 = arith.addf %21, %24 : vector<8x32xf32>
    %cst_22 = arith.constant 5.000000e-01 : f32
    %35 = vector.broadcast %cst_22 : f32 to vector<8x32xf32>
    %36 = arith.mulf %35, %34 : vector<8x32xf32>
    %37 = math.tanh %36 : vector<8x32xf32>
    %cst_23 = arith.constant 5.000000e-01 : f32
    %38 = vector.broadcast %cst_23 : f32 to vector<8x32xf32>
    %39 = arith.mulf %38, %37 : vector<8x32xf32>
    %cst_24 = arith.constant 5.000000e-01 : f32
    %40 = vector.broadcast %cst_24 : f32 to vector<8x32xf32>
    %41 = arith.addf %39, %40 : vector<8x32xf32>
    %42 = arith.mulf %33, %25 : vector<8x32xf32>
    %43 = arith.addf %22, %42 : vector<8x32xf32>
    %44 = math.tanh %43 : vector<8x32xf32>
    %45 = arith.subf %11, %44 : vector<8x32xf32>
    %46 = arith.mulf %41, %45 : vector<8x32xf32>
    %47 = arith.addf %44, %46 : vector<8x32xf32>
    %48 = tpu.concatenate %47, %12 in 1 : vector<8x32xf32>, vector<8x32xf32> -> vector<8x64xf32>
    %cst_25 = arith.constant dense<0.000000e+00> : vector<8x192xf32>
    %49 = tpu.matmul %48, %9, %cst_25 {dimension_numbers = #tpu.dot_dimension_numbers<[1], [0], [0], [1], [0, 0, 1, 1], [], []>} : vector<8x64xf32>, vector<64x192xf32>, vector<8x192xf32> -> vector<8x192xf32>
    %50 = vector.broadcast %10 : vector<1x192xf32> to vector<8x192xf32>
    %51 = arith.addf %49, %50 : vector<8x192xf32>
    %52 = vector.extract_strided_slice %51 {offsets = [0, 0], sizes = [8, 32], strides = [1, 1]} : vector<8x192xf32> to vector<8x32xf32>
    %53 = vector.extract_strided_slice %51 {offsets = [0, 32], sizes = [8, 32], strides = [1, 1]} : vector<8x192xf32> to vector<8x32xf32>
    %54 = vector.extract_strided_slice %51 {offsets = [0, 64], sizes = [8, 32], strides = [1, 1]} : vector<8x192xf32> to vector<8x32xf32>
    %55 = vector.extract_strided_slice %51 {offsets = [0, 96], sizes = [8, 32], strides = [1, 1]} : vector<8x192xf32> to vector<8x32xf32>
    %56 = vector.extract_strided_slice %51 {offsets = [0, 128], sizes = [8, 32], strides = [1, 1]} : vector<8x192xf32> to vector<8x32xf32>
    %57 = vector.extract_strided_slice %51 {offsets = [0, 160], sizes = [8, 32], strides = [1, 1]} : vector<8x192xf32> to vector<8x32xf32>
    %58 = arith.addf %52, %55 : vector<8x32xf32>
    %cst_26 = arith.constant 5.000000e-01 : f32
    %59 = vector.broadcast %cst_26 : f32 to vector<8x32xf32>
    %60 = arith.mulf %59, %58 : vector<8x32xf32>
    %61 = math.tanh %60 : vector<8x32xf32>
    %cst_27 = arith.constant 5.000000e-01 : f32
    %62 = vector.broadcast %cst_27 : f32 to vector<8x32xf32>
    %63 = arith.mulf %62, %61 : vector<8x32xf32>
    %cst_28 = arith.constant 5.000000e-01 : f32
    %64 = vector.broadcast %cst_28 : f32 to vector<8x32xf32>
    %65 = arith.addf %63, %64 : vector<8x32xf32>
    %66 = arith.addf %53, %56 : vector<8x32xf32>
    %cst_29 = arith.constant 5.000000e-01 : f32
    %67 = vector.broadcast %cst_29 : f32 to vector<8x32xf32>
    %68 = arith.mulf %67, %66 : vector<8x32xf32>
    %69 = math.tanh %68 : vector<8x32xf32>
    %cst_30 = arith.constant 5.000000e-01 : f32
    %70 = vector.broadcast %cst_30 : f32 to vector<8x32xf32>
    %71 = arith.mulf %70, %69 : vector<8x32xf32>
    %cst_31 = arith.constant 5.000000e-01 : f32
    %72 = vector.broadcast %cst_31 : f32 to vector<8x32xf32>
    %73 = arith.addf %71, %72 : vector<8x32xf32>
    %74 = arith.mulf %65, %57 : vector<8x32xf32>
    %75 = arith.addf %54, %74 : vector<8x32xf32>
    %76 = math.tanh %75 : vector<8x32xf32>
    %77 = arith.subf %12, %76 : vector<8x32xf32>
    %78 = arith.mulf %73, %77 : vector<8x32xf32>
    %79 = arith.addf %76, %78 : vector<8x32xf32>
    %c1_i32 = arith.constant 1 : i32
    %c8_i32_32 = arith.constant 8 : i32
    %80 = arith.muli %c1_i32, %c8_i32_32 : i32
    %81 = tpu.assume_multiple %80, 8 : i32
    %82 = arith.index_cast %81 : i32 to index
    %c0_33 = arith.constant 0 : index
    %83 = vector.load %arg19[%82, %c0_33] : memref<128x96xf32, #tpu.memory_space<vmem>>, vector<8x96xf32>
    %cst_34 = arith.constant dense<0.000000e+00> : vector<8x96xf32>
    %84 = tpu.matmul %47, %7, %cst_34 {dimension_numbers = #tpu.dot_dimension_numbers<[1], [0], [0], [1], [0, 0, 1, 1], [], []>} : vector<8x32xf32>, vector<32x96xf32>, vector<8x96xf32> -> vector<8x96xf32>
    %85 = vector.broadcast %8 : vector<1x96xf32> to vector<8x96xf32>
    %86 = arith.addf %84, %85 : vector<8x96xf32>
    %87 = vector.extract_strided_slice %83 {offsets = [0, 0], sizes = [8, 32], strides = [1, 1]} : vector<8x96xf32> to vector<8x32xf32>
    %88 = vector.extract_strided_slice %83 {offsets = [0, 32], sizes = [8, 32], strides = [1, 1]} : vector<8x96xf32> to vector<8x32xf32>
    %89 = vector.extract_strided_slice %83 {offsets = [0, 64], sizes = [8, 32], strides = [1, 1]} : vector<8x96xf32> to vector<8x32xf32>
    %90 = vector.extract_strided_slice %86 {offsets = [0, 0], sizes = [8, 32], strides = [1, 1]} : vector<8x96xf32> to vector<8x32xf32>
    %91 = vector.extract_strided_slice %86 {offsets = [0, 32], sizes = [8, 32], strides = [1, 1]} : vector<8x96xf32> to vector<8x32xf32>
    %92 = vector.extract_strided_slice %86 {offsets = [0, 64], sizes = [8, 32], strides = [1, 1]} : vector<8x96xf32> to vector<8x32xf32>
    %93 = arith.addf %87, %90 : vector<8x32xf32>
    %cst_35 = arith.constant 5.000000e-01 : f32
    %94 = vector.broadcast %cst_35 : f32 to vector<8x32xf32>
    %95 = arith.mulf %94, %93 : vector<8x32xf32>
    %96 = math.tanh %95 : vector<8x32xf32>
    %cst_36 = arith.constant 5.000000e-01 : f32
    %97 = vector.broadcast %cst_36 : f32 to vector<8x32xf32>
    %98 = arith.mulf %97, %96 : vector<8x32xf32>
    %cst_37 = arith.constant 5.000000e-01 : f32
    %99 = vector.broadcast %cst_37 : f32 to vector<8x32xf32>
    %100 = arith.addf %98, %99 : vector<8x32xf32>
    %101 = arith.addf %88, %91 : vector<8x32xf32>
    %cst_38 = arith.constant 5.000000e-01 : f32
    %102 = vector.broadcast %cst_38 : f32 to vector<8x32xf32>
    %103 = arith.mulf %102, %101 : vector<8x32xf32>
    %104 = math.tanh %103 : vector<8x32xf32>
    %cst_39 = arith.constant 5.000000e-01 : f32
    %105 = vector.broadcast %cst_39 : f32 to vector<8x32xf32>
    %106 = arith.mulf %105, %104 : vector<8x32xf32>
    %cst_40 = arith.constant 5.000000e-01 : f32
    %107 = vector.broadcast %cst_40 : f32 to vector<8x32xf32>
    %108 = arith.addf %106, %107 : vector<8x32xf32>
    %109 = arith.mulf %100, %92 : vector<8x32xf32>
    %110 = arith.addf %89, %109 : vector<8x32xf32>
    %111 = math.tanh %110 : vector<8x32xf32>
    %112 = arith.subf %47, %111 : vector<8x32xf32>
    %113 = arith.mulf %108, %112 : vector<8x32xf32>
    %114 = arith.addf %111, %113 : vector<8x32xf32>
    %115 = tpu.concatenate %114, %79 in 1 : vector<8x32xf32>, vector<8x32xf32> -> vector<8x64xf32>
    %cst_41 = arith.constant dense<0.000000e+00> : vector<8x192xf32>
    %116 = tpu.matmul %115, %9, %cst_41 {dimension_numbers = #tpu.dot_dimension_numbers<[1], [0], [0], [1], [0, 0, 1, 1], [], []>} : vector<8x64xf32>, vector<64x192xf32>, vector<8x192xf32> -> vector<8x192xf32>
    %117 = vector.broadcast %10 : vector<1x192xf32> to vector<8x192xf32>
    %118 = arith.addf %116, %117 : vector<8x192xf32>
    %119 = vector.extract_strided_slice %118 {offsets = [0, 0], sizes = [8, 32], strides = [1, 1]} : vector<8x192xf32> to vector<8x32xf32>
    %120 = vector.extract_strided_slice %118 {offsets = [0, 32], sizes = [8, 32], strides = [1, 1]} : vector<8x192xf32> to vector<8x32xf32>
    %121 = vector.extract_strided_slice %118 {offsets = [0, 64], sizes = [8, 32], strides = [1, 1]} : vector<8x192xf32> to vector<8x32xf32>
    %122 = vector.extract_strided_slice %118 {offsets = [0, 96], sizes = [8, 32], strides = [1, 1]} : vector<8x192xf32> to vector<8x32xf32>
    %123 = vector.extract_strided_slice %118 {offsets = [0, 128], sizes = [8, 32], strides = [1, 1]} : vector<8x192xf32> to vector<8x32xf32>
    %124 = vector.extract_strided_slice %118 {offsets = [0, 160], sizes = [8, 32], strides = [1, 1]} : vector<8x192xf32> to vector<8x32xf32>
    %125 = arith.addf %119, %122 : vector<8x32xf32>
    %cst_42 = arith.constant 5.000000e-01 : f32
    %126 = vector.broadcast %cst_42 : f32 to vector<8x32xf32>
    %127 = arith.mulf %126, %125 : vector<8x32xf32>
    %128 = math.tanh %127 : vector<8x32xf32>
    %cst_43 = arith.constant 5.000000e-01 : f32
    %129 = vector.broadcast %cst_43 : f32 to vector<8x32xf32>
    %130 = arith.mulf %129, %128 : vector<8x32xf32>
    %cst_44 = arith.constant 5.000000e-01 : f32
    %131 = vector.broadcast %cst_44 : f32 to vector<8x32xf32>
    %132 = arith.addf %130, %131 : vector<8x32xf32>
    %133 = arith.addf %120, %123 : vector<8x32xf32>
    %cst_45 = arith.constant 5.000000e-01 : f32
    %134 = vector.broadcast %cst_45 : f32 to vector<8x32xf32>
    %135 = arith.mulf %134, %133 : vector<8x32xf32>
    %136 = math.tanh %135 : vector<8x32xf32>
    %cst_46 = arith.constant 5.000000e-01 : f32
    %137 = vector.broadcast %cst_46 : f32 to vector<8x32xf32>
    %138 = arith.mulf %137, %136 : vector<8x32xf32>
    %cst_47 = arith.constant 5.000000e-01 : f32
    %139 = vector.broadcast %cst_47 : f32 to vector<8x32xf32>
    %140 = arith.addf %138, %139 : vector<8x32xf32>
    %141 = arith.mulf %132, %124 : vector<8x32xf32>
    %142 = arith.addf %121, %141 : vector<8x32xf32>
    %143 = math.tanh %142 : vector<8x32xf32>
    %144 = arith.subf %79, %143 : vector<8x32xf32>
    %145 = arith.mulf %140, %144 : vector<8x32xf32>
    %146 = arith.addf %143, %145 : vector<8x32xf32>
    %c2_i32 = arith.constant 2 : i32
    %c8_i32_48 = arith.constant 8 : i32
    %147 = arith.muli %c2_i32, %c8_i32_48 : i32
    %148 = tpu.assume_multiple %147, 8 : i32
    %149 = arith.index_cast %148 : i32 to index
    %c0_49 = arith.constant 0 : index
    %150 = vector.load %arg19[%149, %c0_49] : memref<128x96xf32, #tpu.memory_space<vmem>>, vector<8x96xf32>
    %cst_50 = arith.constant dense<0.000000e+00> : vector<8x96xf32>
    %151 = tpu.matmul %114, %7, %cst_50 {dimension_numbers = #tpu.dot_dimension_numbers<[1], [0], [0], [1], [0, 0, 1, 1], [], []>} : vector<8x32xf32>, vector<32x96xf32>, vector<8x96xf32> -> vector<8x96xf32>
    %152 = vector.broadcast %8 : vector<1x96xf32> to vector<8x96xf32>
    %153 = arith.addf %151, %152 : vector<8x96xf32>
    %154 = vector.extract_strided_slice %150 {offsets = [0, 0], sizes = [8, 32], strides = [1, 1]} : vector<8x96xf32> to vector<8x32xf32>
    %155 = vector.extract_strided_slice %150 {offsets = [0, 32], sizes = [8, 32], strides = [1, 1]} : vector<8x96xf32> to vector<8x32xf32>
    %156 = vector.extract_strided_slice %150 {offsets = [0, 64], sizes = [8, 32], strides = [1, 1]} : vector<8x96xf32> to vector<8x32xf32>
    %157 = vector.extract_strided_slice %153 {offsets = [0, 0], sizes = [8, 32], strides = [1, 1]} : vector<8x96xf32> to vector<8x32xf32>
    %158 = vector.extract_strided_slice %153 {offsets = [0, 32], sizes = [8, 32], strides = [1, 1]} : vector<8x96xf32> to vector<8x32xf32>
    %159 = vector.extract_strided_slice %153 {offsets = [0, 64], sizes = [8, 32], strides = [1, 1]} : vector<8x96xf32> to vector<8x32xf32>
    %160 = arith.addf %154, %157 : vector<8x32xf32>
    %cst_51 = arith.constant 5.000000e-01 : f32
    %161 = vector.broadcast %cst_51 : f32 to vector<8x32xf32>
    %162 = arith.mulf %161, %160 : vector<8x32xf32>
    %163 = math.tanh %162 : vector<8x32xf32>
    %cst_52 = arith.constant 5.000000e-01 : f32
    %164 = vector.broadcast %cst_52 : f32 to vector<8x32xf32>
    %165 = arith.mulf %164, %163 : vector<8x32xf32>
    %cst_53 = arith.constant 5.000000e-01 : f32
    %166 = vector.broadcast %cst_53 : f32 to vector<8x32xf32>
    %167 = arith.addf %165, %166 : vector<8x32xf32>
    %168 = arith.addf %155, %158 : vector<8x32xf32>
    %cst_54 = arith.constant 5.000000e-01 : f32
    %169 = vector.broadcast %cst_54 : f32 to vector<8x32xf32>
    %170 = arith.mulf %169, %168 : vector<8x32xf32>
    %171 = math.tanh %170 : vector<8x32xf32>
    %cst_55 = arith.constant 5.000000e-01 : f32
    %172 = vector.broadcast %cst_55 : f32 to vector<8x32xf32>
    %173 = arith.mulf %172, %171 : vector<8x32xf32>
    %cst_56 = arith.constant 5.000000e-01 : f32
    %174 = vector.broadcast %cst_56 : f32 to vector<8x32xf32>
    %175 = arith.addf %173, %174 : vector<8x32xf32>
    %176 = arith.mulf %167, %159 : vector<8x32xf32>
    %177 = arith.addf %156, %176 : vector<8x32xf32>
    %178 = math.tanh %177 : vector<8x32xf32>
    %179 = arith.subf %114, %178 : vector<8x32xf32>
    %180 = arith.mulf %175, %179 : vector<8x32xf32>
    %181 = arith.addf %178, %180 : vector<8x32xf32>
    %182 = tpu.concatenate %181, %146 in 1 : vector<8x32xf32>, vector<8x32xf32> -> vector<8x64xf32>
    %cst_57 = arith.constant dense<0.000000e+00> : vector<8x192xf32>
    %183 = tpu.matmul %182, %9, %cst_57 {dimension_numbers = #tpu.dot_dimension_numbers<[1], [0], [0], [1], [0, 0, 1, 1], [], []>} : vector<8x64xf32>, vector<64x192xf32>, vector<8x192xf32> -> vector<8x192xf32>
    %184 = vector.broadcast %10 : vector<1x192xf32> to vector<8x192xf32>
    %185 = arith.addf %183, %184 : vector<8x192xf32>
    %186 = vector.extract_strided_slice %185 {offsets = [0, 0], sizes = [8, 32], strides = [1, 1]} : vector<8x192xf32> to vector<8x32xf32>
    %187 = vector.extract_strided_slice %185 {offsets = [0, 32], sizes = [8, 32], strides = [1, 1]} : vector<8x192xf32> to vector<8x32xf32>
    %188 = vector.extract_strided_slice %185 {offsets = [0, 64], sizes = [8, 32], strides = [1, 1]} : vector<8x192xf32> to vector<8x32xf32>
    %189 = vector.extract_strided_slice %185 {offsets = [0, 96], sizes = [8, 32], strides = [1, 1]} : vector<8x192xf32> to vector<8x32xf32>
    %190 = vector.extract_strided_slice %185 {offsets = [0, 128], sizes = [8, 32], strides = [1, 1]} : vector<8x192xf32> to vector<8x32xf32>
    %191 = vector.extract_strided_slice %185 {offsets = [0, 160], sizes = [8, 32], strides = [1, 1]} : vector<8x192xf32> to vector<8x32xf32>
    %192 = arith.addf %186, %189 : vector<8x32xf32>
    %cst_58 = arith.constant 5.000000e-01 : f32
    %193 = vector.broadcast %cst_58 : f32 to vector<8x32xf32>
    %194 = arith.mulf %193, %192 : vector<8x32xf32>
    %195 = math.tanh %194 : vector<8x32xf32>
    %cst_59 = arith.constant 5.000000e-01 : f32
    %196 = vector.broadcast %cst_59 : f32 to vector<8x32xf32>
    %197 = arith.mulf %196, %195 : vector<8x32xf32>
    %cst_60 = arith.constant 5.000000e-01 : f32
    %198 = vector.broadcast %cst_60 : f32 to vector<8x32xf32>
    %199 = arith.addf %197, %198 : vector<8x32xf32>
    %200 = arith.addf %187, %190 : vector<8x32xf32>
    %cst_61 = arith.constant 5.000000e-01 : f32
    %201 = vector.broadcast %cst_61 : f32 to vector<8x32xf32>
    %202 = arith.mulf %201, %200 : vector<8x32xf32>
    %203 = math.tanh %202 : vector<8x32xf32>
    %cst_62 = arith.constant 5.000000e-01 : f32
    %204 = vector.broadcast %cst_62 : f32 to vector<8x32xf32>
    %205 = arith.mulf %204, %203 : vector<8x32xf32>
    %cst_63 = arith.constant 5.000000e-01 : f32
    %206 = vector.broadcast %cst_63 : f32 to vector<8x32xf32>
    %207 = arith.addf %205, %206 : vector<8x32xf32>
    %208 = arith.mulf %199, %191 : vector<8x32xf32>
    %209 = arith.addf %188, %208 : vector<8x32xf32>
    %210 = math.tanh %209 : vector<8x32xf32>
    %211 = arith.subf %146, %210 : vector<8x32xf32>
    %212 = arith.mulf %207, %211 : vector<8x32xf32>
    %213 = arith.addf %210, %212 : vector<8x32xf32>
    %c3_i32 = arith.constant 3 : i32
    %c8_i32_64 = arith.constant 8 : i32
    %214 = arith.muli %c3_i32, %c8_i32_64 : i32
    %215 = tpu.assume_multiple %214, 8 : i32
    %216 = arith.index_cast %215 : i32 to index
    %c0_65 = arith.constant 0 : index
    %217 = vector.load %arg19[%216, %c0_65] : memref<128x96xf32, #tpu.memory_space<vmem>>, vector<8x96xf32>
    %cst_66 = arith.constant dense<0.000000e+00> : vector<8x96xf32>
    %218 = tpu.matmul %181, %7, %cst_66 {dimension_numbers = #tpu.dot_dimension_numbers<[1], [0], [0], [1], [0, 0, 1, 1], [], []>} : vector<8x32xf32>, vector<32x96xf32>, vector<8x96xf32> -> vector<8x96xf32>
    %219 = vector.broadcast %8 : vector<1x96xf32> to vector<8x96xf32>
    %220 = arith.addf %218, %219 : vector<8x96xf32>
    %221 = vector.extract_strided_slice %217 {offsets = [0, 0], sizes = [8, 32], strides = [1, 1]} : vector<8x96xf32> to vector<8x32xf32>
    %222 = vector.extract_strided_slice %217 {offsets = [0, 32], sizes = [8, 32], strides = [1, 1]} : vector<8x96xf32> to vector<8x32xf32>
    %223 = vector.extract_strided_slice %217 {offsets = [0, 64], sizes = [8, 32], strides = [1, 1]} : vector<8x96xf32> to vector<8x32xf32>
    %224 = vector.extract_strided_slice %220 {offsets = [0, 0], sizes = [8, 32], strides = [1, 1]} : vector<8x96xf32> to vector<8x32xf32>
    %225 = vector.extract_strided_slice %220 {offsets = [0, 32], sizes = [8, 32], strides = [1, 1]} : vector<8x96xf32> to vector<8x32xf32>
    %226 = vector.extract_strided_slice %220 {offsets = [0, 64], sizes = [8, 32], strides = [1, 1]} : vector<8x96xf32> to vector<8x32xf32>
    %227 = arith.addf %221, %224 : vector<8x32xf32>
    %cst_67 = arith.constant 5.000000e-01 : f32
    %228 = vector.broadcast %cst_67 : f32 to vector<8x32xf32>
    %229 = arith.mulf %228, %227 : vector<8x32xf32>
    %230 = math.tanh %229 : vector<8x32xf32>
    %cst_68 = arith.constant 5.000000e-01 : f32
    %231 = vector.broadcast %cst_68 : f32 to vector<8x32xf32>
    %232 = arith.mulf %231, %230 : vector<8x32xf32>
    %cst_69 = arith.constant 5.000000e-01 : f32
    %233 = vector.broadcast %cst_69 : f32 to vector<8x32xf32>
    %234 = arith.addf %232, %233 : vector<8x32xf32>
    %235 = arith.addf %222, %225 : vector<8x32xf32>
    %cst_70 = arith.constant 5.000000e-01 : f32
    %236 = vector.broadcast %cst_70 : f32 to vector<8x32xf32>
    %237 = arith.mulf %236, %235 : vector<8x32xf32>
    %238 = math.tanh %237 : vector<8x32xf32>
    %cst_71 = arith.constant 5.000000e-01 : f32
    %239 = vector.broadcast %cst_71 : f32 to vector<8x32xf32>
    %240 = arith.mulf %239, %238 : vector<8x32xf32>
    %cst_72 = arith.constant 5.000000e-01 : f32
    %241 = vector.broadcast %cst_72 : f32 to vector<8x32xf32>
    %242 = arith.addf %240, %241 : vector<8x32xf32>
    %243 = arith.mulf %234, %226 : vector<8x32xf32>
    %244 = arith.addf %223, %243 : vector<8x32xf32>
    %245 = math.tanh %244 : vector<8x32xf32>
    %246 = arith.subf %181, %245 : vector<8x32xf32>
    %247 = arith.mulf %242, %246 : vector<8x32xf32>
    %248 = arith.addf %245, %247 : vector<8x32xf32>
    %249 = tpu.concatenate %248, %213 in 1 : vector<8x32xf32>, vector<8x32xf32> -> vector<8x64xf32>
    %cst_73 = arith.constant dense<0.000000e+00> : vector<8x192xf32>
    %250 = tpu.matmul %249, %9, %cst_73 {dimension_numbers = #tpu.dot_dimension_numbers<[1], [0], [0], [1], [0, 0, 1, 1], [], []>} : vector<8x64xf32>, vector<64x192xf32>, vector<8x192xf32> -> vector<8x192xf32>
    %251 = vector.broadcast %10 : vector<1x192xf32> to vector<8x192xf32>
    %252 = arith.addf %250, %251 : vector<8x192xf32>
    %253 = vector.extract_strided_slice %252 {offsets = [0, 0], sizes = [8, 32], strides = [1, 1]} : vector<8x192xf32> to vector<8x32xf32>
    %254 = vector.extract_strided_slice %252 {offsets = [0, 32], sizes = [8, 32], strides = [1, 1]} : vector<8x192xf32> to vector<8x32xf32>
    %255 = vector.extract_strided_slice %252 {offsets = [0, 64], sizes = [8, 32], strides = [1, 1]} : vector<8x192xf32> to vector<8x32xf32>
    %256 = vector.extract_strided_slice %252 {offsets = [0, 96], sizes = [8, 32], strides = [1, 1]} : vector<8x192xf32> to vector<8x32xf32>
    %257 = vector.extract_strided_slice %252 {offsets = [0, 128], sizes = [8, 32], strides = [1, 1]} : vector<8x192xf32> to vector<8x32xf32>
    %258 = vector.extract_strided_slice %252 {offsets = [0, 160], sizes = [8, 32], strides = [1, 1]} : vector<8x192xf32> to vector<8x32xf32>
    %259 = arith.addf %253, %256 : vector<8x32xf32>
    %cst_74 = arith.constant 5.000000e-01 : f32
    %260 = vector.broadcast %cst_74 : f32 to vector<8x32xf32>
    %261 = arith.mulf %260, %259 : vector<8x32xf32>
    %262 = math.tanh %261 : vector<8x32xf32>
    %cst_75 = arith.constant 5.000000e-01 : f32
    %263 = vector.broadcast %cst_75 : f32 to vector<8x32xf32>
    %264 = arith.mulf %263, %262 : vector<8x32xf32>
    %cst_76 = arith.constant 5.000000e-01 : f32
    %265 = vector.broadcast %cst_76 : f32 to vector<8x32xf32>
    %266 = arith.addf %264, %265 : vector<8x32xf32>
    %267 = arith.addf %254, %257 : vector<8x32xf32>
    %cst_77 = arith.constant 5.000000e-01 : f32
    %268 = vector.broadcast %cst_77 : f32 to vector<8x32xf32>
    %269 = arith.mulf %268, %267 : vector<8x32xf32>
    %270 = math.tanh %269 : vector<8x32xf32>
    %cst_78 = arith.constant 5.000000e-01 : f32
    %271 = vector.broadcast %cst_78 : f32 to vector<8x32xf32>
    %272 = arith.mulf %271, %270 : vector<8x32xf32>
    %cst_79 = arith.constant 5.000000e-01 : f32
    %273 = vector.broadcast %cst_79 : f32 to vector<8x32xf32>
    %274 = arith.addf %272, %273 : vector<8x32xf32>
    %275 = arith.mulf %266, %258 : vector<8x32xf32>
    %276 = arith.addf %255, %275 : vector<8x32xf32>
    %277 = math.tanh %276 : vector<8x32xf32>
    %278 = arith.subf %213, %277 : vector<8x32xf32>
    %279 = arith.mulf %274, %278 : vector<8x32xf32>
    %280 = arith.addf %277, %279 : vector<8x32xf32>
    %c4_i32 = arith.constant 4 : i32
    %c8_i32_80 = arith.constant 8 : i32
    %281 = arith.muli %c4_i32, %c8_i32_80 : i32
    %282 = tpu.assume_multiple %281, 8 : i32
    %283 = arith.index_cast %282 : i32 to index
    %c0_81 = arith.constant 0 : index
    %284 = vector.load %arg19[%283, %c0_81] : memref<128x96xf32, #tpu.memory_space<vmem>>, vector<8x96xf32>
    %cst_82 = arith.constant dense<0.000000e+00> : vector<8x96xf32>
    %285 = tpu.matmul %248, %7, %cst_82 {dimension_numbers = #tpu.dot_dimension_numbers<[1], [0], [0], [1], [0, 0, 1, 1], [], []>} : vector<8x32xf32>, vector<32x96xf32>, vector<8x96xf32> -> vector<8x96xf32>
    %286 = vector.broadcast %8 : vector<1x96xf32> to vector<8x96xf32>
    %287 = arith.addf %285, %286 : vector<8x96xf32>
    %288 = vector.extract_strided_slice %284 {offsets = [0, 0], sizes = [8, 32], strides = [1, 1]} : vector<8x96xf32> to vector<8x32xf32>
    %289 = vector.extract_strided_slice %284 {offsets = [0, 32], sizes = [8, 32], strides = [1, 1]} : vector<8x96xf32> to vector<8x32xf32>
    %290 = vector.extract_strided_slice %284 {offsets = [0, 64], sizes = [8, 32], strides = [1, 1]} : vector<8x96xf32> to vector<8x32xf32>
    %291 = vector.extract_strided_slice %287 {offsets = [0, 0], sizes = [8, 32], strides = [1, 1]} : vector<8x96xf32> to vector<8x32xf32>
    %292 = vector.extract_strided_slice %287 {offsets = [0, 32], sizes = [8, 32], strides = [1, 1]} : vector<8x96xf32> to vector<8x32xf32>
    %293 = vector.extract_strided_slice %287 {offsets = [0, 64], sizes = [8, 32], strides = [1, 1]} : vector<8x96xf32> to vector<8x32xf32>
    %294 = arith.addf %288, %291 : vector<8x32xf32>
    %cst_83 = arith.constant 5.000000e-01 : f32
    %295 = vector.broadcast %cst_83 : f32 to vector<8x32xf32>
    %296 = arith.mulf %295, %294 : vector<8x32xf32>
    %297 = math.tanh %296 : vector<8x32xf32>
    %cst_84 = arith.constant 5.000000e-01 : f32
    %298 = vector.broadcast %cst_84 : f32 to vector<8x32xf32>
    %299 = arith.mulf %298, %297 : vector<8x32xf32>
    %cst_85 = arith.constant 5.000000e-01 : f32
    %300 = vector.broadcast %cst_85 : f32 to vector<8x32xf32>
    %301 = arith.addf %299, %300 : vector<8x32xf32>
    %302 = arith.addf %289, %292 : vector<8x32xf32>
    %cst_86 = arith.constant 5.000000e-01 : f32
    %303 = vector.broadcast %cst_86 : f32 to vector<8x32xf32>
    %304 = arith.mulf %303, %302 : vector<8x32xf32>
    %305 = math.tanh %304 : vector<8x32xf32>
    %cst_87 = arith.constant 5.000000e-01 : f32
    %306 = vector.broadcast %cst_87 : f32 to vector<8x32xf32>
    %307 = arith.mulf %306, %305 : vector<8x32xf32>
    %cst_88 = arith.constant 5.000000e-01 : f32
    %308 = vector.broadcast %cst_88 : f32 to vector<8x32xf32>
    %309 = arith.addf %307, %308 : vector<8x32xf32>
    %310 = arith.mulf %301, %293 : vector<8x32xf32>
    %311 = arith.addf %290, %310 : vector<8x32xf32>
    %312 = math.tanh %311 : vector<8x32xf32>
    %313 = arith.subf %248, %312 : vector<8x32xf32>
    %314 = arith.mulf %309, %313 : vector<8x32xf32>
    %315 = arith.addf %312, %314 : vector<8x32xf32>
    %316 = tpu.concatenate %315, %280 in 1 : vector<8x32xf32>, vector<8x32xf32> -> vector<8x64xf32>
    %cst_89 = arith.constant dense<0.000000e+00> : vector<8x192xf32>
    %317 = tpu.matmul %316, %9, %cst_89 {dimension_numbers = #tpu.dot_dimension_numbers<[1], [0], [0], [1], [0, 0, 1, 1], [], []>} : vector<8x64xf32>, vector<64x192xf32>, vector<8x192xf32> -> vector<8x192xf32>
    %318 = vector.broadcast %10 : vector<1x192xf32> to vector<8x192xf32>
    %319 = arith.addf %317, %318 : vector<8x192xf32>
    %320 = vector.extract_strided_slice %319 {offsets = [0, 0], sizes = [8, 32], strides = [1, 1]} : vector<8x192xf32> to vector<8x32xf32>
    %321 = vector.extract_strided_slice %319 {offsets = [0, 32], sizes = [8, 32], strides = [1, 1]} : vector<8x192xf32> to vector<8x32xf32>
    %322 = vector.extract_strided_slice %319 {offsets = [0, 64], sizes = [8, 32], strides = [1, 1]} : vector<8x192xf32> to vector<8x32xf32>
    %323 = vector.extract_strided_slice %319 {offsets = [0, 96], sizes = [8, 32], strides = [1, 1]} : vector<8x192xf32> to vector<8x32xf32>
    %324 = vector.extract_strided_slice %319 {offsets = [0, 128], sizes = [8, 32], strides = [1, 1]} : vector<8x192xf32> to vector<8x32xf32>
    %325 = vector.extract_strided_slice %319 {offsets = [0, 160], sizes = [8, 32], strides = [1, 1]} : vector<8x192xf32> to vector<8x32xf32>
    %326 = arith.addf %320, %323 : vector<8x32xf32>
    %cst_90 = arith.constant 5.000000e-01 : f32
    %327 = vector.broadcast %cst_90 : f32 to vector<8x32xf32>
    %328 = arith.mulf %327, %326 : vector<8x32xf32>
    %329 = math.tanh %328 : vector<8x32xf32>
    %cst_91 = arith.constant 5.000000e-01 : f32
    %330 = vector.broadcast %cst_91 : f32 to vector<8x32xf32>
    %331 = arith.mulf %330, %329 : vector<8x32xf32>
    %cst_92 = arith.constant 5.000000e-01 : f32
    %332 = vector.broadcast %cst_92 : f32 to vector<8x32xf32>
    %333 = arith.addf %331, %332 : vector<8x32xf32>
    %334 = arith.addf %321, %324 : vector<8x32xf32>
    %cst_93 = arith.constant 5.000000e-01 : f32
    %335 = vector.broadcast %cst_93 : f32 to vector<8x32xf32>
    %336 = arith.mulf %335, %334 : vector<8x32xf32>
    %337 = math.tanh %336 : vector<8x32xf32>
    %cst_94 = arith.constant 5.000000e-01 : f32
    %338 = vector.broadcast %cst_94 : f32 to vector<8x32xf32>
    %339 = arith.mulf %338, %337 : vector<8x32xf32>
    %cst_95 = arith.constant 5.000000e-01 : f32
    %340 = vector.broadcast %cst_95 : f32 to vector<8x32xf32>
    %341 = arith.addf %339, %340 : vector<8x32xf32>
    %342 = arith.mulf %333, %325 : vector<8x32xf32>
    %343 = arith.addf %322, %342 : vector<8x32xf32>
    %344 = math.tanh %343 : vector<8x32xf32>
    %345 = arith.subf %280, %344 : vector<8x32xf32>
    %346 = arith.mulf %341, %345 : vector<8x32xf32>
    %347 = arith.addf %344, %346 : vector<8x32xf32>
    %c5_i32 = arith.constant 5 : i32
    %c8_i32_96 = arith.constant 8 : i32
    %348 = arith.muli %c5_i32, %c8_i32_96 : i32
    %349 = tpu.assume_multiple %348, 8 : i32
    %350 = arith.index_cast %349 : i32 to index
    %c0_97 = arith.constant 0 : index
    %351 = vector.load %arg19[%350, %c0_97] : memref<128x96xf32, #tpu.memory_space<vmem>>, vector<8x96xf32>
    %cst_98 = arith.constant dense<0.000000e+00> : vector<8x96xf32>
    %352 = tpu.matmul %315, %7, %cst_98 {dimension_numbers = #tpu.dot_dimension_numbers<[1], [0], [0], [1], [0, 0, 1, 1], [], []>} : vector<8x32xf32>, vector<32x96xf32>, vector<8x96xf32> -> vector<8x96xf32>
    %353 = vector.broadcast %8 : vector<1x96xf32> to vector<8x96xf32>
    %354 = arith.addf %352, %353 : vector<8x96xf32>
    %355 = vector.extract_strided_slice %351 {offsets = [0, 0], sizes = [8, 32], strides = [1, 1]} : vector<8x96xf32> to vector<8x32xf32>
    %356 = vector.extract_strided_slice %351 {offsets = [0, 32], sizes = [8, 32], strides = [1, 1]} : vector<8x96xf32> to vector<8x32xf32>
    %357 = vector.extract_strided_slice %351 {offsets = [0, 64], sizes = [8, 32], strides = [1, 1]} : vector<8x96xf32> to vector<8x32xf32>
    %358 = vector.extract_strided_slice %354 {offsets = [0, 0], sizes = [8, 32], strides = [1, 1]} : vector<8x96xf32> to vector<8x32xf32>
    %359 = vector.extract_strided_slice %354 {offsets = [0, 32], sizes = [8, 32], strides = [1, 1]} : vector<8x96xf32> to vector<8x32xf32>
    %360 = vector.extract_strided_slice %354 {offsets = [0, 64], sizes = [8, 32], strides = [1, 1]} : vector<8x96xf32> to vector<8x32xf32>
    %361 = arith.addf %355, %358 : vector<8x32xf32>
    %cst_99 = arith.constant 5.000000e-01 : f32
    %362 = vector.broadcast %cst_99 : f32 to vector<8x32xf32>
    %363 = arith.mulf %362, %361 : vector<8x32xf32>
    %364 = math.tanh %363 : vector<8x32xf32>
    %cst_100 = arith.constant 5.000000e-01 : f32
    %365 = vector.broadcast %cst_100 : f32 to vector<8x32xf32>
    %366 = arith.mulf %365, %364 : vector<8x32xf32>
    %cst_101 = arith.constant 5.000000e-01 : f32
    %367 = vector.broadcast %cst_101 : f32 to vector<8x32xf32>
    %368 = arith.addf %366, %367 : vector<8x32xf32>
    %369 = arith.addf %356, %359 : vector<8x32xf32>
    %cst_102 = arith.constant 5.000000e-01 : f32
    %370 = vector.broadcast %cst_102 : f32 to vector<8x32xf32>
    %371 = arith.mulf %370, %369 : vector<8x32xf32>
    %372 = math.tanh %371 : vector<8x32xf32>
    %cst_103 = arith.constant 5.000000e-01 : f32
    %373 = vector.broadcast %cst_103 : f32 to vector<8x32xf32>
    %374 = arith.mulf %373, %372 : vector<8x32xf32>
    %cst_104 = arith.constant 5.000000e-01 : f32
    %375 = vector.broadcast %cst_104 : f32 to vector<8x32xf32>
    %376 = arith.addf %374, %375 : vector<8x32xf32>
    %377 = arith.mulf %368, %360 : vector<8x32xf32>
    %378 = arith.addf %357, %377 : vector<8x32xf32>
    %379 = math.tanh %378 : vector<8x32xf32>
    %380 = arith.subf %315, %379 : vector<8x32xf32>
    %381 = arith.mulf %376, %380 : vector<8x32xf32>
    %382 = arith.addf %379, %381 : vector<8x32xf32>
    %383 = tpu.concatenate %382, %347 in 1 : vector<8x32xf32>, vector<8x32xf32> -> vector<8x64xf32>
    %cst_105 = arith.constant dense<0.000000e+00> : vector<8x192xf32>
    %384 = tpu.matmul %383, %9, %cst_105 {dimension_numbers = #tpu.dot_dimension_numbers<[1], [0], [0], [1], [0, 0, 1, 1], [], []>} : vector<8x64xf32>, vector<64x192xf32>, vector<8x192xf32> -> vector<8x192xf32>
    %385 = vector.broadcast %10 : vector<1x192xf32> to vector<8x192xf32>
    %386 = arith.addf %384, %385 : vector<8x192xf32>
    %387 = vector.extract_strided_slice %386 {offsets = [0, 0], sizes = [8, 32], strides = [1, 1]} : vector<8x192xf32> to vector<8x32xf32>
    %388 = vector.extract_strided_slice %386 {offsets = [0, 32], sizes = [8, 32], strides = [1, 1]} : vector<8x192xf32> to vector<8x32xf32>
    %389 = vector.extract_strided_slice %386 {offsets = [0, 64], sizes = [8, 32], strides = [1, 1]} : vector<8x192xf32> to vector<8x32xf32>
    %390 = vector.extract_strided_slice %386 {offsets = [0, 96], sizes = [8, 32], strides = [1, 1]} : vector<8x192xf32> to vector<8x32xf32>
    %391 = vector.extract_strided_slice %386 {offsets = [0, 128], sizes = [8, 32], strides = [1, 1]} : vector<8x192xf32> to vector<8x32xf32>
    %392 = vector.extract_strided_slice %386 {offsets = [0, 160], sizes = [8, 32], strides = [1, 1]} : vector<8x192xf32> to vector<8x32xf32>
    %393 = arith.addf %387, %390 : vector<8x32xf32>
    %cst_106 = arith.constant 5.000000e-01 : f32
    %394 = vector.broadcast %cst_106 : f32 to vector<8x32xf32>
    %395 = arith.mulf %394, %393 : vector<8x32xf32>
    %396 = math.tanh %395 : vector<8x32xf32>
    %cst_107 = arith.constant 5.000000e-01 : f32
    %397 = vector.broadcast %cst_107 : f32 to vector<8x32xf32>
    %398 = arith.mulf %397, %396 : vector<8x32xf32>
    %cst_108 = arith.constant 5.000000e-01 : f32
    %399 = vector.broadcast %cst_108 : f32 to vector<8x32xf32>
    %400 = arith.addf %398, %399 : vector<8x32xf32>
    %401 = arith.addf %388, %391 : vector<8x32xf32>
    %cst_109 = arith.constant 5.000000e-01 : f32
    %402 = vector.broadcast %cst_109 : f32 to vector<8x32xf32>
    %403 = arith.mulf %402, %401 : vector<8x32xf32>
    %404 = math.tanh %403 : vector<8x32xf32>
    %cst_110 = arith.constant 5.000000e-01 : f32
    %405 = vector.broadcast %cst_110 : f32 to vector<8x32xf32>
    %406 = arith.mulf %405, %404 : vector<8x32xf32>
    %cst_111 = arith.constant 5.000000e-01 : f32
    %407 = vector.broadcast %cst_111 : f32 to vector<8x32xf32>
    %408 = arith.addf %406, %407 : vector<8x32xf32>
    %409 = arith.mulf %400, %392 : vector<8x32xf32>
    %410 = arith.addf %389, %409 : vector<8x32xf32>
    %411 = math.tanh %410 : vector<8x32xf32>
    %412 = arith.subf %347, %411 : vector<8x32xf32>
    %413 = arith.mulf %408, %412 : vector<8x32xf32>
    %414 = arith.addf %411, %413 : vector<8x32xf32>
    %c6_i32 = arith.constant 6 : i32
    %c8_i32_112 = arith.constant 8 : i32
    %415 = arith.muli %c6_i32, %c8_i32_112 : i32
    %416 = tpu.assume_multiple %415, 8 : i32
    %417 = arith.index_cast %416 : i32 to index
    %c0_113 = arith.constant 0 : index
    %418 = vector.load %arg19[%417, %c0_113] : memref<128x96xf32, #tpu.memory_space<vmem>>, vector<8x96xf32>
    %cst_114 = arith.constant dense<0.000000e+00> : vector<8x96xf32>
    %419 = tpu.matmul %382, %7, %cst_114 {dimension_numbers = #tpu.dot_dimension_numbers<[1], [0], [0], [1], [0, 0, 1, 1], [], []>} : vector<8x32xf32>, vector<32x96xf32>, vector<8x96xf32> -> vector<8x96xf32>
    %420 = vector.broadcast %8 : vector<1x96xf32> to vector<8x96xf32>
    %421 = arith.addf %419, %420 : vector<8x96xf32>
    %422 = vector.extract_strided_slice %418 {offsets = [0, 0], sizes = [8, 32], strides = [1, 1]} : vector<8x96xf32> to vector<8x32xf32>
    %423 = vector.extract_strided_slice %418 {offsets = [0, 32], sizes = [8, 32], strides = [1, 1]} : vector<8x96xf32> to vector<8x32xf32>
    %424 = vector.extract_strided_slice %418 {offsets = [0, 64], sizes = [8, 32], strides = [1, 1]} : vector<8x96xf32> to vector<8x32xf32>
    %425 = vector.extract_strided_slice %421 {offsets = [0, 0], sizes = [8, 32], strides = [1, 1]} : vector<8x96xf32> to vector<8x32xf32>
    %426 = vector.extract_strided_slice %421 {offsets = [0, 32], sizes = [8, 32], strides = [1, 1]} : vector<8x96xf32> to vector<8x32xf32>
    %427 = vector.extract_strided_slice %421 {offsets = [0, 64], sizes = [8, 32], strides = [1, 1]} : vector<8x96xf32> to vector<8x32xf32>
    %428 = arith.addf %422, %425 : vector<8x32xf32>
    %cst_115 = arith.constant 5.000000e-01 : f32
    %429 = vector.broadcast %cst_115 : f32 to vector<8x32xf32>
    %430 = arith.mulf %429, %428 : vector<8x32xf32>
    %431 = math.tanh %430 : vector<8x32xf32>
    %cst_116 = arith.constant 5.000000e-01 : f32
    %432 = vector.broadcast %cst_116 : f32 to vector<8x32xf32>
    %433 = arith.mulf %432, %431 : vector<8x32xf32>
    %cst_117 = arith.constant 5.000000e-01 : f32
    %434 = vector.broadcast %cst_117 : f32 to vector<8x32xf32>
    %435 = arith.addf %433, %434 : vector<8x32xf32>
    %436 = arith.addf %423, %426 : vector<8x32xf32>
    %cst_118 = arith.constant 5.000000e-01 : f32
    %437 = vector.broadcast %cst_118 : f32 to vector<8x32xf32>
    %438 = arith.mulf %437, %436 : vector<8x32xf32>
    %439 = math.tanh %438 : vector<8x32xf32>
    %cst_119 = arith.constant 5.000000e-01 : f32
    %440 = vector.broadcast %cst_119 : f32 to vector<8x32xf32>
    %441 = arith.mulf %440, %439 : vector<8x32xf32>
    %cst_120 = arith.constant 5.000000e-01 : f32
    %442 = vector.broadcast %cst_120 : f32 to vector<8x32xf32>
    %443 = arith.addf %441, %442 : vector<8x32xf32>
    %444 = arith.mulf %435, %427 : vector<8x32xf32>
    %445 = arith.addf %424, %444 : vector<8x32xf32>
    %446 = math.tanh %445 : vector<8x32xf32>
    %447 = arith.subf %382, %446 : vector<8x32xf32>
    %448 = arith.mulf %443, %447 : vector<8x32xf32>
    %449 = arith.addf %446, %448 : vector<8x32xf32>
    %450 = tpu.concatenate %449, %414 in 1 : vector<8x32xf32>, vector<8x32xf32> -> vector<8x64xf32>
    %cst_121 = arith.constant dense<0.000000e+00> : vector<8x192xf32>
    %451 = tpu.matmul %450, %9, %cst_121 {dimension_numbers = #tpu.dot_dimension_numbers<[1], [0], [0], [1], [0, 0, 1, 1], [], []>} : vector<8x64xf32>, vector<64x192xf32>, vector<8x192xf32> -> vector<8x192xf32>
    %452 = vector.broadcast %10 : vector<1x192xf32> to vector<8x192xf32>
    %453 = arith.addf %451, %452 : vector<8x192xf32>
    %454 = vector.extract_strided_slice %453 {offsets = [0, 0], sizes = [8, 32], strides = [1, 1]} : vector<8x192xf32> to vector<8x32xf32>
    %455 = vector.extract_strided_slice %453 {offsets = [0, 32], sizes = [8, 32], strides = [1, 1]} : vector<8x192xf32> to vector<8x32xf32>
    %456 = vector.extract_strided_slice %453 {offsets = [0, 64], sizes = [8, 32], strides = [1, 1]} : vector<8x192xf32> to vector<8x32xf32>
    %457 = vector.extract_strided_slice %453 {offsets = [0, 96], sizes = [8, 32], strides = [1, 1]} : vector<8x192xf32> to vector<8x32xf32>
    %458 = vector.extract_strided_slice %453 {offsets = [0, 128], sizes = [8, 32], strides = [1, 1]} : vector<8x192xf32> to vector<8x32xf32>
    %459 = vector.extract_strided_slice %453 {offsets = [0, 160], sizes = [8, 32], strides = [1, 1]} : vector<8x192xf32> to vector<8x32xf32>
    %460 = arith.addf %454, %457 : vector<8x32xf32>
    %cst_122 = arith.constant 5.000000e-01 : f32
    %461 = vector.broadcast %cst_122 : f32 to vector<8x32xf32>
    %462 = arith.mulf %461, %460 : vector<8x32xf32>
    %463 = math.tanh %462 : vector<8x32xf32>
    %cst_123 = arith.constant 5.000000e-01 : f32
    %464 = vector.broadcast %cst_123 : f32 to vector<8x32xf32>
    %465 = arith.mulf %464, %463 : vector<8x32xf32>
    %cst_124 = arith.constant 5.000000e-01 : f32
    %466 = vector.broadcast %cst_124 : f32 to vector<8x32xf32>
    %467 = arith.addf %465, %466 : vector<8x32xf32>
    %468 = arith.addf %455, %458 : vector<8x32xf32>
    %cst_125 = arith.constant 5.000000e-01 : f32
    %469 = vector.broadcast %cst_125 : f32 to vector<8x32xf32>
    %470 = arith.mulf %469, %468 : vector<8x32xf32>
    %471 = math.tanh %470 : vector<8x32xf32>
    %cst_126 = arith.constant 5.000000e-01 : f32
    %472 = vector.broadcast %cst_126 : f32 to vector<8x32xf32>
    %473 = arith.mulf %472, %471 : vector<8x32xf32>
    %cst_127 = arith.constant 5.000000e-01 : f32
    %474 = vector.broadcast %cst_127 : f32 to vector<8x32xf32>
    %475 = arith.addf %473, %474 : vector<8x32xf32>
    %476 = arith.mulf %467, %459 : vector<8x32xf32>
    %477 = arith.addf %456, %476 : vector<8x32xf32>
    %478 = math.tanh %477 : vector<8x32xf32>
    %479 = arith.subf %414, %478 : vector<8x32xf32>
    %480 = arith.mulf %475, %479 : vector<8x32xf32>
    %481 = arith.addf %478, %480 : vector<8x32xf32>
    %c7_i32 = arith.constant 7 : i32
    %c8_i32_128 = arith.constant 8 : i32
    %482 = arith.muli %c7_i32, %c8_i32_128 : i32
    %483 = tpu.assume_multiple %482, 8 : i32
    %484 = arith.index_cast %483 : i32 to index
    %c0_129 = arith.constant 0 : index
    %485 = vector.load %arg19[%484, %c0_129] : memref<128x96xf32, #tpu.memory_space<vmem>>, vector<8x96xf32>
    %cst_130 = arith.constant dense<0.000000e+00> : vector<8x96xf32>
    %486 = tpu.matmul %449, %7, %cst_130 {dimension_numbers = #tpu.dot_dimension_numbers<[1], [0], [0], [1], [0, 0, 1, 1], [], []>} : vector<8x32xf32>, vector<32x96xf32>, vector<8x96xf32> -> vector<8x96xf32>
    %487 = vector.broadcast %8 : vector<1x96xf32> to vector<8x96xf32>
    %488 = arith.addf %486, %487 : vector<8x96xf32>
    %489 = vector.extract_strided_slice %485 {offsets = [0, 0], sizes = [8, 32], strides = [1, 1]} : vector<8x96xf32> to vector<8x32xf32>
    %490 = vector.extract_strided_slice %485 {offsets = [0, 32], sizes = [8, 32], strides = [1, 1]} : vector<8x96xf32> to vector<8x32xf32>
    %491 = vector.extract_strided_slice %485 {offsets = [0, 64], sizes = [8, 32], strides = [1, 1]} : vector<8x96xf32> to vector<8x32xf32>
    %492 = vector.extract_strided_slice %488 {offsets = [0, 0], sizes = [8, 32], strides = [1, 1]} : vector<8x96xf32> to vector<8x32xf32>
    %493 = vector.extract_strided_slice %488 {offsets = [0, 32], sizes = [8, 32], strides = [1, 1]} : vector<8x96xf32> to vector<8x32xf32>
    %494 = vector.extract_strided_slice %488 {offsets = [0, 64], sizes = [8, 32], strides = [1, 1]} : vector<8x96xf32> to vector<8x32xf32>
    %495 = arith.addf %489, %492 : vector<8x32xf32>
    %cst_131 = arith.constant 5.000000e-01 : f32
    %496 = vector.broadcast %cst_131 : f32 to vector<8x32xf32>
    %497 = arith.mulf %496, %495 : vector<8x32xf32>
    %498 = math.tanh %497 : vector<8x32xf32>
    %cst_132 = arith.constant 5.000000e-01 : f32
    %499 = vector.broadcast %cst_132 : f32 to vector<8x32xf32>
    %500 = arith.mulf %499, %498 : vector<8x32xf32>
    %cst_133 = arith.constant 5.000000e-01 : f32
    %501 = vector.broadcast %cst_133 : f32 to vector<8x32xf32>
    %502 = arith.addf %500, %501 : vector<8x32xf32>
    %503 = arith.addf %490, %493 : vector<8x32xf32>
    %cst_134 = arith.constant 5.000000e-01 : f32
    %504 = vector.broadcast %cst_134 : f32 to vector<8x32xf32>
    %505 = arith.mulf %504, %503 : vector<8x32xf32>
    %506 = math.tanh %505 : vector<8x32xf32>
    %cst_135 = arith.constant 5.000000e-01 : f32
    %507 = vector.broadcast %cst_135 : f32 to vector<8x32xf32>
    %508 = arith.mulf %507, %506 : vector<8x32xf32>
    %cst_136 = arith.constant 5.000000e-01 : f32
    %509 = vector.broadcast %cst_136 : f32 to vector<8x32xf32>
    %510 = arith.addf %508, %509 : vector<8x32xf32>
    %511 = arith.mulf %502, %494 : vector<8x32xf32>
    %512 = arith.addf %491, %511 : vector<8x32xf32>
    %513 = math.tanh %512 : vector<8x32xf32>
    %514 = arith.subf %449, %513 : vector<8x32xf32>
    %515 = arith.mulf %510, %514 : vector<8x32xf32>
    %516 = arith.addf %513, %515 : vector<8x32xf32>
    %517 = tpu.concatenate %516, %481 in 1 : vector<8x32xf32>, vector<8x32xf32> -> vector<8x64xf32>
    %cst_137 = arith.constant dense<0.000000e+00> : vector<8x192xf32>
    %518 = tpu.matmul %517, %9, %cst_137 {dimension_numbers = #tpu.dot_dimension_numbers<[1], [0], [0], [1], [0, 0, 1, 1], [], []>} : vector<8x64xf32>, vector<64x192xf32>, vector<8x192xf32> -> vector<8x192xf32>
    %519 = vector.broadcast %10 : vector<1x192xf32> to vector<8x192xf32>
    %520 = arith.addf %518, %519 : vector<8x192xf32>
    %521 = vector.extract_strided_slice %520 {offsets = [0, 0], sizes = [8, 32], strides = [1, 1]} : vector<8x192xf32> to vector<8x32xf32>
    %522 = vector.extract_strided_slice %520 {offsets = [0, 32], sizes = [8, 32], strides = [1, 1]} : vector<8x192xf32> to vector<8x32xf32>
    %523 = vector.extract_strided_slice %520 {offsets = [0, 64], sizes = [8, 32], strides = [1, 1]} : vector<8x192xf32> to vector<8x32xf32>
    %524 = vector.extract_strided_slice %520 {offsets = [0, 96], sizes = [8, 32], strides = [1, 1]} : vector<8x192xf32> to vector<8x32xf32>
    %525 = vector.extract_strided_slice %520 {offsets = [0, 128], sizes = [8, 32], strides = [1, 1]} : vector<8x192xf32> to vector<8x32xf32>
    %526 = vector.extract_strided_slice %520 {offsets = [0, 160], sizes = [8, 32], strides = [1, 1]} : vector<8x192xf32> to vector<8x32xf32>
    %527 = arith.addf %521, %524 : vector<8x32xf32>
    %cst_138 = arith.constant 5.000000e-01 : f32
    %528 = vector.broadcast %cst_138 : f32 to vector<8x32xf32>
    %529 = arith.mulf %528, %527 : vector<8x32xf32>
    %530 = math.tanh %529 : vector<8x32xf32>
    %cst_139 = arith.constant 5.000000e-01 : f32
    %531 = vector.broadcast %cst_139 : f32 to vector<8x32xf32>
    %532 = arith.mulf %531, %530 : vector<8x32xf32>
    %cst_140 = arith.constant 5.000000e-01 : f32
    %533 = vector.broadcast %cst_140 : f32 to vector<8x32xf32>
    %534 = arith.addf %532, %533 : vector<8x32xf32>
    %535 = arith.addf %522, %525 : vector<8x32xf32>
    %cst_141 = arith.constant 5.000000e-01 : f32
    %536 = vector.broadcast %cst_141 : f32 to vector<8x32xf32>
    %537 = arith.mulf %536, %535 : vector<8x32xf32>
    %538 = math.tanh %537 : vector<8x32xf32>
    %cst_142 = arith.constant 5.000000e-01 : f32
    %539 = vector.broadcast %cst_142 : f32 to vector<8x32xf32>
    %540 = arith.mulf %539, %538 : vector<8x32xf32>
    %cst_143 = arith.constant 5.000000e-01 : f32
    %541 = vector.broadcast %cst_143 : f32 to vector<8x32xf32>
    %542 = arith.addf %540, %541 : vector<8x32xf32>
    %543 = arith.mulf %534, %526 : vector<8x32xf32>
    %544 = arith.addf %523, %543 : vector<8x32xf32>
    %545 = math.tanh %544 : vector<8x32xf32>
    %546 = arith.subf %481, %545 : vector<8x32xf32>
    %547 = arith.mulf %542, %546 : vector<8x32xf32>
    %548 = arith.addf %545, %547 : vector<8x32xf32>
    %c8_i32_144 = arith.constant 8 : i32
    %c8_i32_145 = arith.constant 8 : i32
    %549 = arith.muli %c8_i32_144, %c8_i32_145 : i32
    %550 = tpu.assume_multiple %549, 8 : i32
    %551 = arith.index_cast %550 : i32 to index
    %c0_146 = arith.constant 0 : index
    %552 = vector.load %arg19[%551, %c0_146] : memref<128x96xf32, #tpu.memory_space<vmem>>, vector<8x96xf32>
    %cst_147 = arith.constant dense<0.000000e+00> : vector<8x96xf32>
    %553 = tpu.matmul %516, %7, %cst_147 {dimension_numbers = #tpu.dot_dimension_numbers<[1], [0], [0], [1], [0, 0, 1, 1], [], []>} : vector<8x32xf32>, vector<32x96xf32>, vector<8x96xf32> -> vector<8x96xf32>
    %554 = vector.broadcast %8 : vector<1x96xf32> to vector<8x96xf32>
    %555 = arith.addf %553, %554 : vector<8x96xf32>
    %556 = vector.extract_strided_slice %552 {offsets = [0, 0], sizes = [8, 32], strides = [1, 1]} : vector<8x96xf32> to vector<8x32xf32>
    %557 = vector.extract_strided_slice %552 {offsets = [0, 32], sizes = [8, 32], strides = [1, 1]} : vector<8x96xf32> to vector<8x32xf32>
    %558 = vector.extract_strided_slice %552 {offsets = [0, 64], sizes = [8, 32], strides = [1, 1]} : vector<8x96xf32> to vector<8x32xf32>
    %559 = vector.extract_strided_slice %555 {offsets = [0, 0], sizes = [8, 32], strides = [1, 1]} : vector<8x96xf32> to vector<8x32xf32>
    %560 = vector.extract_strided_slice %555 {offsets = [0, 32], sizes = [8, 32], strides = [1, 1]} : vector<8x96xf32> to vector<8x32xf32>
    %561 = vector.extract_strided_slice %555 {offsets = [0, 64], sizes = [8, 32], strides = [1, 1]} : vector<8x96xf32> to vector<8x32xf32>
    %562 = arith.addf %556, %559 : vector<8x32xf32>
    %cst_148 = arith.constant 5.000000e-01 : f32
    %563 = vector.broadcast %cst_148 : f32 to vector<8x32xf32>
    %564 = arith.mulf %563, %562 : vector<8x32xf32>
    %565 = math.tanh %564 : vector<8x32xf32>
    %cst_149 = arith.constant 5.000000e-01 : f32
    %566 = vector.broadcast %cst_149 : f32 to vector<8x32xf32>
    %567 = arith.mulf %566, %565 : vector<8x32xf32>
    %cst_150 = arith.constant 5.000000e-01 : f32
    %568 = vector.broadcast %cst_150 : f32 to vector<8x32xf32>
    %569 = arith.addf %567, %568 : vector<8x32xf32>
    %570 = arith.addf %557, %560 : vector<8x32xf32>
    %cst_151 = arith.constant 5.000000e-01 : f32
    %571 = vector.broadcast %cst_151 : f32 to vector<8x32xf32>
    %572 = arith.mulf %571, %570 : vector<8x32xf32>
    %573 = math.tanh %572 : vector<8x32xf32>
    %cst_152 = arith.constant 5.000000e-01 : f32
    %574 = vector.broadcast %cst_152 : f32 to vector<8x32xf32>
    %575 = arith.mulf %574, %573 : vector<8x32xf32>
    %cst_153 = arith.constant 5.000000e-01 : f32
    %576 = vector.broadcast %cst_153 : f32 to vector<8x32xf32>
    %577 = arith.addf %575, %576 : vector<8x32xf32>
    %578 = arith.mulf %569, %561 : vector<8x32xf32>
    %579 = arith.addf %558, %578 : vector<8x32xf32>
    %580 = math.tanh %579 : vector<8x32xf32>
    %581 = arith.subf %516, %580 : vector<8x32xf32>
    %582 = arith.mulf %577, %581 : vector<8x32xf32>
    %583 = arith.addf %580, %582 : vector<8x32xf32>
    %584 = tpu.concatenate %583, %548 in 1 : vector<8x32xf32>, vector<8x32xf32> -> vector<8x64xf32>
    %cst_154 = arith.constant dense<0.000000e+00> : vector<8x192xf32>
    %585 = tpu.matmul %584, %9, %cst_154 {dimension_numbers = #tpu.dot_dimension_numbers<[1], [0], [0], [1], [0, 0, 1, 1], [], []>} : vector<8x64xf32>, vector<64x192xf32>, vector<8x192xf32> -> vector<8x192xf32>
    %586 = vector.broadcast %10 : vector<1x192xf32> to vector<8x192xf32>
    %587 = arith.addf %585, %586 : vector<8x192xf32>
    %588 = vector.extract_strided_slice %587 {offsets = [0, 0], sizes = [8, 32], strides = [1, 1]} : vector<8x192xf32> to vector<8x32xf32>
    %589 = vector.extract_strided_slice %587 {offsets = [0, 32], sizes = [8, 32], strides = [1, 1]} : vector<8x192xf32> to vector<8x32xf32>
    %590 = vector.extract_strided_slice %587 {offsets = [0, 64], sizes = [8, 32], strides = [1, 1]} : vector<8x192xf32> to vector<8x32xf32>
    %591 = vector.extract_strided_slice %587 {offsets = [0, 96], sizes = [8, 32], strides = [1, 1]} : vector<8x192xf32> to vector<8x32xf32>
    %592 = vector.extract_strided_slice %587 {offsets = [0, 128], sizes = [8, 32], strides = [1, 1]} : vector<8x192xf32> to vector<8x32xf32>
    %593 = vector.extract_strided_slice %587 {offsets = [0, 160], sizes = [8, 32], strides = [1, 1]} : vector<8x192xf32> to vector<8x32xf32>
    %594 = arith.addf %588, %591 : vector<8x32xf32>
    %cst_155 = arith.constant 5.000000e-01 : f32
    %595 = vector.broadcast %cst_155 : f32 to vector<8x32xf32>
    %596 = arith.mulf %595, %594 : vector<8x32xf32>
    %597 = math.tanh %596 : vector<8x32xf32>
    %cst_156 = arith.constant 5.000000e-01 : f32
    %598 = vector.broadcast %cst_156 : f32 to vector<8x32xf32>
    %599 = arith.mulf %598, %597 : vector<8x32xf32>
    %cst_157 = arith.constant 5.000000e-01 : f32
    %600 = vector.broadcast %cst_157 : f32 to vector<8x32xf32>
    %601 = arith.addf %599, %600 : vector<8x32xf32>
    %602 = arith.addf %589, %592 : vector<8x32xf32>
    %cst_158 = arith.constant 5.000000e-01 : f32
    %603 = vector.broadcast %cst_158 : f32 to vector<8x32xf32>
    %604 = arith.mulf %603, %602 : vector<8x32xf32>
    %605 = math.tanh %604 : vector<8x32xf32>
    %cst_159 = arith.constant 5.000000e-01 : f32
    %606 = vector.broadcast %cst_159 : f32 to vector<8x32xf32>
    %607 = arith.mulf %606, %605 : vector<8x32xf32>
    %cst_160 = arith.constant 5.000000e-01 : f32
    %608 = vector.broadcast %cst_160 : f32 to vector<8x32xf32>
    %609 = arith.addf %607, %608 : vector<8x32xf32>
    %610 = arith.mulf %601, %593 : vector<8x32xf32>
    %611 = arith.addf %590, %610 : vector<8x32xf32>
    %612 = math.tanh %611 : vector<8x32xf32>
    %613 = arith.subf %548, %612 : vector<8x32xf32>
    %614 = arith.mulf %609, %613 : vector<8x32xf32>
    %615 = arith.addf %612, %614 : vector<8x32xf32>
    %c9_i32 = arith.constant 9 : i32
    %c8_i32_161 = arith.constant 8 : i32
    %616 = arith.muli %c9_i32, %c8_i32_161 : i32
    %617 = tpu.assume_multiple %616, 8 : i32
    %618 = arith.index_cast %617 : i32 to index
    %c0_162 = arith.constant 0 : index
    %619 = vector.load %arg19[%618, %c0_162] : memref<128x96xf32, #tpu.memory_space<vmem>>, vector<8x96xf32>
    %cst_163 = arith.constant dense<0.000000e+00> : vector<8x96xf32>
    %620 = tpu.matmul %583, %7, %cst_163 {dimension_numbers = #tpu.dot_dimension_numbers<[1], [0], [0], [1], [0, 0, 1, 1], [], []>} : vector<8x32xf32>, vector<32x96xf32>, vector<8x96xf32> -> vector<8x96xf32>
    %621 = vector.broadcast %8 : vector<1x96xf32> to vector<8x96xf32>
    %622 = arith.addf %620, %621 : vector<8x96xf32>
    %623 = vector.extract_strided_slice %619 {offsets = [0, 0], sizes = [8, 32], strides = [1, 1]} : vector<8x96xf32> to vector<8x32xf32>
    %624 = vector.extract_strided_slice %619 {offsets = [0, 32], sizes = [8, 32], strides = [1, 1]} : vector<8x96xf32> to vector<8x32xf32>
    %625 = vector.extract_strided_slice %619 {offsets = [0, 64], sizes = [8, 32], strides = [1, 1]} : vector<8x96xf32> to vector<8x32xf32>
    %626 = vector.extract_strided_slice %622 {offsets = [0, 0], sizes = [8, 32], strides = [1, 1]} : vector<8x96xf32> to vector<8x32xf32>
    %627 = vector.extract_strided_slice %622 {offsets = [0, 32], sizes = [8, 32], strides = [1, 1]} : vector<8x96xf32> to vector<8x32xf32>
    %628 = vector.extract_strided_slice %622 {offsets = [0, 64], sizes = [8, 32], strides = [1, 1]} : vector<8x96xf32> to vector<8x32xf32>
    %629 = arith.addf %623, %626 : vector<8x32xf32>
    %cst_164 = arith.constant 5.000000e-01 : f32
    %630 = vector.broadcast %cst_164 : f32 to vector<8x32xf32>
    %631 = arith.mulf %630, %629 : vector<8x32xf32>
    %632 = math.tanh %631 : vector<8x32xf32>
    %cst_165 = arith.constant 5.000000e-01 : f32
    %633 = vector.broadcast %cst_165 : f32 to vector<8x32xf32>
    %634 = arith.mulf %633, %632 : vector<8x32xf32>
    %cst_166 = arith.constant 5.000000e-01 : f32
    %635 = vector.broadcast %cst_166 : f32 to vector<8x32xf32>
    %636 = arith.addf %634, %635 : vector<8x32xf32>
    %637 = arith.addf %624, %627 : vector<8x32xf32>
    %cst_167 = arith.constant 5.000000e-01 : f32
    %638 = vector.broadcast %cst_167 : f32 to vector<8x32xf32>
    %639 = arith.mulf %638, %637 : vector<8x32xf32>
    %640 = math.tanh %639 : vector<8x32xf32>
    %cst_168 = arith.constant 5.000000e-01 : f32
    %641 = vector.broadcast %cst_168 : f32 to vector<8x32xf32>
    %642 = arith.mulf %641, %640 : vector<8x32xf32>
    %cst_169 = arith.constant 5.000000e-01 : f32
    %643 = vector.broadcast %cst_169 : f32 to vector<8x32xf32>
    %644 = arith.addf %642, %643 : vector<8x32xf32>
    %645 = arith.mulf %636, %628 : vector<8x32xf32>
    %646 = arith.addf %625, %645 : vector<8x32xf32>
    %647 = math.tanh %646 : vector<8x32xf32>
    %648 = arith.subf %583, %647 : vector<8x32xf32>
    %649 = arith.mulf %644, %648 : vector<8x32xf32>
    %650 = arith.addf %647, %649 : vector<8x32xf32>
    %651 = tpu.concatenate %650, %615 in 1 : vector<8x32xf32>, vector<8x32xf32> -> vector<8x64xf32>
    %cst_170 = arith.constant dense<0.000000e+00> : vector<8x192xf32>
    %652 = tpu.matmul %651, %9, %cst_170 {dimension_numbers = #tpu.dot_dimension_numbers<[1], [0], [0], [1], [0, 0, 1, 1], [], []>} : vector<8x64xf32>, vector<64x192xf32>, vector<8x192xf32> -> vector<8x192xf32>
    %653 = vector.broadcast %10 : vector<1x192xf32> to vector<8x192xf32>
    %654 = arith.addf %652, %653 : vector<8x192xf32>
    %655 = vector.extract_strided_slice %654 {offsets = [0, 0], sizes = [8, 32], strides = [1, 1]} : vector<8x192xf32> to vector<8x32xf32>
    %656 = vector.extract_strided_slice %654 {offsets = [0, 32], sizes = [8, 32], strides = [1, 1]} : vector<8x192xf32> to vector<8x32xf32>
    %657 = vector.extract_strided_slice %654 {offsets = [0, 64], sizes = [8, 32], strides = [1, 1]} : vector<8x192xf32> to vector<8x32xf32>
    %658 = vector.extract_strided_slice %654 {offsets = [0, 96], sizes = [8, 32], strides = [1, 1]} : vector<8x192xf32> to vector<8x32xf32>
    %659 = vector.extract_strided_slice %654 {offsets = [0, 128], sizes = [8, 32], strides = [1, 1]} : vector<8x192xf32> to vector<8x32xf32>
    %660 = vector.extract_strided_slice %654 {offsets = [0, 160], sizes = [8, 32], strides = [1, 1]} : vector<8x192xf32> to vector<8x32xf32>
    %661 = arith.addf %655, %658 : vector<8x32xf32>
    %cst_171 = arith.constant 5.000000e-01 : f32
    %662 = vector.broadcast %cst_171 : f32 to vector<8x32xf32>
    %663 = arith.mulf %662, %661 : vector<8x32xf32>
    %664 = math.tanh %663 : vector<8x32xf32>
    %cst_172 = arith.constant 5.000000e-01 : f32
    %665 = vector.broadcast %cst_172 : f32 to vector<8x32xf32>
    %666 = arith.mulf %665, %664 : vector<8x32xf32>
    %cst_173 = arith.constant 5.000000e-01 : f32
    %667 = vector.broadcast %cst_173 : f32 to vector<8x32xf32>
    %668 = arith.addf %666, %667 : vector<8x32xf32>
    %669 = arith.addf %656, %659 : vector<8x32xf32>
    %cst_174 = arith.constant 5.000000e-01 : f32
    %670 = vector.broadcast %cst_174 : f32 to vector<8x32xf32>
    %671 = arith.mulf %670, %669 : vector<8x32xf32>
    %672 = math.tanh %671 : vector<8x32xf32>
    %cst_175 = arith.constant 5.000000e-01 : f32
    %673 = vector.broadcast %cst_175 : f32 to vector<8x32xf32>
    %674 = arith.mulf %673, %672 : vector<8x32xf32>
    %cst_176 = arith.constant 5.000000e-01 : f32
    %675 = vector.broadcast %cst_176 : f32 to vector<8x32xf32>
    %676 = arith.addf %674, %675 : vector<8x32xf32>
    %677 = arith.mulf %668, %660 : vector<8x32xf32>
    %678 = arith.addf %657, %677 : vector<8x32xf32>
    %679 = math.tanh %678 : vector<8x32xf32>
    %680 = arith.subf %615, %679 : vector<8x32xf32>
    %681 = arith.mulf %676, %680 : vector<8x32xf32>
    %682 = arith.addf %679, %681 : vector<8x32xf32>
    %c10_i32 = arith.constant 10 : i32
    %c8_i32_177 = arith.constant 8 : i32
    %683 = arith.muli %c10_i32, %c8_i32_177 : i32
    %684 = tpu.assume_multiple %683, 8 : i32
    %685 = arith.index_cast %684 : i32 to index
    %c0_178 = arith.constant 0 : index
    %686 = vector.load %arg19[%685, %c0_178] : memref<128x96xf32, #tpu.memory_space<vmem>>, vector<8x96xf32>
    %cst_179 = arith.constant dense<0.000000e+00> : vector<8x96xf32>
    %687 = tpu.matmul %650, %7, %cst_179 {dimension_numbers = #tpu.dot_dimension_numbers<[1], [0], [0], [1], [0, 0, 1, 1], [], []>} : vector<8x32xf32>, vector<32x96xf32>, vector<8x96xf32> -> vector<8x96xf32>
    %688 = vector.broadcast %8 : vector<1x96xf32> to vector<8x96xf32>
    %689 = arith.addf %687, %688 : vector<8x96xf32>
    %690 = vector.extract_strided_slice %686 {offsets = [0, 0], sizes = [8, 32], strides = [1, 1]} : vector<8x96xf32> to vector<8x32xf32>
    %691 = vector.extract_strided_slice %686 {offsets = [0, 32], sizes = [8, 32], strides = [1, 1]} : vector<8x96xf32> to vector<8x32xf32>
    %692 = vector.extract_strided_slice %686 {offsets = [0, 64], sizes = [8, 32], strides = [1, 1]} : vector<8x96xf32> to vector<8x32xf32>
    %693 = vector.extract_strided_slice %689 {offsets = [0, 0], sizes = [8, 32], strides = [1, 1]} : vector<8x96xf32> to vector<8x32xf32>
    %694 = vector.extract_strided_slice %689 {offsets = [0, 32], sizes = [8, 32], strides = [1, 1]} : vector<8x96xf32> to vector<8x32xf32>
    %695 = vector.extract_strided_slice %689 {offsets = [0, 64], sizes = [8, 32], strides = [1, 1]} : vector<8x96xf32> to vector<8x32xf32>
    %696 = arith.addf %690, %693 : vector<8x32xf32>
    %cst_180 = arith.constant 5.000000e-01 : f32
    %697 = vector.broadcast %cst_180 : f32 to vector<8x32xf32>
    %698 = arith.mulf %697, %696 : vector<8x32xf32>
    %699 = math.tanh %698 : vector<8x32xf32>
    %cst_181 = arith.constant 5.000000e-01 : f32
    %700 = vector.broadcast %cst_181 : f32 to vector<8x32xf32>
    %701 = arith.mulf %700, %699 : vector<8x32xf32>
    %cst_182 = arith.constant 5.000000e-01 : f32
    %702 = vector.broadcast %cst_182 : f32 to vector<8x32xf32>
    %703 = arith.addf %701, %702 : vector<8x32xf32>
    %704 = arith.addf %691, %694 : vector<8x32xf32>
    %cst_183 = arith.constant 5.000000e-01 : f32
    %705 = vector.broadcast %cst_183 : f32 to vector<8x32xf32>
    %706 = arith.mulf %705, %704 : vector<8x32xf32>
    %707 = math.tanh %706 : vector<8x32xf32>
    %cst_184 = arith.constant 5.000000e-01 : f32
    %708 = vector.broadcast %cst_184 : f32 to vector<8x32xf32>
    %709 = arith.mulf %708, %707 : vector<8x32xf32>
    %cst_185 = arith.constant 5.000000e-01 : f32
    %710 = vector.broadcast %cst_185 : f32 to vector<8x32xf32>
    %711 = arith.addf %709, %710 : vector<8x32xf32>
    %712 = arith.mulf %703, %695 : vector<8x32xf32>
    %713 = arith.addf %692, %712 : vector<8x32xf32>
    %714 = math.tanh %713 : vector<8x32xf32>
    %715 = arith.subf %650, %714 : vector<8x32xf32>
    %716 = arith.mulf %711, %715 : vector<8x32xf32>
    %717 = arith.addf %714, %716 : vector<8x32xf32>
    %718 = tpu.concatenate %717, %682 in 1 : vector<8x32xf32>, vector<8x32xf32> -> vector<8x64xf32>
    %cst_186 = arith.constant dense<0.000000e+00> : vector<8x192xf32>
    %719 = tpu.matmul %718, %9, %cst_186 {dimension_numbers = #tpu.dot_dimension_numbers<[1], [0], [0], [1], [0, 0, 1, 1], [], []>} : vector<8x64xf32>, vector<64x192xf32>, vector<8x192xf32> -> vector<8x192xf32>
    %720 = vector.broadcast %10 : vector<1x192xf32> to vector<8x192xf32>
    %721 = arith.addf %719, %720 : vector<8x192xf32>
    %722 = vector.extract_strided_slice %721 {offsets = [0, 0], sizes = [8, 32], strides = [1, 1]} : vector<8x192xf32> to vector<8x32xf32>
    %723 = vector.extract_strided_slice %721 {offsets = [0, 32], sizes = [8, 32], strides = [1, 1]} : vector<8x192xf32> to vector<8x32xf32>
    %724 = vector.extract_strided_slice %721 {offsets = [0, 64], sizes = [8, 32], strides = [1, 1]} : vector<8x192xf32> to vector<8x32xf32>
    %725 = vector.extract_strided_slice %721 {offsets = [0, 96], sizes = [8, 32], strides = [1, 1]} : vector<8x192xf32> to vector<8x32xf32>
    %726 = vector.extract_strided_slice %721 {offsets = [0, 128], sizes = [8, 32], strides = [1, 1]} : vector<8x192xf32> to vector<8x32xf32>
    %727 = vector.extract_strided_slice %721 {offsets = [0, 160], sizes = [8, 32], strides = [1, 1]} : vector<8x192xf32> to vector<8x32xf32>
    %728 = arith.addf %722, %725 : vector<8x32xf32>
    %cst_187 = arith.constant 5.000000e-01 : f32
    %729 = vector.broadcast %cst_187 : f32 to vector<8x32xf32>
    %730 = arith.mulf %729, %728 : vector<8x32xf32>
    %731 = math.tanh %730 : vector<8x32xf32>
    %cst_188 = arith.constant 5.000000e-01 : f32
    %732 = vector.broadcast %cst_188 : f32 to vector<8x32xf32>
    %733 = arith.mulf %732, %731 : vector<8x32xf32>
    %cst_189 = arith.constant 5.000000e-01 : f32
    %734 = vector.broadcast %cst_189 : f32 to vector<8x32xf32>
    %735 = arith.addf %733, %734 : vector<8x32xf32>
    %736 = arith.addf %723, %726 : vector<8x32xf32>
    %cst_190 = arith.constant 5.000000e-01 : f32
    %737 = vector.broadcast %cst_190 : f32 to vector<8x32xf32>
    %738 = arith.mulf %737, %736 : vector<8x32xf32>
    %739 = math.tanh %738 : vector<8x32xf32>
    %cst_191 = arith.constant 5.000000e-01 : f32
    %740 = vector.broadcast %cst_191 : f32 to vector<8x32xf32>
    %741 = arith.mulf %740, %739 : vector<8x32xf32>
    %cst_192 = arith.constant 5.000000e-01 : f32
    %742 = vector.broadcast %cst_192 : f32 to vector<8x32xf32>
    %743 = arith.addf %741, %742 : vector<8x32xf32>
    %744 = arith.mulf %735, %727 : vector<8x32xf32>
    %745 = arith.addf %724, %744 : vector<8x32xf32>
    %746 = math.tanh %745 : vector<8x32xf32>
    %747 = arith.subf %682, %746 : vector<8x32xf32>
    %748 = arith.mulf %743, %747 : vector<8x32xf32>
    %749 = arith.addf %746, %748 : vector<8x32xf32>
    %c11_i32 = arith.constant 11 : i32
    %c8_i32_193 = arith.constant 8 : i32
    %750 = arith.muli %c11_i32, %c8_i32_193 : i32
    %751 = tpu.assume_multiple %750, 8 : i32
    %752 = arith.index_cast %751 : i32 to index
    %c0_194 = arith.constant 0 : index
    %753 = vector.load %arg19[%752, %c0_194] : memref<128x96xf32, #tpu.memory_space<vmem>>, vector<8x96xf32>
    %cst_195 = arith.constant dense<0.000000e+00> : vector<8x96xf32>
    %754 = tpu.matmul %717, %7, %cst_195 {dimension_numbers = #tpu.dot_dimension_numbers<[1], [0], [0], [1], [0, 0, 1, 1], [], []>} : vector<8x32xf32>, vector<32x96xf32>, vector<8x96xf32> -> vector<8x96xf32>
    %755 = vector.broadcast %8 : vector<1x96xf32> to vector<8x96xf32>
    %756 = arith.addf %754, %755 : vector<8x96xf32>
    %757 = vector.extract_strided_slice %753 {offsets = [0, 0], sizes = [8, 32], strides = [1, 1]} : vector<8x96xf32> to vector<8x32xf32>
    %758 = vector.extract_strided_slice %753 {offsets = [0, 32], sizes = [8, 32], strides = [1, 1]} : vector<8x96xf32> to vector<8x32xf32>
    %759 = vector.extract_strided_slice %753 {offsets = [0, 64], sizes = [8, 32], strides = [1, 1]} : vector<8x96xf32> to vector<8x32xf32>
    %760 = vector.extract_strided_slice %756 {offsets = [0, 0], sizes = [8, 32], strides = [1, 1]} : vector<8x96xf32> to vector<8x32xf32>
    %761 = vector.extract_strided_slice %756 {offsets = [0, 32], sizes = [8, 32], strides = [1, 1]} : vector<8x96xf32> to vector<8x32xf32>
    %762 = vector.extract_strided_slice %756 {offsets = [0, 64], sizes = [8, 32], strides = [1, 1]} : vector<8x96xf32> to vector<8x32xf32>
    %763 = arith.addf %757, %760 : vector<8x32xf32>
    %cst_196 = arith.constant 5.000000e-01 : f32
    %764 = vector.broadcast %cst_196 : f32 to vector<8x32xf32>
    %765 = arith.mulf %764, %763 : vector<8x32xf32>
    %766 = math.tanh %765 : vector<8x32xf32>
    %cst_197 = arith.constant 5.000000e-01 : f32
    %767 = vector.broadcast %cst_197 : f32 to vector<8x32xf32>
    %768 = arith.mulf %767, %766 : vector<8x32xf32>
    %cst_198 = arith.constant 5.000000e-01 : f32
    %769 = vector.broadcast %cst_198 : f32 to vector<8x32xf32>
    %770 = arith.addf %768, %769 : vector<8x32xf32>
    %771 = arith.addf %758, %761 : vector<8x32xf32>
    %cst_199 = arith.constant 5.000000e-01 : f32
    %772 = vector.broadcast %cst_199 : f32 to vector<8x32xf32>
    %773 = arith.mulf %772, %771 : vector<8x32xf32>
    %774 = math.tanh %773 : vector<8x32xf32>
    %cst_200 = arith.constant 5.000000e-01 : f32
    %775 = vector.broadcast %cst_200 : f32 to vector<8x32xf32>
    %776 = arith.mulf %775, %774 : vector<8x32xf32>
    %cst_201 = arith.constant 5.000000e-01 : f32
    %777 = vector.broadcast %cst_201 : f32 to vector<8x32xf32>
    %778 = arith.addf %776, %777 : vector<8x32xf32>
    %779 = arith.mulf %770, %762 : vector<8x32xf32>
    %780 = arith.addf %759, %779 : vector<8x32xf32>
    %781 = math.tanh %780 : vector<8x32xf32>
    %782 = arith.subf %717, %781 : vector<8x32xf32>
    %783 = arith.mulf %778, %782 : vector<8x32xf32>
    %784 = arith.addf %781, %783 : vector<8x32xf32>
    %785 = tpu.concatenate %784, %749 in 1 : vector<8x32xf32>, vector<8x32xf32> -> vector<8x64xf32>
    %cst_202 = arith.constant dense<0.000000e+00> : vector<8x192xf32>
    %786 = tpu.matmul %785, %9, %cst_202 {dimension_numbers = #tpu.dot_dimension_numbers<[1], [0], [0], [1], [0, 0, 1, 1], [], []>} : vector<8x64xf32>, vector<64x192xf32>, vector<8x192xf32> -> vector<8x192xf32>
    %787 = vector.broadcast %10 : vector<1x192xf32> to vector<8x192xf32>
    %788 = arith.addf %786, %787 : vector<8x192xf32>
    %789 = vector.extract_strided_slice %788 {offsets = [0, 0], sizes = [8, 32], strides = [1, 1]} : vector<8x192xf32> to vector<8x32xf32>
    %790 = vector.extract_strided_slice %788 {offsets = [0, 32], sizes = [8, 32], strides = [1, 1]} : vector<8x192xf32> to vector<8x32xf32>
    %791 = vector.extract_strided_slice %788 {offsets = [0, 64], sizes = [8, 32], strides = [1, 1]} : vector<8x192xf32> to vector<8x32xf32>
    %792 = vector.extract_strided_slice %788 {offsets = [0, 96], sizes = [8, 32], strides = [1, 1]} : vector<8x192xf32> to vector<8x32xf32>
    %793 = vector.extract_strided_slice %788 {offsets = [0, 128], sizes = [8, 32], strides = [1, 1]} : vector<8x192xf32> to vector<8x32xf32>
    %794 = vector.extract_strided_slice %788 {offsets = [0, 160], sizes = [8, 32], strides = [1, 1]} : vector<8x192xf32> to vector<8x32xf32>
    %795 = arith.addf %789, %792 : vector<8x32xf32>
    %cst_203 = arith.constant 5.000000e-01 : f32
    %796 = vector.broadcast %cst_203 : f32 to vector<8x32xf32>
    %797 = arith.mulf %796, %795 : vector<8x32xf32>
    %798 = math.tanh %797 : vector<8x32xf32>
    %cst_204 = arith.constant 5.000000e-01 : f32
    %799 = vector.broadcast %cst_204 : f32 to vector<8x32xf32>
    %800 = arith.mulf %799, %798 : vector<8x32xf32>
    %cst_205 = arith.constant 5.000000e-01 : f32
    %801 = vector.broadcast %cst_205 : f32 to vector<8x32xf32>
    %802 = arith.addf %800, %801 : vector<8x32xf32>
    %803 = arith.addf %790, %793 : vector<8x32xf32>
    %cst_206 = arith.constant 5.000000e-01 : f32
    %804 = vector.broadcast %cst_206 : f32 to vector<8x32xf32>
    %805 = arith.mulf %804, %803 : vector<8x32xf32>
    %806 = math.tanh %805 : vector<8x32xf32>
    %cst_207 = arith.constant 5.000000e-01 : f32
    %807 = vector.broadcast %cst_207 : f32 to vector<8x32xf32>
    %808 = arith.mulf %807, %806 : vector<8x32xf32>
    %cst_208 = arith.constant 5.000000e-01 : f32
    %809 = vector.broadcast %cst_208 : f32 to vector<8x32xf32>
    %810 = arith.addf %808, %809 : vector<8x32xf32>
    %811 = arith.mulf %802, %794 : vector<8x32xf32>
    %812 = arith.addf %791, %811 : vector<8x32xf32>
    %813 = math.tanh %812 : vector<8x32xf32>
    %814 = arith.subf %749, %813 : vector<8x32xf32>
    %815 = arith.mulf %810, %814 : vector<8x32xf32>
    %816 = arith.addf %813, %815 : vector<8x32xf32>
    %c12_i32 = arith.constant 12 : i32
    %c8_i32_209 = arith.constant 8 : i32
    %817 = arith.muli %c12_i32, %c8_i32_209 : i32
    %818 = tpu.assume_multiple %817, 8 : i32
    %819 = arith.index_cast %818 : i32 to index
    %c0_210 = arith.constant 0 : index
    %820 = vector.load %arg19[%819, %c0_210] : memref<128x96xf32, #tpu.memory_space<vmem>>, vector<8x96xf32>
    %cst_211 = arith.constant dense<0.000000e+00> : vector<8x96xf32>
    %821 = tpu.matmul %784, %7, %cst_211 {dimension_numbers = #tpu.dot_dimension_numbers<[1], [0], [0], [1], [0, 0, 1, 1], [], []>} : vector<8x32xf32>, vector<32x96xf32>, vector<8x96xf32> -> vector<8x96xf32>
    %822 = vector.broadcast %8 : vector<1x96xf32> to vector<8x96xf32>
    %823 = arith.addf %821, %822 : vector<8x96xf32>
    %824 = vector.extract_strided_slice %820 {offsets = [0, 0], sizes = [8, 32], strides = [1, 1]} : vector<8x96xf32> to vector<8x32xf32>
    %825 = vector.extract_strided_slice %820 {offsets = [0, 32], sizes = [8, 32], strides = [1, 1]} : vector<8x96xf32> to vector<8x32xf32>
    %826 = vector.extract_strided_slice %820 {offsets = [0, 64], sizes = [8, 32], strides = [1, 1]} : vector<8x96xf32> to vector<8x32xf32>
    %827 = vector.extract_strided_slice %823 {offsets = [0, 0], sizes = [8, 32], strides = [1, 1]} : vector<8x96xf32> to vector<8x32xf32>
    %828 = vector.extract_strided_slice %823 {offsets = [0, 32], sizes = [8, 32], strides = [1, 1]} : vector<8x96xf32> to vector<8x32xf32>
    %829 = vector.extract_strided_slice %823 {offsets = [0, 64], sizes = [8, 32], strides = [1, 1]} : vector<8x96xf32> to vector<8x32xf32>
    %830 = arith.addf %824, %827 : vector<8x32xf32>
    %cst_212 = arith.constant 5.000000e-01 : f32
    %831 = vector.broadcast %cst_212 : f32 to vector<8x32xf32>
    %832 = arith.mulf %831, %830 : vector<8x32xf32>
    %833 = math.tanh %832 : vector<8x32xf32>
    %cst_213 = arith.constant 5.000000e-01 : f32
    %834 = vector.broadcast %cst_213 : f32 to vector<8x32xf32>
    %835 = arith.mulf %834, %833 : vector<8x32xf32>
    %cst_214 = arith.constant 5.000000e-01 : f32
    %836 = vector.broadcast %cst_214 : f32 to vector<8x32xf32>
    %837 = arith.addf %835, %836 : vector<8x32xf32>
    %838 = arith.addf %825, %828 : vector<8x32xf32>
    %cst_215 = arith.constant 5.000000e-01 : f32
    %839 = vector.broadcast %cst_215 : f32 to vector<8x32xf32>
    %840 = arith.mulf %839, %838 : vector<8x32xf32>
    %841 = math.tanh %840 : vector<8x32xf32>
    %cst_216 = arith.constant 5.000000e-01 : f32
    %842 = vector.broadcast %cst_216 : f32 to vector<8x32xf32>
    %843 = arith.mulf %842, %841 : vector<8x32xf32>
    %cst_217 = arith.constant 5.000000e-01 : f32
    %844 = vector.broadcast %cst_217 : f32 to vector<8x32xf32>
    %845 = arith.addf %843, %844 : vector<8x32xf32>
    %846 = arith.mulf %837, %829 : vector<8x32xf32>
    %847 = arith.addf %826, %846 : vector<8x32xf32>
    %848 = math.tanh %847 : vector<8x32xf32>
    %849 = arith.subf %784, %848 : vector<8x32xf32>
    %850 = arith.mulf %845, %849 : vector<8x32xf32>
    %851 = arith.addf %848, %850 : vector<8x32xf32>
    %852 = tpu.concatenate %851, %816 in 1 : vector<8x32xf32>, vector<8x32xf32> -> vector<8x64xf32>
    %cst_218 = arith.constant dense<0.000000e+00> : vector<8x192xf32>
    %853 = tpu.matmul %852, %9, %cst_218 {dimension_numbers = #tpu.dot_dimension_numbers<[1], [0], [0], [1], [0, 0, 1, 1], [], []>} : vector<8x64xf32>, vector<64x192xf32>, vector<8x192xf32> -> vector<8x192xf32>
    %854 = vector.broadcast %10 : vector<1x192xf32> to vector<8x192xf32>
    %855 = arith.addf %853, %854 : vector<8x192xf32>
    %856 = vector.extract_strided_slice %855 {offsets = [0, 0], sizes = [8, 32], strides = [1, 1]} : vector<8x192xf32> to vector<8x32xf32>
    %857 = vector.extract_strided_slice %855 {offsets = [0, 32], sizes = [8, 32], strides = [1, 1]} : vector<8x192xf32> to vector<8x32xf32>
    %858 = vector.extract_strided_slice %855 {offsets = [0, 64], sizes = [8, 32], strides = [1, 1]} : vector<8x192xf32> to vector<8x32xf32>
    %859 = vector.extract_strided_slice %855 {offsets = [0, 96], sizes = [8, 32], strides = [1, 1]} : vector<8x192xf32> to vector<8x32xf32>
    %860 = vector.extract_strided_slice %855 {offsets = [0, 128], sizes = [8, 32], strides = [1, 1]} : vector<8x192xf32> to vector<8x32xf32>
    %861 = vector.extract_strided_slice %855 {offsets = [0, 160], sizes = [8, 32], strides = [1, 1]} : vector<8x192xf32> to vector<8x32xf32>
    %862 = arith.addf %856, %859 : vector<8x32xf32>
    %cst_219 = arith.constant 5.000000e-01 : f32
    %863 = vector.broadcast %cst_219 : f32 to vector<8x32xf32>
    %864 = arith.mulf %863, %862 : vector<8x32xf32>
    %865 = math.tanh %864 : vector<8x32xf32>
    %cst_220 = arith.constant 5.000000e-01 : f32
    %866 = vector.broadcast %cst_220 : f32 to vector<8x32xf32>
    %867 = arith.mulf %866, %865 : vector<8x32xf32>
    %cst_221 = arith.constant 5.000000e-01 : f32
    %868 = vector.broadcast %cst_221 : f32 to vector<8x32xf32>
    %869 = arith.addf %867, %868 : vector<8x32xf32>
    %870 = arith.addf %857, %860 : vector<8x32xf32>
    %cst_222 = arith.constant 5.000000e-01 : f32
    %871 = vector.broadcast %cst_222 : f32 to vector<8x32xf32>
    %872 = arith.mulf %871, %870 : vector<8x32xf32>
    %873 = math.tanh %872 : vector<8x32xf32>
    %cst_223 = arith.constant 5.000000e-01 : f32
    %874 = vector.broadcast %cst_223 : f32 to vector<8x32xf32>
    %875 = arith.mulf %874, %873 : vector<8x32xf32>
    %cst_224 = arith.constant 5.000000e-01 : f32
    %876 = vector.broadcast %cst_224 : f32 to vector<8x32xf32>
    %877 = arith.addf %875, %876 : vector<8x32xf32>
    %878 = arith.mulf %869, %861 : vector<8x32xf32>
    %879 = arith.addf %858, %878 : vector<8x32xf32>
    %880 = math.tanh %879 : vector<8x32xf32>
    %881 = arith.subf %816, %880 : vector<8x32xf32>
    %882 = arith.mulf %877, %881 : vector<8x32xf32>
    %883 = arith.addf %880, %882 : vector<8x32xf32>
    %c13_i32 = arith.constant 13 : i32
    %c8_i32_225 = arith.constant 8 : i32
    %884 = arith.muli %c13_i32, %c8_i32_225 : i32
    %885 = tpu.assume_multiple %884, 8 : i32
    %886 = arith.index_cast %885 : i32 to index
    %c0_226 = arith.constant 0 : index
    %887 = vector.load %arg19[%886, %c0_226] : memref<128x96xf32, #tpu.memory_space<vmem>>, vector<8x96xf32>
    %cst_227 = arith.constant dense<0.000000e+00> : vector<8x96xf32>
    %888 = tpu.matmul %851, %7, %cst_227 {dimension_numbers = #tpu.dot_dimension_numbers<[1], [0], [0], [1], [0, 0, 1, 1], [], []>} : vector<8x32xf32>, vector<32x96xf32>, vector<8x96xf32> -> vector<8x96xf32>
    %889 = vector.broadcast %8 : vector<1x96xf32> to vector<8x96xf32>
    %890 = arith.addf %888, %889 : vector<8x96xf32>
    %891 = vector.extract_strided_slice %887 {offsets = [0, 0], sizes = [8, 32], strides = [1, 1]} : vector<8x96xf32> to vector<8x32xf32>
    %892 = vector.extract_strided_slice %887 {offsets = [0, 32], sizes = [8, 32], strides = [1, 1]} : vector<8x96xf32> to vector<8x32xf32>
    %893 = vector.extract_strided_slice %887 {offsets = [0, 64], sizes = [8, 32], strides = [1, 1]} : vector<8x96xf32> to vector<8x32xf32>
    %894 = vector.extract_strided_slice %890 {offsets = [0, 0], sizes = [8, 32], strides = [1, 1]} : vector<8x96xf32> to vector<8x32xf32>
    %895 = vector.extract_strided_slice %890 {offsets = [0, 32], sizes = [8, 32], strides = [1, 1]} : vector<8x96xf32> to vector<8x32xf32>
    %896 = vector.extract_strided_slice %890 {offsets = [0, 64], sizes = [8, 32], strides = [1, 1]} : vector<8x96xf32> to vector<8x32xf32>
    %897 = arith.addf %891, %894 : vector<8x32xf32>
    %cst_228 = arith.constant 5.000000e-01 : f32
    %898 = vector.broadcast %cst_228 : f32 to vector<8x32xf32>
    %899 = arith.mulf %898, %897 : vector<8x32xf32>
    %900 = math.tanh %899 : vector<8x32xf32>
    %cst_229 = arith.constant 5.000000e-01 : f32
    %901 = vector.broadcast %cst_229 : f32 to vector<8x32xf32>
    %902 = arith.mulf %901, %900 : vector<8x32xf32>
    %cst_230 = arith.constant 5.000000e-01 : f32
    %903 = vector.broadcast %cst_230 : f32 to vector<8x32xf32>
    %904 = arith.addf %902, %903 : vector<8x32xf32>
    %905 = arith.addf %892, %895 : vector<8x32xf32>
    %cst_231 = arith.constant 5.000000e-01 : f32
    %906 = vector.broadcast %cst_231 : f32 to vector<8x32xf32>
    %907 = arith.mulf %906, %905 : vector<8x32xf32>
    %908 = math.tanh %907 : vector<8x32xf32>
    %cst_232 = arith.constant 5.000000e-01 : f32
    %909 = vector.broadcast %cst_232 : f32 to vector<8x32xf32>
    %910 = arith.mulf %909, %908 : vector<8x32xf32>
    %cst_233 = arith.constant 5.000000e-01 : f32
    %911 = vector.broadcast %cst_233 : f32 to vector<8x32xf32>
    %912 = arith.addf %910, %911 : vector<8x32xf32>
    %913 = arith.mulf %904, %896 : vector<8x32xf32>
    %914 = arith.addf %893, %913 : vector<8x32xf32>
    %915 = math.tanh %914 : vector<8x32xf32>
    %916 = arith.subf %851, %915 : vector<8x32xf32>
    %917 = arith.mulf %912, %916 : vector<8x32xf32>
    %918 = arith.addf %915, %917 : vector<8x32xf32>
    %919 = tpu.concatenate %918, %883 in 1 : vector<8x32xf32>, vector<8x32xf32> -> vector<8x64xf32>
    %cst_234 = arith.constant dense<0.000000e+00> : vector<8x192xf32>
    %920 = tpu.matmul %919, %9, %cst_234 {dimension_numbers = #tpu.dot_dimension_numbers<[1], [0], [0], [1], [0, 0, 1, 1], [], []>} : vector<8x64xf32>, vector<64x192xf32>, vector<8x192xf32> -> vector<8x192xf32>
    %921 = vector.broadcast %10 : vector<1x192xf32> to vector<8x192xf32>
    %922 = arith.addf %920, %921 : vector<8x192xf32>
    %923 = vector.extract_strided_slice %922 {offsets = [0, 0], sizes = [8, 32], strides = [1, 1]} : vector<8x192xf32> to vector<8x32xf32>
    %924 = vector.extract_strided_slice %922 {offsets = [0, 32], sizes = [8, 32], strides = [1, 1]} : vector<8x192xf32> to vector<8x32xf32>
    %925 = vector.extract_strided_slice %922 {offsets = [0, 64], sizes = [8, 32], strides = [1, 1]} : vector<8x192xf32> to vector<8x32xf32>
    %926 = vector.extract_strided_slice %922 {offsets = [0, 96], sizes = [8, 32], strides = [1, 1]} : vector<8x192xf32> to vector<8x32xf32>
    %927 = vector.extract_strided_slice %922 {offsets = [0, 128], sizes = [8, 32], strides = [1, 1]} : vector<8x192xf32> to vector<8x32xf32>
    %928 = vector.extract_strided_slice %922 {offsets = [0, 160], sizes = [8, 32], strides = [1, 1]} : vector<8x192xf32> to vector<8x32xf32>
    %929 = arith.addf %923, %926 : vector<8x32xf32>
    %cst_235 = arith.constant 5.000000e-01 : f32
    %930 = vector.broadcast %cst_235 : f32 to vector<8x32xf32>
    %931 = arith.mulf %930, %929 : vector<8x32xf32>
    %932 = math.tanh %931 : vector<8x32xf32>
    %cst_236 = arith.constant 5.000000e-01 : f32
    %933 = vector.broadcast %cst_236 : f32 to vector<8x32xf32>
    %934 = arith.mulf %933, %932 : vector<8x32xf32>
    %cst_237 = arith.constant 5.000000e-01 : f32
    %935 = vector.broadcast %cst_237 : f32 to vector<8x32xf32>
    %936 = arith.addf %934, %935 : vector<8x32xf32>
    %937 = arith.addf %924, %927 : vector<8x32xf32>
    %cst_238 = arith.constant 5.000000e-01 : f32
    %938 = vector.broadcast %cst_238 : f32 to vector<8x32xf32>
    %939 = arith.mulf %938, %937 : vector<8x32xf32>
    %940 = math.tanh %939 : vector<8x32xf32>
    %cst_239 = arith.constant 5.000000e-01 : f32
    %941 = vector.broadcast %cst_239 : f32 to vector<8x32xf32>
    %942 = arith.mulf %941, %940 : vector<8x32xf32>
    %cst_240 = arith.constant 5.000000e-01 : f32
    %943 = vector.broadcast %cst_240 : f32 to vector<8x32xf32>
    %944 = arith.addf %942, %943 : vector<8x32xf32>
    %945 = arith.mulf %936, %928 : vector<8x32xf32>
    %946 = arith.addf %925, %945 : vector<8x32xf32>
    %947 = math.tanh %946 : vector<8x32xf32>
    %948 = arith.subf %883, %947 : vector<8x32xf32>
    %949 = arith.mulf %944, %948 : vector<8x32xf32>
    %950 = arith.addf %947, %949 : vector<8x32xf32>
    %c14_i32 = arith.constant 14 : i32
    %c8_i32_241 = arith.constant 8 : i32
    %951 = arith.muli %c14_i32, %c8_i32_241 : i32
    %952 = tpu.assume_multiple %951, 8 : i32
    %953 = arith.index_cast %952 : i32 to index
    %c0_242 = arith.constant 0 : index
    %954 = vector.load %arg19[%953, %c0_242] : memref<128x96xf32, #tpu.memory_space<vmem>>, vector<8x96xf32>
    %cst_243 = arith.constant dense<0.000000e+00> : vector<8x96xf32>
    %955 = tpu.matmul %918, %7, %cst_243 {dimension_numbers = #tpu.dot_dimension_numbers<[1], [0], [0], [1], [0, 0, 1, 1], [], []>} : vector<8x32xf32>, vector<32x96xf32>, vector<8x96xf32> -> vector<8x96xf32>
    %956 = vector.broadcast %8 : vector<1x96xf32> to vector<8x96xf32>
    %957 = arith.addf %955, %956 : vector<8x96xf32>
    %958 = vector.extract_strided_slice %954 {offsets = [0, 0], sizes = [8, 32], strides = [1, 1]} : vector<8x96xf32> to vector<8x32xf32>
    %959 = vector.extract_strided_slice %954 {offsets = [0, 32], sizes = [8, 32], strides = [1, 1]} : vector<8x96xf32> to vector<8x32xf32>
    %960 = vector.extract_strided_slice %954 {offsets = [0, 64], sizes = [8, 32], strides = [1, 1]} : vector<8x96xf32> to vector<8x32xf32>
    %961 = vector.extract_strided_slice %957 {offsets = [0, 0], sizes = [8, 32], strides = [1, 1]} : vector<8x96xf32> to vector<8x32xf32>
    %962 = vector.extract_strided_slice %957 {offsets = [0, 32], sizes = [8, 32], strides = [1, 1]} : vector<8x96xf32> to vector<8x32xf32>
    %963 = vector.extract_strided_slice %957 {offsets = [0, 64], sizes = [8, 32], strides = [1, 1]} : vector<8x96xf32> to vector<8x32xf32>
    %964 = arith.addf %958, %961 : vector<8x32xf32>
    %cst_244 = arith.constant 5.000000e-01 : f32
    %965 = vector.broadcast %cst_244 : f32 to vector<8x32xf32>
    %966 = arith.mulf %965, %964 : vector<8x32xf32>
    %967 = math.tanh %966 : vector<8x32xf32>
    %cst_245 = arith.constant 5.000000e-01 : f32
    %968 = vector.broadcast %cst_245 : f32 to vector<8x32xf32>
    %969 = arith.mulf %968, %967 : vector<8x32xf32>
    %cst_246 = arith.constant 5.000000e-01 : f32
    %970 = vector.broadcast %cst_246 : f32 to vector<8x32xf32>
    %971 = arith.addf %969, %970 : vector<8x32xf32>
    %972 = arith.addf %959, %962 : vector<8x32xf32>
    %cst_247 = arith.constant 5.000000e-01 : f32
    %973 = vector.broadcast %cst_247 : f32 to vector<8x32xf32>
    %974 = arith.mulf %973, %972 : vector<8x32xf32>
    %975 = math.tanh %974 : vector<8x32xf32>
    %cst_248 = arith.constant 5.000000e-01 : f32
    %976 = vector.broadcast %cst_248 : f32 to vector<8x32xf32>
    %977 = arith.mulf %976, %975 : vector<8x32xf32>
    %cst_249 = arith.constant 5.000000e-01 : f32
    %978 = vector.broadcast %cst_249 : f32 to vector<8x32xf32>
    %979 = arith.addf %977, %978 : vector<8x32xf32>
    %980 = arith.mulf %971, %963 : vector<8x32xf32>
    %981 = arith.addf %960, %980 : vector<8x32xf32>
    %982 = math.tanh %981 : vector<8x32xf32>
    %983 = arith.subf %918, %982 : vector<8x32xf32>
    %984 = arith.mulf %979, %983 : vector<8x32xf32>
    %985 = arith.addf %982, %984 : vector<8x32xf32>
    %986 = tpu.concatenate %985, %950 in 1 : vector<8x32xf32>, vector<8x32xf32> -> vector<8x64xf32>
    %cst_250 = arith.constant dense<0.000000e+00> : vector<8x192xf32>
    %987 = tpu.matmul %986, %9, %cst_250 {dimension_numbers = #tpu.dot_dimension_numbers<[1], [0], [0], [1], [0, 0, 1, 1], [], []>} : vector<8x64xf32>, vector<64x192xf32>, vector<8x192xf32> -> vector<8x192xf32>
    %988 = vector.broadcast %10 : vector<1x192xf32> to vector<8x192xf32>
    %989 = arith.addf %987, %988 : vector<8x192xf32>
    %990 = vector.extract_strided_slice %989 {offsets = [0, 0], sizes = [8, 32], strides = [1, 1]} : vector<8x192xf32> to vector<8x32xf32>
    %991 = vector.extract_strided_slice %989 {offsets = [0, 32], sizes = [8, 32], strides = [1, 1]} : vector<8x192xf32> to vector<8x32xf32>
    %992 = vector.extract_strided_slice %989 {offsets = [0, 64], sizes = [8, 32], strides = [1, 1]} : vector<8x192xf32> to vector<8x32xf32>
    %993 = vector.extract_strided_slice %989 {offsets = [0, 96], sizes = [8, 32], strides = [1, 1]} : vector<8x192xf32> to vector<8x32xf32>
    %994 = vector.extract_strided_slice %989 {offsets = [0, 128], sizes = [8, 32], strides = [1, 1]} : vector<8x192xf32> to vector<8x32xf32>
    %995 = vector.extract_strided_slice %989 {offsets = [0, 160], sizes = [8, 32], strides = [1, 1]} : vector<8x192xf32> to vector<8x32xf32>
    %996 = arith.addf %990, %993 : vector<8x32xf32>
    %cst_251 = arith.constant 5.000000e-01 : f32
    %997 = vector.broadcast %cst_251 : f32 to vector<8x32xf32>
    %998 = arith.mulf %997, %996 : vector<8x32xf32>
    %999 = math.tanh %998 : vector<8x32xf32>
    %cst_252 = arith.constant 5.000000e-01 : f32
    %1000 = vector.broadcast %cst_252 : f32 to vector<8x32xf32>
    %1001 = arith.mulf %1000, %999 : vector<8x32xf32>
    %cst_253 = arith.constant 5.000000e-01 : f32
    %1002 = vector.broadcast %cst_253 : f32 to vector<8x32xf32>
    %1003 = arith.addf %1001, %1002 : vector<8x32xf32>
    %1004 = arith.addf %991, %994 : vector<8x32xf32>
    %cst_254 = arith.constant 5.000000e-01 : f32
    %1005 = vector.broadcast %cst_254 : f32 to vector<8x32xf32>
    %1006 = arith.mulf %1005, %1004 : vector<8x32xf32>
    %1007 = math.tanh %1006 : vector<8x32xf32>
    %cst_255 = arith.constant 5.000000e-01 : f32
    %1008 = vector.broadcast %cst_255 : f32 to vector<8x32xf32>
    %1009 = arith.mulf %1008, %1007 : vector<8x32xf32>
    %cst_256 = arith.constant 5.000000e-01 : f32
    %1010 = vector.broadcast %cst_256 : f32 to vector<8x32xf32>
    %1011 = arith.addf %1009, %1010 : vector<8x32xf32>
    %1012 = arith.mulf %1003, %995 : vector<8x32xf32>
    %1013 = arith.addf %992, %1012 : vector<8x32xf32>
    %1014 = math.tanh %1013 : vector<8x32xf32>
    %1015 = arith.subf %950, %1014 : vector<8x32xf32>
    %1016 = arith.mulf %1011, %1015 : vector<8x32xf32>
    %1017 = arith.addf %1014, %1016 : vector<8x32xf32>
    %c15_i32 = arith.constant 15 : i32
    %c8_i32_257 = arith.constant 8 : i32
    %1018 = arith.muli %c15_i32, %c8_i32_257 : i32
    %1019 = tpu.assume_multiple %1018, 8 : i32
    %1020 = arith.index_cast %1019 : i32 to index
    %c0_258 = arith.constant 0 : index
    %1021 = vector.load %arg19[%1020, %c0_258] : memref<128x96xf32, #tpu.memory_space<vmem>>, vector<8x96xf32>
    %cst_259 = arith.constant dense<0.000000e+00> : vector<8x96xf32>
    %1022 = tpu.matmul %985, %7, %cst_259 {dimension_numbers = #tpu.dot_dimension_numbers<[1], [0], [0], [1], [0, 0, 1, 1], [], []>} : vector<8x32xf32>, vector<32x96xf32>, vector<8x96xf32> -> vector<8x96xf32>
    %1023 = vector.broadcast %8 : vector<1x96xf32> to vector<8x96xf32>
    %1024 = arith.addf %1022, %1023 : vector<8x96xf32>
    %1025 = vector.extract_strided_slice %1021 {offsets = [0, 0], sizes = [8, 32], strides = [1, 1]} : vector<8x96xf32> to vector<8x32xf32>
    %1026 = vector.extract_strided_slice %1021 {offsets = [0, 32], sizes = [8, 32], strides = [1, 1]} : vector<8x96xf32> to vector<8x32xf32>
    %1027 = vector.extract_strided_slice %1021 {offsets = [0, 64], sizes = [8, 32], strides = [1, 1]} : vector<8x96xf32> to vector<8x32xf32>
    %1028 = vector.extract_strided_slice %1024 {offsets = [0, 0], sizes = [8, 32], strides = [1, 1]} : vector<8x96xf32> to vector<8x32xf32>
    %1029 = vector.extract_strided_slice %1024 {offsets = [0, 32], sizes = [8, 32], strides = [1, 1]} : vector<8x96xf32> to vector<8x32xf32>
    %1030 = vector.extract_strided_slice %1024 {offsets = [0, 64], sizes = [8, 32], strides = [1, 1]} : vector<8x96xf32> to vector<8x32xf32>
    %1031 = arith.addf %1025, %1028 : vector<8x32xf32>
    %cst_260 = arith.constant 5.000000e-01 : f32
    %1032 = vector.broadcast %cst_260 : f32 to vector<8x32xf32>
    %1033 = arith.mulf %1032, %1031 : vector<8x32xf32>
    %1034 = math.tanh %1033 : vector<8x32xf32>
    %cst_261 = arith.constant 5.000000e-01 : f32
    %1035 = vector.broadcast %cst_261 : f32 to vector<8x32xf32>
    %1036 = arith.mulf %1035, %1034 : vector<8x32xf32>
    %cst_262 = arith.constant 5.000000e-01 : f32
    %1037 = vector.broadcast %cst_262 : f32 to vector<8x32xf32>
    %1038 = arith.addf %1036, %1037 : vector<8x32xf32>
    %1039 = arith.addf %1026, %1029 : vector<8x32xf32>
    %cst_263 = arith.constant 5.000000e-01 : f32
    %1040 = vector.broadcast %cst_263 : f32 to vector<8x32xf32>
    %1041 = arith.mulf %1040, %1039 : vector<8x32xf32>
    %1042 = math.tanh %1041 : vector<8x32xf32>
    %cst_264 = arith.constant 5.000000e-01 : f32
    %1043 = vector.broadcast %cst_264 : f32 to vector<8x32xf32>
    %1044 = arith.mulf %1043, %1042 : vector<8x32xf32>
    %cst_265 = arith.constant 5.000000e-01 : f32
    %1045 = vector.broadcast %cst_265 : f32 to vector<8x32xf32>
    %1046 = arith.addf %1044, %1045 : vector<8x32xf32>
    %1047 = arith.mulf %1038, %1030 : vector<8x32xf32>
    %1048 = arith.addf %1027, %1047 : vector<8x32xf32>
    %1049 = math.tanh %1048 : vector<8x32xf32>
    %1050 = arith.subf %985, %1049 : vector<8x32xf32>
    %1051 = arith.mulf %1046, %1050 : vector<8x32xf32>
    %1052 = arith.addf %1049, %1051 : vector<8x32xf32>
    %1053 = tpu.concatenate %1052, %1017 in 1 : vector<8x32xf32>, vector<8x32xf32> -> vector<8x64xf32>
    %cst_266 = arith.constant dense<0.000000e+00> : vector<8x192xf32>
    %1054 = tpu.matmul %1053, %9, %cst_266 {dimension_numbers = #tpu.dot_dimension_numbers<[1], [0], [0], [1], [0, 0, 1, 1], [], []>} : vector<8x64xf32>, vector<64x192xf32>, vector<8x192xf32> -> vector<8x192xf32>
    %1055 = vector.broadcast %10 : vector<1x192xf32> to vector<8x192xf32>
    %1056 = arith.addf %1054, %1055 : vector<8x192xf32>
    %1057 = vector.extract_strided_slice %1056 {offsets = [0, 0], sizes = [8, 32], strides = [1, 1]} : vector<8x192xf32> to vector<8x32xf32>
    %1058 = vector.extract_strided_slice %1056 {offsets = [0, 32], sizes = [8, 32], strides = [1, 1]} : vector<8x192xf32> to vector<8x32xf32>
    %1059 = vector.extract_strided_slice %1056 {offsets = [0, 64], sizes = [8, 32], strides = [1, 1]} : vector<8x192xf32> to vector<8x32xf32>
    %1060 = vector.extract_strided_slice %1056 {offsets = [0, 96], sizes = [8, 32], strides = [1, 1]} : vector<8x192xf32> to vector<8x32xf32>
    %1061 = vector.extract_strided_slice %1056 {offsets = [0, 128], sizes = [8, 32], strides = [1, 1]} : vector<8x192xf32> to vector<8x32xf32>
    %1062 = vector.extract_strided_slice %1056 {offsets = [0, 160], sizes = [8, 32], strides = [1, 1]} : vector<8x192xf32> to vector<8x32xf32>
    %1063 = arith.addf %1057, %1060 : vector<8x32xf32>
    %cst_267 = arith.constant 5.000000e-01 : f32
    %1064 = vector.broadcast %cst_267 : f32 to vector<8x32xf32>
    %1065 = arith.mulf %1064, %1063 : vector<8x32xf32>
    %1066 = math.tanh %1065 : vector<8x32xf32>
    %cst_268 = arith.constant 5.000000e-01 : f32
    %1067 = vector.broadcast %cst_268 : f32 to vector<8x32xf32>
    %1068 = arith.mulf %1067, %1066 : vector<8x32xf32>
    %cst_269 = arith.constant 5.000000e-01 : f32
    %1069 = vector.broadcast %cst_269 : f32 to vector<8x32xf32>
    %1070 = arith.addf %1068, %1069 : vector<8x32xf32>
    %1071 = arith.addf %1058, %1061 : vector<8x32xf32>
    %cst_270 = arith.constant 5.000000e-01 : f32
    %1072 = vector.broadcast %cst_270 : f32 to vector<8x32xf32>
    %1073 = arith.mulf %1072, %1071 : vector<8x32xf32>
    %1074 = math.tanh %1073 : vector<8x32xf32>
    %cst_271 = arith.constant 5.000000e-01 : f32
    %1075 = vector.broadcast %cst_271 : f32 to vector<8x32xf32>
    %1076 = arith.mulf %1075, %1074 : vector<8x32xf32>
    %cst_272 = arith.constant 5.000000e-01 : f32
    %1077 = vector.broadcast %cst_272 : f32 to vector<8x32xf32>
    %1078 = arith.addf %1076, %1077 : vector<8x32xf32>
    %1079 = arith.mulf %1070, %1062 : vector<8x32xf32>
    %1080 = arith.addf %1059, %1079 : vector<8x32xf32>
    %1081 = math.tanh %1080 : vector<8x32xf32>
    %1082 = arith.subf %1017, %1081 : vector<8x32xf32>
    %1083 = arith.mulf %1078, %1082 : vector<8x32xf32>
    %1084 = arith.addf %1081, %1083 : vector<8x32xf32>
    %c16_i32 = arith.constant 16 : i32
    %1085 = tpu.concatenate %1052, %1084 in 0 : vector<8x32xf32>, vector<8x32xf32> -> vector<16x32xf32>
    %c0_273 = arith.constant 0 : index
    %c0_274 = arith.constant 0 : index
    %1086 = vector.load %arg7[%c0_273, %c0_274] : memref<16x16xf32, #tpu.memory_space<vmem>>, vector<16x16xf32>
    %cst_275 = arith.constant dense<0.000000e+00> : vector<16x32xf32>
    %1087 = tpu.matmul %1086, %1085, %cst_275 {dimension_numbers = #tpu.dot_dimension_numbers<[1], [0], [0], [1], [0, 0, 1, 1], [], []>} : vector<16x16xf32>, vector<16x32xf32>, vector<16x32xf32> -> vector<16x32xf32>
    %1088 = vector.extract_strided_slice %1087 {offsets = [0, 0], sizes = [8, 32], strides = [1, 1]} : vector<16x32xf32> to vector<8x32xf32>
    %1089 = vector.extract_strided_slice %1087 {offsets = [8, 0], sizes = [8, 32], strides = [1, 1]} : vector<16x32xf32> to vector<8x32xf32>
    %1090 = tpu.concatenate %1088, %1089 in 1 : vector<8x32xf32>, vector<8x32xf32> -> vector<8x64xf32>
    %c0_276 = arith.constant 0 : index
    %c0_277 = arith.constant 0 : index
    %1091 = vector.load %arg8[%c0_276, %c0_277] : memref<64x32xf32, #tpu.memory_space<vmem>>, vector<64x32xf32>
    %cst_278 = arith.constant dense<0.000000e+00> : vector<8x32xf32>
    %1092 = tpu.matmul %1090, %1091, %cst_278 {dimension_numbers = #tpu.dot_dimension_numbers<[1], [0], [0], [1], [0, 0, 1, 1], [], []>} : vector<8x64xf32>, vector<64x32xf32>, vector<8x32xf32> -> vector<8x32xf32>
    %c0_279 = arith.constant 0 : index
    %c0_280 = arith.constant 0 : index
    %1093 = vector.load %arg9[%c0_279, %c0_280] : memref<1x32xf32, #tpu.memory_space<vmem>>, vector<1x32xf32>
    %1094 = vector.broadcast %1093 : vector<1x32xf32> to vector<8x32xf32>
    %1095 = arith.addf %1092, %1094 : vector<8x32xf32>
    %c0_281 = arith.constant 0 : index
    %c0_282 = arith.constant 0 : index
    %1096 = vector.load %arg10[%c0_281, %c0_282] : memref<1x32xf32, #tpu.memory_space<vmem>>, vector<1x32xf32>
    %1097 = vector.broadcast %1096 : vector<1x32xf32> to vector<8x32xf32>
    %1098 = arith.mulf %1095, %1097 : vector<8x32xf32>
    %c0_283 = arith.constant 0 : index
    %c0_284 = arith.constant 0 : index
    %1099 = vector.load %arg11[%c0_283, %c0_284] : memref<1x32xf32, #tpu.memory_space<vmem>>, vector<1x32xf32>
    %1100 = vector.broadcast %1099 : vector<1x32xf32> to vector<8x32xf32>
    %1101 = arith.addf %1098, %1100 : vector<8x32xf32>
    %cst_285 = arith.constant 0.000000e+00 : f32
    %1102 = vector.broadcast %cst_285 : f32 to vector<8x32xf32>
    %1103 = arith.maximumf %1101, %1102 : vector<8x32xf32>
    %c0_286 = arith.constant 0 : index
    %c0_287 = arith.constant 0 : index
    %1104 = vector.load %arg12[%c0_286, %c0_287] : memref<32x18xf32, #tpu.memory_space<vmem>>, vector<32x18xf32>
    %cst_288 = arith.constant dense<0.000000e+00> : vector<8x18xf32>
    %1105 = tpu.matmul %1103, %1104, %cst_288 {dimension_numbers = #tpu.dot_dimension_numbers<[1], [0], [0], [1], [0, 0, 1, 1], [], []>} : vector<8x32xf32>, vector<32x18xf32>, vector<8x18xf32> -> vector<8x18xf32>
    %c0_289 = arith.constant 0 : index
    %c0_290 = arith.constant 0 : index
    %1106 = vector.load %arg13[%c0_289, %c0_290] : memref<1x18xf32, #tpu.memory_space<vmem>>, vector<1x18xf32>
    %1107 = vector.broadcast %1106 : vector<1x18xf32> to vector<8x18xf32>
    %1108 = arith.addf %1105, %1107 : vector<8x18xf32>
    %c0_291 = arith.constant 0 : index
    %c0_292 = arith.constant 0 : index
    %1109 = vector.load %arg14[%c0_291, %c0_292] : memref<1x18xf32, #tpu.memory_space<vmem>>, vector<1x18xf32>
    %1110 = vector.broadcast %1109 : vector<1x18xf32> to vector<8x18xf32>
    %1111 = arith.mulf %1108, %1110 : vector<8x18xf32>
    %c0_293 = arith.constant 0 : index
    %c0_294 = arith.constant 0 : index
    %1112 = vector.load %arg15[%c0_293, %c0_294] : memref<1x18xf32, #tpu.memory_space<vmem>>, vector<1x18xf32>
    %1113 = vector.broadcast %1112 : vector<1x18xf32> to vector<8x18xf32>
    %1114 = arith.addf %1111, %1113 : vector<8x18xf32>
    %cst_295 = arith.constant 0.000000e+00 : f32
    %1115 = vector.broadcast %cst_295 : f32 to vector<8x18xf32>
    %1116 = arith.maximumf %1114, %1115 : vector<8x18xf32>
    %c0_296 = arith.constant 0 : index
    %c0_297 = arith.constant 0 : index
    %1117 = vector.load %arg16[%c0_296, %c0_297] : memref<18x2xf32, #tpu.memory_space<vmem>>, vector<18x2xf32>
    %cst_298 = arith.constant dense<0.000000e+00> : vector<8x2xf32>
    %1118 = tpu.matmul %1116, %1117, %cst_298 {dimension_numbers = #tpu.dot_dimension_numbers<[1], [0], [0], [1], [0, 0, 1, 1], [], []>} : vector<8x18xf32>, vector<18x2xf32>, vector<8x2xf32> -> vector<8x2xf32>
    %c0_299 = arith.constant 0 : index
    %c0_300 = arith.constant 0 : index
    %1119 = vector.load %arg17[%c0_299, %c0_300] : memref<1x2xf32, #tpu.memory_space<vmem>>, vector<1x2xf32>
    %1120 = vector.broadcast %1119 : vector<1x2xf32> to vector<8x2xf32>
    %1121 = arith.addf %1118, %1120 : vector<8x2xf32>
    %c0_301 = arith.constant 0 : index
    %c0_302 = arith.constant 0 : index
    %1122 = vector.load %arg18[%c0_301, %c0_302] : memref<8x2xf32, #tpu.memory_space<vmem>>, vector<8x2xf32>
    tpu.vector_store %arg18[%c0_301, %c0_302], %1121 {strides = array<i32>} : memref<8x2xf32, #tpu.memory_space<vmem>>, vector<8x2xf32>,
    return
  }
}

</mosaic_0001>

<bundles_post_ra>
// kernel: birnn_forward.1
= control target key start
LH: loop header
LB: loop body
LE: loop exit
PB: predicated region body
PF: predicated region fallthrough
CT: control target
= control target key end

     0   :  { %vm132_vm0 = vcmask 1043456   ;;  %vm83_vm1 = vcmask 31744   ;;  %v5271_v2 = vmov 0.0|0.0   ;;  %vm5272_vm2 = vmmov 0   ;;  %s5275_s20 = smov 96   ;;  %s5276_s26 = smov 32   ;;  %s6263_s1 = inlined_call_operand.vmem [shape: f32[4,96], index: 1, kind: input, shape index: {}]   ;;  %s6264_s0 = inlined_call_operand.vmem [shape: f32[128,4], index: 0, kind: input, shape index: {}]   ;;  %s6265_s3 = inlined_call_operand.vmem [shape: f32[32,96], index: 3, kind: input, shape index: {}]   ;;  %s6266_s2 = inlined_call_operand.vmem [shape: f32[1,96], index: 2, kind: input, shape index: {}]   ;;  %s6267_s4 = inlined_call_operand.vmem [shape: f32[1,96], index: 4, kind: input, shape index: {}]   ;;  %s6268_s5 = inlined_call_operand.vmem [shape: f32[64,192], index: 5, kind: input, shape index: {}]   ;;  %s6269_s6 = inlined_call_operand.vmem [shape: f32[1,192], index: 6, kind: input, shape index: {}]   ;;  %s6270_s7 = inlined_call_operand.vmem [shape: f32[16,16], index: 7, kind: input, shape index: {}]   ;;  %s6271_s8 = inlined_call_operand.vmem [shape: f32[64,32], index: 8, kind: input, shape index: {}]   ;;  %s6272_s12 = inlined_call_operand.vmem [shape: f32[32,18], index: 12, kind: input, shape index: {}]   ;;  %s6273_s9 = inlined_call_operand.vmem [shape: f32[1,32], index: 9, kind: input, shape index: {}]   ;;  %s6274_s10 = inlined_call_operand.vmem [shape: f32[1,32], index: 10, kind: input, shape index: {}]   ;;  %s6275_s11 = inlined_call_operand.vmem [shape: f32[1,32], index: 11, kind: input, shape index: {}]   ;;  %s6276_s16 = inlined_call_operand.vmem [shape: f32[18,2], index: 16, kind: input, shape index: {}]   ;;  %s6277_s13 = inlined_call_operand.vmem [shape: f32[1,18], index: 13, kind: input, shape index: {}]   ;;  %s6278_s14 = inlined_call_operand.vmem [shape: f32[1,18], index: 14, kind: input, shape index: {}]   ;;  %s6279_s15 = inlined_call_operand.vmem [shape: f32[1,18], index: 15, kind: input, shape index: {}]   ;;  %s6280_s17 = inlined_call_operand.vmem [shape: f32[1,2], index: 17, kind: input, shape index: {}]   ;;  %s6281_s18 = inlined_call_operand.vmem [shape: f32[8,2], index: 18, kind: output, shape index: {}]  }
   0x1   :  { %6284 = sst [smem:[#allocation3_spill]] %s6263_s1  ;;  %4726 = vmatprep.subr.bf16.mxu1 %v5271_v2  ;;  %v5273_v9 = vmov 0.0   ;;  %v5410_v11 = vld [vmem:[%s6266_s2] ss:$0 sm:$0xff]  ;;  %vm281_vm3 = vcmask 785408   ;;  %s5274_s2 = smov 64   ;;  %v434_v62 = vlaneseq }
   0x2   :  { %6285 = sst [smem:[#allocation4_spill]] %s6264_s0  ;;  %s6287_s29 = sld [smem:[#allocation3_spill]]  ;;  %4512 = vmatprep.mubr.msk.f32.mxu1 %vm5272_vm2, %v5273_v9  ;;  %v5419_v16 = vld [vmem:[%s6267_s4] ss:$0 sm:$0xff]  ;;  %v304_v32 = vld [vmem:[%s6268_s5 + $0x8] sm:$0xff]  ;;  %v306_v33 = vld [vmem:[%s6268_s5 + $0x18] sm:$0xff] }
   0x3   :  { %6286 = sst [smem:[#allocation5_spill]] %s6265_s3  ;;  %s6288_s19 = sld [smem:[#allocation4_spill]]  ;;  %v303_v34 = vld [vmem:[%s6268_s5] sm:$0xff]  ;;  %v5434_v35 = vpack.c.bf16 %v306_v33, %v304_v32  ;;  %v305_v36 = vld [vmem:[%s6268_s5 + $0x10] sm:$0xff]  ;;  %v308_v37 = vld [vmem:[%s6268_s5 + $0x28] sm:$0xff]  ;;  %vm327_vm4 = vcmask 261120  }
   0x4   :  { %s6289_s3 = sld [smem:[#allocation5_spill]]  ;;  %v310_v38 = vld [vmem:[%s6268_s5 + $0x38] sm:$0xff]  ;;  %v5445_v39 = vpack.c.bf16 %v305_v36, %v303_v34  ;;  %v307_v41 = vld [vmem:[%s6268_s5 + $0x20] sm:$0xff]  ;;  %v309_v42 = vld [vmem:[%s6268_s5 + $0x30] sm:$0xff]  ;;  %vm444_vm5 = vcmask 523264   ;;  %v435_v63 = vshrl.u32 %v434_v62, 7 }
   0x5   :  { %v5447_v40 = vpack.c.bf16 %v310_v38, %v308_v37  ;;  %v312_v43 = vld [vmem:[%s6268_s5 + $0x48] sm:$0xff]  ;;  %v314_v44 = vld [vmem:[%s6268_s5 + $0x58] sm:$0xff]  ;;  %v5464_v45 = vpack.c.bf16 %v309_v42, %v307_v41  ;;  %v311_v47 = vld [vmem:[%s6268_s5 + $0x40] sm:$0xff]  ;;  %vm3909_vm6 = vcmask 130048   ;;  %vm4216_vm7 = vcmask 1041408  }
   0x6   :  { %v5468_v46 = vpack.c.bf16 %v314_v44, %v312_v43  ;;  %v313_v48 = vld [vmem:[%s6268_s5 + $0x50] sm:$0xff]  ;;  %v316_v49 = vld [vmem:[%s6268_s5 + $0x68] sm:$0xff]  ;;  %v318_v50 = vld [vmem:[%s6268_s5 + $0x78] sm:$0xff]  ;;  %vm4212_vm8 = vcmask 146432   ;;  %vm4290_vm9 = vcmask 15360  }
   0x7   :  { %v5484_v53 = vpack.c.bf16 %v313_v48, %v311_v47  ;;  %v5488_v54 = vpack.c.bf16 %v318_v50, %v316_v49  ;;  %v315_v55 = vld [vmem:[%s6268_s5 + $0x60] sm:$0xff]  ;;  %v317_v56 = vld [vmem:[%s6268_s5 + $0x70] sm:$0xff] }
   0x8   :  { %v75_v0 = vld [vmem:[%s6287_s29] sm:$0xf]  ;;  %v5499_v57 = vpack.c.bf16 %v317_v56, %v315_v55 }
   0x9   :  { %v59_v1 = vld [vmem:[%s6288_s19] sm:$0xff]  ;;  %v60_v3 = vld [vmem:[%s6288_s19 + $0x8] sm:$0xff]  ;;  %4478 = vmatprep.subr.msk.mxu0 %vm132_vm0, %v75_v0  ;;  %v61_v55 = vld [vmem:[%s6288_s19 + $0x10] sm:$0xff] }
   0xa   :  { %4480 = vmatprep.mubr.msk.f32.mxu0 %vm83_vm1, %v59_v1  ;;  %v298_v4 = vld [vmem:[%s6289_s3] sm:$0xff]  ;;  %v299_v5 = vld [vmem:[%s6289_s3 + $0x8] sm:$0xff]  ;;  %v300_v6 = vld [vmem:[%s6289_s3 + $0x10] sm:$0xff]  ;;  %4479 = vmatpush3.msk.msra.mxu0 %vm132_vm0, %v75_v0  ;;  %v436_v0 = vsub.s32 0, %v435_v63 }
   0xb   :  { %v5392_v7 = vpack.c.bf16 %v299_v5, %v298_v4  ;;  %v301_v8 = vld [vmem:[%s6289_s3 + $0x18] sm:$0xff]  ;;  %4481 = vmatmul.mubr.msk.f32.vlgmr.msra.gmra.mrb[0].mxu0 %vm83_vm1, %v60_v3  ;;  %4755 = vmatprep.subr.bf16.mxu0 %v5434_v35  ;;  %v319_v1 = vld [vmem:[%s6269_s6] sm:$0x3]  ;;  %v440_v3 = vsub.s32 1, %v435_v63 }
   0xc   :  { %v5401_v10 = vpack.c.bf16 %v301_v8, %v300_v6  ;;  %4757 = vmatpush1.bf16.msra.mxu0 %v5445_v39  ;;  %v5530_v4 = vrot.slane %v319_v1, %v436_v0  ;;  %v62_v56 = vld [vmem:[%s6288_s19 + $0x18] sm:$0xff]  ;;  %4483 = vmatprep.mubr.msk.f32.mxu0 %vm83_vm1, %v61_v55 }
   0xd   :  { %4728 = vmatpush3.bf16.msra.mxu1 %v5392_v7  ;;  %4759 = vmatprep.subr.bf16.mxu0 %v5447_v40  ;;  %v5532_v5 = vrot.slane %v319_v1, %v440_v3  ;;  %v66_v63 = vld [vmem:[%s6288_s19 + $0x38] sm:$0xff]  ;;  %v67_v1 = vld [vmem:[%s6288_s19 + $0x40] sm:$0xff] }
   0xe   :  { %4729 = vmatprep.subr.bf16.mxu1 %v5271_v2 }
   0xf   :  { %4484 = vmatmul.mubr.msk.f32.gmra.mrb[2].mxu0 %vm83_vm1, %v62_v56 }
  0x10   :  { %4761 = vmatpush1.bf16.msra.mxu0 %v5464_v45 }
  0x11   :  { %4731 = vmatpush3.bf16.msra.mxu1 %v5401_v10  ;;  %4763 = vmatprep.subr.bf16.mxu0 %v5468_v46 }
  0x12   :  { %4733 = vmatprep.subr.bf16.mxu1 %v5434_v35 }
  0x14   :  { %4513 = vmatmul.mubr.f32.vlgmr.msra.gmra.mrb[0].mxu1 %v5273_v9  ;;  %4765 = vmatpush1.bf16.msra.mxu0 %v5484_v53 }
  0x15   :  { %512 = vmatprep.mubr.f32.mxu1 %v5273_v9  ;;  %4735 = vmatpush1.bf16.msra.mxu1 %v5445_v39 }
  0x16   :  { %4737 = vmatprep.subr.bf16.mxu1 %v5447_v40  ;;  %4767 = vmatprep.subr.bf16.mxu0 %v5488_v54 }
  0x18   :  { %4769 = vmatpush1.bf16.msra.mxu0 %v5499_v57 }
  0x19   :  { %4739 = vmatpush1.bf16.msra.mxu1 %v5464_v45  ;;  %4777 = vmatprep.subr.bf16.mxu0 %v5434_v35 }
  0x1a   :  { %4741 = vmatprep.subr.bf16.mxu1 %v5468_v46 }
  0x1d   :  { %4743 = vmatpush1.bf16.msra.mxu1 %v5484_v53 }
  0x1e   :  { %4745 = vmatprep.subr.bf16.mxu1 %v5488_v54 }
  0x21   :  { %4747 = vmatpush1.bf16.msra.mxu1 %v5499_v57 }
  0x22   :  { %4748 = vmatprep.subr.bf16.mxu1 %v5271_v2 }
  0xde   :  { %v4482_v12 = vpop.f32.mrb[0].mxu0 }
  0xdf   :  { %v208_v13 = vadd.f32 %v4482_v12, %v5410_v11  ;;  %v202_v14 = vpop.f32.mrb[1].mxu0 }
  0xe0   :  { %v203_v15 = vadd.f32 %v5410_v11, %v202_v14 }
  0xe1   :  { %283 = vst.msk [vmem:[#allocation2 + $0x8] sm:$0xff] %vm281_vm3, %v208_v13 }
  0xe2   :  { %282 = vst.msk [vmem:[#allocation2] sm:$0xff] %vm281_vm3, %v203_v15 }
  0xe7   :  { %v397_v17 = vpop.f32.mrb[0].mxu1 }
  0xe8   :  { %v398_v18 = vadd.f32 %v5419_v16, %v397_v17  ;;  %v4514_v19 = vpop.f32.mrb[1].mxu1 }
  0xe9   :  { %v320_v20 = vld [vmem:[#allocation2] sm:$0xff] }
  0xea   :  { %407 = vrot.lane.b32.xlu0 %v398_v18, %s5274_s2  ;;  %v401_v21 = vadd.f32 %v398_v18, %v320_v20  ;;  %v559_v18 = vld [vmem:[#allocation2 + $0x8] sm:$0xff] }
  0xec   :  { %v402_v22 = vmul.f32 0.5, %v401_v21 }
  0xee   :  { %5109 = vtanh.f32 %v402_v22 }
  0xf8   :  { %v5110_v23 = vpop.eup %5109 }
  0xf9   :  { %v404_v24 = vmul.f32 0.5, %v5110_v23 }
  0xfb   :  { %v405_v25 = vadd.f32 0.5, %v404_v24 }
 0x15c   :  { %v408_v26 = vpop.permute.xlu0 %407 }
 0x15d   :  { %v410_v27 = vmul.f32 %v408_v26, %v405_v25 }
 0x15f   :  { %412 = vrot.lane.b32.xlu0 %v410_v27, %s5274_s2 }
 0x1d1   :  { %v413_v28 = vpop.permute.xlu0 %412 }
 0x1d2   :  { %v415_v29 = vadd.f32 %v413_v28, %v320_v20 }
 0x1d4   :  { %5111 = vtanh.f32 %v415_v29 }
 0x1de   :  { %v5112_v30 = vpop.eup %5111 }
 0x1df   :  { %v417_v31 = vsub.f32 0.0, %v5112_v30 }
 0x1e1   :  { %419 = vrot.lane.b32.xlu1 %v417_v31, %s5275_s20 }
 0x253   :  { %v420_v51 = vpop.permute.xlu1 %419 }
 0x254   :  { %v422_v52 = vmul.f32 %v420_v51, %v405_v25 }
 0x256   :  { %424 = vrot.lane.b32.xlu1 %v422_v52, %s5276_s26 }
 0x2c8   :  { %v425_v58 = vpop.permute.xlu1 %424 }
 0x2c9   :  { %v5508_v59 = vadd.f32 %v5112_v30, %v425_v58  ;;  %v63_v58 = vld [vmem:[%s6288_s19 + $0x20] sm:$0xff] }
 0x2ca   :  { %4486 = vmatprep.mubr.msk.f32.mxu0 %vm83_vm1, %v63_v58 }
 0x2cb   :  { %429 = vrot.lane.b32.xlu0 %v5508_v59, %s5274_s2 }
 0x33d   :  { %v430_v60 = vpop.permute.xlu0 %429 }
 0x33e   :  { %v432_v61 = vsel %vm327_vm4, %v430_v60, 0.0 }
 0x33f   :  { %4315 = vmatmul.mubr.msk.f32.vlgmr.msra.gmra.mrb[2].mxu1 %vm444_vm5, %v432_v61  ;;  %v65_v61 = vld [vmem:[%s6288_s19 + $0x30] sm:$0xff] }
 0x340   :  { %4750 = vmatpush3.bf16.msra.mxu1 %v5392_v7  ;;  %4523 = vmatprep.mubr.msk.f32.mxu1 %vm5272_vm2, %v5273_v9 }
 0x341   :  { %4751 = vmatprep.subr.bf16.mxu1 %v5271_v2 }
 0x344   :  { %4753 = vmatpush3.bf16.msra.mxu1 %v5401_v10 }
 0x345   :  { %4770 = vmatprep.subr.bf16.mxu1 %v5271_v2 }
 0x347   :  { %4524 = vmatmul.mubr.msk.f32.vlgmr.msra.gmra.mrb[4].mxu1 %vm327_vm4, %v430_v60  ;;  %v64_v60 = vld [vmem:[%s6288_s19 + $0x28] sm:$0xff] }
 0x348   :  { %4772 = vmatpush3.bf16.msra.mxu1 %v5392_v7  ;;  %4534 = vmatprep.mubr.msk.f32.mxu1 %vm5272_vm2, %v5273_v9 }
 0x349   :  { %4773 = vmatprep.subr.bf16.mxu1 %v5271_v2  ;;  %4487 = vmatmul.mubr.msk.f32.gmra.mrb[4].mxu0 %vm83_vm1, %v64_v60 }
 0x34a   :  { %4489 = vmatprep.mubr.msk.f32.mxu0 %vm83_vm1, %v65_v61 }
 0x34c   :  { %4775 = vmatpush3.bf16.msra.mxu1 %v5401_v10 }
 0x34d   :  { %4792 = vmatprep.subr.bf16.mxu1 %v5271_v2  ;;  %4490 = vmatmul.mubr.msk.f32.gmra.mrb[6].mxu0 %vm83_vm1, %v66_v63 }
 0x34e   :  { %4492 = vmatprep.mubr.msk.f32.mxu0 %vm83_vm1, %v67_v1 }
 0x412   :  { %v514_v6 = vpop.f32.mrb[2].mxu1 }
 0x413   :  { %v515_v8 = vadd.f32 %v514_v6, %v5530_v4  ;;  %v516_v12 = vpop.f32.mrb[3].mxu1  ;;  %v68_v6 = vld [vmem:[%s6288_s19 + $0x48] sm:$0xff] }
 0x414   :  { %v517_v13 = vadd.f32 %v516_v12, %v5532_v5  ;;  %4493 = vmatmul.mubr.msk.f32.gmra.mrb[8].mxu0 %vm83_vm1, %v68_v6  ;;  %v70_v12 = vld [vmem:[%s6288_s19 + $0x58] sm:$0xff] }
 0x415   :  { %520 = vrot.lane.b32.xlu1 %v515_v8, %s5276_s26 }
 0x416   :  { %537 = vrot.lane.b32.xlu0 %v517_v13, %s5275_s20 }
 0x41a   :  { %v628_v14 = vpop.f32.mrb[4].mxu1 }
 0x41b   :  { %v629_v15 = vadd.f32 %v5419_v16, %v628_v14  ;;  %v4525_v17 = vpop.f32.mrb[5].mxu1  ;;  %v72_v14 = vld [vmem:[%s6288_s19 + $0x68] sm:$0xff] }
 0x41c   :  { %v74_v17 = vld [vmem:[%s6288_s19 + $0x78] sm:$0xff] }
 0x41d   :  { %638 = vrot.lane.b32.xlu1 %v629_v15, %s5274_s2  ;;  %v632_v19 = vadd.f32 %v629_v15, %v559_v18  ;;  %v73_v15 = vld [vmem:[%s6288_s19 + $0x70] sm:$0xff] }
 0x41f   :  { %v633_v20 = vmul.f32 0.5, %v632_v19 }
 0x421   :  { %5113 = vtanh.f32 %v633_v20 }
 0x42b   :  { %v5114_v21 = vpop.eup %5113 }
 0x42c   :  { %v635_v25 = vmul.f32 0.5, %v5114_v21 }
 0x42e   :  { %v636_v26 = vadd.f32 0.5, %v635_v25 }
 0x487   :  { %v521_v22 = vpop.permute.xlu1 %520 }
 0x488   :  { %v523_v23 = vadd.f32 %v521_v22, %v515_v8  ;;  %v538_v32 = vpop.permute.xlu0 %537  ;;  %v4485_v22 = vpop.f32.mrb[2].mxu0 }
 0x48a   :  { %v524_v24 = vmul.f32 0.5, %v523_v23  ;;  %v218_v23 = vadd.f32 %v4485_v22, %v5410_v11 }
 0x48c   :  { %5115 = vtanh.f32 %v524_v24  ;;  %v212_v24 = vpop.f32.mrb[3].mxu0  ;;  %285 = vst.msk [vmem:[#allocation2 + $0x18] sm:$0xff] %vm281_vm3, %v218_v23 }
 0x48d   :  { %v213_v25 = vadd.f32 %v5410_v11, %v212_v24 }
 0x48f   :  { %v639_v27 = vpop.permute.xlu1 %638  ;;  %284 = vst.msk [vmem:[#allocation2 + $0x10] sm:$0xff] %vm281_vm3, %v213_v25 }
 0x490   :  { %v641_v28 = vmul.f32 %v639_v27, %v636_v26 }
 0x492   :  { %643 = vrot.lane.b32.xlu1 %v641_v28, %s5274_s2 }
 0x496   :  { %v5116_v29 = vpop.eup %5115 }
 0x497   :  { %v526_v30 = vmul.f32 0.5, %v5116_v29 }
 0x499   :  { %v527_v31 = vadd.f32 0.5, %v526_v30 }
 0x49b   :  { %v540_v33 = vmul.f32 %v538_v32, %v527_v31 }
 0x49d   :  { %542 = vrot.lane.b32.xlu0 %v540_v33, %s5274_s2 }
 0x4a1   :  { %529 = vrot.lane.b32.xlu0 %v517_v13, %s5276_s26  ;;  %v71_v13 = vld [vmem:[%s6288_s19 + $0x60] sm:$0xff] }
 0x504   :  { %v644_v34 = vpop.permute.xlu1 %643 }
 0x505   :  { %v646_v36 = vadd.f32 %v644_v34, %v559_v18 }
 0x507   :  { %5117 = vtanh.f32 %v646_v36 }
 0x50f   :  { %v543_v37 = vpop.permute.xlu0 %542 }
 0x510   :  { %v545_v38 = vadd.f32 %v543_v37, %v515_v8 }
 0x511   :  { %v5118_v41 = vpop.eup %5117 }
 0x512   :  { %5119 = vtanh.f32 %v545_v38  ;;  %v648_v42 = vsub.f32 %v5508_v59, %v5118_v41 }
 0x513   :  { %v530_v47 = vpop.permute.xlu0 %529 }
 0x514   :  { %650 = vrot.lane.b32.xlu0 %v648_v42, %s5275_s20  ;;  %v532_v48 = vadd.f32 %v530_v47, %v515_v8  ;;  %v69_v8 = vld [vmem:[%s6288_s19 + $0x50] sm:$0xff] }
 0x515   :  { %4495 = vmatprep.mubr.msk.f32.mxu0 %vm83_vm1, %v69_v8 }
 0x516   :  { %v533_v49 = vmul.f32 0.5, %v532_v48  ;;  %4496 = vmatmul.mubr.msk.f32.gmra.mrb[10].mxu0 %vm83_vm1, %v70_v12 }
 0x517   :  { %4498 = vmatprep.mubr.msk.f32.mxu0 %vm83_vm1, %v71_v13 }
 0x518   :  { %5121 = vtanh.f32 %v533_v49 }
 0x51a   :  { %4499 = vmatmul.mubr.msk.f32.gmra.mrb[12].mxu0 %vm83_vm1, %v72_v14 }
 0x51b   :  { %4501 = vmatprep.mubr.msk.f32.mxu0 %vm83_vm1, %v73_v15 }
 0x51c   :  { %v5120_v43 = vpop.eup %5119 }
 0x51d   :  { %v547_v44 = vsub.f32 0.0, %v5120_v43 }
 0x51e   :  { %4502 = vmatmul.mubr.msk.f32.gmra.mrb[14].mxu0 %vm83_vm1, %v74_v17 }
 0x51f   :  { %549 = vrot.lane.b32.xlu1 %v547_v44, %s5275_s20  ;;  %735 = vmatprep.mubr.f32.mxu0 %v5273_v9 }
 0x522   :  { %v5122_v52 = vpop.eup %5121 }
 0x523   :  { %v535_v59 = vmul.f32 0.5, %v5122_v52 }
 0x525   :  { %v536_v62 = vadd.f32 0.5, %v535_v59 }
 0x586   :  { %v651_v50 = vpop.permute.xlu0 %650 }
 0x587   :  { %v653_v51 = vmul.f32 %v651_v50, %v636_v26  ;;  %v4488_v26 = vpop.f32.mrb[4].mxu0 }
 0x588   :  { %v228_v27 = vadd.f32 %v4488_v26, %v5410_v11  ;;  %v222_v28 = vpop.f32.mrb[5].mxu0 }
 0x589   :  { %655 = vrot.lane.b32.xlu0 %v653_v51, %s5276_s26  ;;  %v223_v29 = vadd.f32 %v5410_v11, %v222_v28  ;;  %v4491_v30 = vpop.f32.mrb[6].mxu0 }
 0x58a   :  { %287 = vst.msk [vmem:[#allocation2 + $0x28] sm:$0xff] %vm281_vm3, %v228_v27  ;;  %v238_v31 = vadd.f32 %v4491_v30, %v5410_v11  ;;  %v232_v32 = vpop.f32.mrb[7].mxu0 }
 0x58b   :  { %286 = vst.msk [vmem:[#allocation2 + $0x20] sm:$0xff] %vm281_vm3, %v223_v29  ;;  %v233_v33 = vadd.f32 %v5410_v11, %v232_v32  ;;  %v4494_v34 = vpop.f32.mrb[8].mxu0 }
 0x58c   :  { %289 = vst.msk [vmem:[#allocation2 + $0x38] sm:$0xff] %vm281_vm3, %v238_v31  ;;  %v248_v36 = vadd.f32 %v4494_v34, %v5410_v11  ;;  %v242_v37 = vpop.f32.mrb[9].mxu0 }
 0x58d   :  { %288 = vst.msk [vmem:[#allocation2 + $0x30] sm:$0xff] %vm281_vm3, %v233_v33  ;;  %v243_v38 = vadd.f32 %v5410_v11, %v242_v37 }
 0x58e   :  { %291 = vst.msk [vmem:[#allocation2 + $0x48] sm:$0xff] %vm281_vm3, %v248_v36 }
 0x58f   :  { %290 = vst.msk [vmem:[#allocation2 + $0x40] sm:$0xff] %vm281_vm3, %v243_v38 }
 0x591   :  { %v550_v0 = vpop.permute.xlu1 %549 }
 0x592   :  { %v552_v3 = vmul.f32 %v550_v0, %v536_v62 }
 0x594   :  { %554 = vrot.lane.b32.xlu1 %v552_v3, %s5276_s26 }
 0x5e9   :  { %v4497_v44 = vpop.f32.mrb[10].mxu0 }
 0x5ea   :  { %v258_v47 = vadd.f32 %v4497_v44, %v5410_v11  ;;  %v252_v48 = vpop.f32.mrb[11].mxu0 }
 0x5eb   :  { %v253_v49 = vadd.f32 %v5410_v11, %v252_v48 }
 0x5ec   :  { %293 = vst.msk [vmem:[#allocation2 + $0x58] sm:$0xff] %vm281_vm3, %v258_v47 }
 0x5ed   :  { %292 = vst.msk [vmem:[#allocation2 + $0x50] sm:$0xff] %vm281_vm3, %v253_v49  ;;  %v4500_v50 = vpop.f32.mrb[12].mxu0 }
 0x5ee   :  { %v262_v51 = vpop.f32.mrb[13].mxu0  ;;  %v268_v52 = vadd.f32 %v4500_v50, %v5410_v11 }
 0x5ef   :  { %v263_v55 = vadd.f32 %v5410_v11, %v262_v51 }
 0x5f0   :  { %295 = vst.msk [vmem:[#allocation2 + $0x68] sm:$0xff] %vm281_vm3, %v268_v52 }
 0x5f1   :  { %294 = vst.msk [vmem:[#allocation2 + $0x60] sm:$0xff] %vm281_vm3, %v263_v55  ;;  %v4503_v56 = vpop.f32.mrb[14].mxu0 }
 0x5f2   :  { %v278_v58 = vadd.f32 %v4503_v56, %v5410_v11  ;;  %v272_v59 = vpop.f32.mrb[15].mxu0 }
 0x5f3   :  { %v273_v60 = vadd.f32 %v5410_v11, %v272_v59  ;;  %v782_v11 = vld [vmem:[#allocation2 + $0x10] sm:$0xff] }
 0x5f4   :  { %297 = vst.msk [vmem:[#allocation2 + $0x78] sm:$0xff] %vm281_vm3, %v278_v58 }
 0x5f5   :  { %296 = vst.msk [vmem:[#allocation2 + $0x70] sm:$0xff] %vm281_vm3, %v273_v60 }
 0x5fb   :  { %v656_v18 = vpop.permute.xlu0 %655 }
 0x5fc   :  { %v5605_v19 = vadd.f32 %v5118_v41, %v656_v18 }
 0x5fe   :  { %660 = vrot.lane.b32.xlu1 %v5605_v19, %s5274_s2 }
 0x606   :  { %v555_v20 = vpop.permute.xlu1 %554 }
 0x607   :  { %v5609_v21 = vadd.f32 %v5120_v43, %v555_v20 }
 0x609   :  { %664 = vrot.lane.b32.xlu0 %v5609_v21, %s5275_s20 }
 0x670   :  { %v661_v41 = vpop.permute.xlu1 %660 }
 0x671   :  { %4535 = vmatmul.mubr.msk.f32.vlgmr.msra.gmra.mrb[6].mxu1 %vm327_vm4, %v661_v41 }
 0x672   :  { %4794 = vmatpush3.bf16.msra.mxu1 %v5392_v7  ;;  %4545 = vmatprep.mubr.msk.f32.mxu1 %vm5272_vm2, %v5273_v9 }
 0x673   :  { %4795 = vmatprep.subr.bf16.mxu1 %v5271_v2 }
 0x676   :  { %4797 = vmatpush3.bf16.msra.mxu1 %v5401_v10 }
 0x677   :  { %4799 = vmatprep.subr.bf16.mxu1 %v5434_v35 }
 0x67b   :  { %v665_v42 = vpop.permute.xlu0 %664 }
 0x67c   :  { %v667_v43 = vsel %vm327_vm4, %v661_v41, %v665_v42 }
 0x67d   :  { %4317 = vmatmul.mubr.msk.f32.vlgmr.msra.gmra.mrb[16].mxu0 %vm444_vm5, %v667_v43 }
 0x67e   :  { %4779 = vmatpush1.bf16.msra.mxu0 %v5445_v39  ;;  %958 = vmatprep.mubr.f32.mxu0 %v5273_v9 }
 0x67f   :  { %4781 = vmatprep.subr.bf16.mxu0 %v5447_v40 }
 0x682   :  { %4783 = vmatpush1.bf16.msra.mxu0 %v5464_v45 }
 0x683   :  { %4785 = vmatprep.subr.bf16.mxu0 %v5468_v46 }
 0x686   :  { %4787 = vmatpush1.bf16.msra.mxu0 %v5484_v53 }
 0x687   :  { %4789 = vmatprep.subr.bf16.mxu0 %v5488_v54 }
 0x68a   :  { %4791 = vmatpush1.bf16.msra.mxu0 %v5499_v57 }
 0x68b   :  { %4814 = vmatprep.subr.bf16.mxu0 %v5271_v2 }
 0x744   :  { %v851_v61 = vpop.f32.mrb[6].mxu1 }
 0x745   :  { %v4536_v62 = vpop.f32.mrb[7].mxu1  ;;  %v852_v6 = vadd.f32 %v5419_v16, %v851_v61 }
 0x747   :  { %v855_v8 = vadd.f32 %v852_v6, %v782_v11 }
 0x749   :  { %v856_v12 = vmul.f32 0.5, %v855_v8 }
 0x74b   :  { %5123 = vtanh.f32 %v856_v12 }
 0x750   :  { %v737_v63 = vpop.f32.mrb[16].mxu0 }
 0x751   :  { %v738_v0 = vadd.f32 %v737_v63, %v5530_v4  ;;  %v739_v1 = vpop.f32.mrb[17].mxu0 }
 0x752   :  { %v740_v3 = vadd.f32 %v739_v1, %v5532_v5 }
 0x753   :  { %743 = vrot.lane.b32.xlu1 %v738_v0, %s5276_s26 }
 0x754   :  { %760 = vrot.lane.b32.xlu0 %v740_v3, %s5275_s20 }
 0x755   :  { %v5124_v13 = vpop.eup %5123 }
 0x756   :  { %v858_v14 = vmul.f32 0.5, %v5124_v13 }
 0x757   :  { %861 = vrot.lane.b32.xlu1 %v852_v6, %s5274_s2  ;;  %v1005_v6 = vld [vmem:[#allocation2 + $0x18] sm:$0xff] }
 0x758   :  { %v859_v20 = vadd.f32 0.5, %v858_v14 }
 0x7c5   :  { %v744_v15 = vpop.permute.xlu1 %743 }
 0x7c6   :  { %v746_v17 = vadd.f32 %v744_v15, %v738_v0  ;;  %v761_v27 = vpop.permute.xlu0 %760 }
 0x7c8   :  { %v747_v18 = vmul.f32 0.5, %v746_v17 }
 0x7c9   :  { %v862_v22 = vpop.permute.xlu1 %861 }
 0x7ca   :  { %5125 = vtanh.f32 %v747_v18  ;;  %v864_v23 = vmul.f32 %v862_v22, %v859_v20 }
 0x7cc   :  { %866 = vrot.lane.b32.xlu1 %v864_v23, %s5274_s2 }
 0x7d4   :  { %v5126_v24 = vpop.eup %5125 }
 0x7d5   :  { %v749_v25 = vmul.f32 0.5, %v5126_v24 }
 0x7d7   :  { %v750_v26 = vadd.f32 0.5, %v749_v25 }
 0x7d9   :  { %v763_v28 = vmul.f32 %v761_v27, %v750_v26 }
 0x7db   :  { %765 = vrot.lane.b32.xlu0 %v763_v28, %s5274_s2 }
 0x7df   :  { %752 = vrot.lane.b32.xlu0 %v740_v3, %s5276_s26 }
 0x83e   :  { %v867_v29 = vpop.permute.xlu1 %866 }
 0x83f   :  { %v869_v30 = vadd.f32 %v867_v29, %v782_v11 }
 0x841   :  { %5127 = vtanh.f32 %v869_v30 }
 0x84b   :  { %v5128_v31 = vpop.eup %5127 }
 0x84c   :  { %v871_v32 = vsub.f32 %v5605_v19, %v5128_v31 }
 0x84d   :  { %v766_v33 = vpop.permute.xlu0 %765 }
 0x84e   :  { %v768_v34 = vadd.f32 %v766_v33, %v738_v0  ;;  %873 = vrot.lane.b32.xlu0 %v871_v32, %s5275_s20 }
 0x850   :  { %5129 = vtanh.f32 %v768_v34 }
 0x851   :  { %v753_v38 = vpop.permute.xlu0 %752 }
 0x852   :  { %v755_v41 = vadd.f32 %v753_v38, %v738_v0 }
 0x854   :  { %v756_v42 = vmul.f32 0.5, %v755_v41 }
 0x856   :  { %5131 = vtanh.f32 %v756_v42 }
 0x85a   :  { %v5130_v36 = vpop.eup %5129 }
 0x85b   :  { %v770_v37 = vsub.f32 %v5609_v21, %v5130_v36 }
 0x85d   :  { %772 = vrot.lane.b32.xlu1 %v770_v37, %s5275_s20 }
 0x860   :  { %v5132_v47 = vpop.eup %5131 }
 0x861   :  { %v758_v19 = vmul.f32 0.5, %v5132_v47 }
 0x863   :  { %v759_v48 = vadd.f32 0.5, %v758_v19 }
 0x8c0   :  { %v874_v43 = vpop.permute.xlu0 %873 }
 0x8c1   :  { %v876_v44 = vmul.f32 %v874_v43, %v859_v20 }
 0x8c3   :  { %878 = vrot.lane.b32.xlu0 %v876_v44, %s5276_s26 }
 0x8cf   :  { %v773_v49 = vpop.permute.xlu1 %772 }
 0x8d0   :  { %v775_v50 = vmul.f32 %v773_v49, %v759_v48 }
 0x8d2   :  { %777 = vrot.lane.b32.xlu1 %v775_v50, %s5276_s26 }
 0x935   :  { %v879_v51 = vpop.permute.xlu0 %878 }
 0x936   :  { %v881_v52 = vadd.f32 %v5128_v31, %v879_v51 }
 0x938   :  { %883 = vrot.lane.b32.xlu1 %v881_v52, %s5274_s2 }
 0x944   :  { %v778_v21 = vpop.permute.xlu1 %777 }
 0x945   :  { %v5675_v55 = vadd.f32 %v5130_v36, %v778_v21 }
 0x947   :  { %887 = vrot.lane.b32.xlu0 %v5675_v55, %s5275_s20 }
 0x9aa   :  { %v884_v56 = vpop.permute.xlu1 %883 }
 0x9ab   :  { %4546 = vmatmul.mubr.msk.f32.vlgmr.msra.gmra.mrb[8].mxu1 %vm327_vm4, %v884_v56 }
 0x9ac   :  { %4801 = vmatpush1.bf16.msra.mxu1 %v5445_v39  ;;  %1181 = vmatprep.mubr.f32.mxu1 %v5273_v9 }
 0x9ad   :  { %4803 = vmatprep.subr.bf16.mxu1 %v5447_v40 }
 0x9b0   :  { %4805 = vmatpush1.bf16.msra.mxu1 %v5464_v45 }
 0x9b1   :  { %4807 = vmatprep.subr.bf16.mxu1 %v5468_v46 }
 0x9b4   :  { %4809 = vmatpush1.bf16.msra.mxu1 %v5484_v53 }
 0x9b5   :  { %4811 = vmatprep.subr.bf16.mxu1 %v5488_v54 }
 0x9b8   :  { %4813 = vmatpush1.bf16.msra.mxu1 %v5499_v57 }
 0x9b9   :  { %v888_v58 = vpop.permute.xlu0 %887  ;;  %4836 = vmatprep.subr.bf16.mxu1 %v5271_v2 }
 0x9ba   :  { %v890_v59 = vsel %vm327_vm4, %v884_v56, %v888_v58 }
 0x9bb   :  { %4319 = vmatmul.mubr.msk.f32.vlgmr.msra.gmra.mrb[18].mxu0 %vm444_vm5, %v890_v59 }
 0x9bc   :  { %4816 = vmatpush3.bf16.msra.mxu0 %v5392_v7  ;;  %4556 = vmatprep.mubr.msk.f32.mxu0 %vm5272_vm2, %v5273_v9 }
 0x9bd   :  { %4817 = vmatprep.subr.bf16.mxu0 %v5271_v2 }
 0x9c0   :  { %4819 = vmatpush3.bf16.msra.mxu0 %v5401_v10 }
 0x9c1   :  { %4821 = vmatprep.subr.bf16.mxu0 %v5434_v35 }
 0xa7e   :  { %v1074_v60 = vpop.f32.mrb[8].mxu1 }
 0xa7f   :  { %v4547_v61 = vpop.f32.mrb[9].mxu1  ;;  %v1075_v3 = vadd.f32 %v5419_v16, %v1074_v60 }
 0xa81   :  { %v1078_v11 = vadd.f32 %v1075_v3, %v1005_v6 }
 0xa83   :  { %v1079_v8 = vmul.f32 0.5, %v1078_v11 }
 0xa85   :  { %5133 = vtanh.f32 %v1079_v8 }
 0xa8e   :  { %v960_v62 = vpop.f32.mrb[18].mxu0 }
 0xa8f   :  { %v961_v63 = vadd.f32 %v960_v62, %v5530_v4  ;;  %v962_v0 = vpop.f32.mrb[19].mxu0  ;;  %v5134_v12 = vpop.eup %5133 }
 0xa90   :  { %v963_v1 = vadd.f32 %v962_v0, %v5532_v5  ;;  %v1081_v13 = vmul.f32 0.5, %v5134_v12 }
 0xa91   :  { %966 = vrot.lane.b32.xlu1 %v961_v63, %s5276_s26 }
 0xa92   :  { %983 = vrot.lane.b32.xlu0 %v963_v1, %s5275_s20  ;;  %v1082_v18 = vadd.f32 0.5, %v1081_v13 }
 0xa95   :  { %1084 = vrot.lane.b32.xlu1 %v1075_v3, %s5274_s2  ;;  %v1228_v3 = vld [vmem:[#allocation2 + $0x20] sm:$0xff] }
 0xb03   :  { %v967_v14 = vpop.permute.xlu1 %966 }
 0xb04   :  { %v969_v15 = vadd.f32 %v967_v14, %v961_v63  ;;  %v984_v26 = vpop.permute.xlu0 %983 }
 0xb06   :  { %v970_v17 = vmul.f32 0.5, %v969_v15 }
 0xb07   :  { %v1085_v20 = vpop.permute.xlu1 %1084 }
 0xb08   :  { %5135 = vtanh.f32 %v970_v17  ;;  %v1087_v22 = vmul.f32 %v1085_v20, %v1082_v18 }
 0xb0a   :  { %1089 = vrot.lane.b32.xlu1 %v1087_v22, %s5274_s2 }
 0xb12   :  { %v5136_v23 = vpop.eup %5135 }
 0xb13   :  { %v972_v24 = vmul.f32 0.5, %v5136_v23 }
 0xb15   :  { %v973_v25 = vadd.f32 0.5, %v972_v24 }
 0xb17   :  { %v986_v27 = vmul.f32 %v984_v26, %v973_v25 }
 0xb19   :  { %988 = vrot.lane.b32.xlu0 %v986_v27, %s5274_s2 }
 0xb1d   :  { %975 = vrot.lane.b32.xlu0 %v963_v1, %s5276_s26 }
 0xb7c   :  { %v1090_v28 = vpop.permute.xlu1 %1089 }
 0xb7d   :  { %v1092_v29 = vadd.f32 %v1090_v28, %v1005_v6 }
 0xb7f   :  { %5137 = vtanh.f32 %v1092_v29 }
 0xb89   :  { %v5138_v30 = vpop.eup %5137 }
 0xb8a   :  { %v1094_v31 = vsub.f32 %v881_v52, %v5138_v30 }
 0xb8b   :  { %v989_v32 = vpop.permute.xlu0 %988 }
 0xb8c   :  { %v991_v33 = vadd.f32 %v989_v32, %v961_v63  ;;  %1096 = vrot.lane.b32.xlu0 %v1094_v31, %s5275_s20 }
 0xb8e   :  { %5139 = vtanh.f32 %v991_v33 }
 0xb8f   :  { %v976_v37 = vpop.permute.xlu0 %975 }
 0xb90   :  { %v978_v38 = vadd.f32 %v976_v37, %v961_v63 }
 0xb92   :  { %v979_v41 = vmul.f32 0.5, %v978_v38 }
 0xb94   :  { %5141 = vtanh.f32 %v979_v41 }
 0xb98   :  { %v5140_v34 = vpop.eup %5139 }
 0xb99   :  { %v993_v36 = vsub.f32 %v5675_v55, %v5140_v34 }
 0xb9b   :  { %995 = vrot.lane.b32.xlu1 %v993_v36, %s5275_s20 }
 0xb9e   :  { %v5142_v44 = vpop.eup %5141 }
 0xb9f   :  { %v981_v47 = vmul.f32 0.5, %v5142_v44 }
 0xba1   :  { %v982_v19 = vadd.f32 0.5, %v981_v47 }
 0xbfe   :  { %v1097_v42 = vpop.permute.xlu0 %1096 }
 0xbff   :  { %v1099_v43 = vmul.f32 %v1097_v42, %v1082_v18 }
 0xc01   :  { %1101 = vrot.lane.b32.xlu0 %v1099_v43, %s5276_s26 }
 0xc0d   :  { %v996_v48 = vpop.permute.xlu1 %995 }
 0xc0e   :  { %v998_v49 = vmul.f32 %v996_v48, %v982_v19 }
 0xc10   :  { %1000 = vrot.lane.b32.xlu1 %v998_v49, %s5276_s26 }
 0xc73   :  { %v1102_v50 = vpop.permute.xlu0 %1101 }
 0xc74   :  { %v1104_v51 = vadd.f32 %v5138_v30, %v1102_v50 }
 0xc76   :  { %1106 = vrot.lane.b32.xlu1 %v1104_v51, %s5274_s2 }
 0xc82   :  { %v1001_v52 = vpop.permute.xlu1 %1000 }
 0xc83   :  { %v5712_v21 = vadd.f32 %v5140_v34, %v1001_v52 }
 0xc85   :  { %1110 = vrot.lane.b32.xlu0 %v5712_v21, %s5275_s20 }
 0xce8   :  { %v1107_v55 = vpop.permute.xlu1 %1106 }
 0xce9   :  { %4557 = vmatmul.mubr.msk.f32.vlgmr.msra.gmra.mrb[20].mxu0 %vm327_vm4, %v1107_v55 }
 0xcea   :  { %4823 = vmatpush1.bf16.msra.mxu0 %v5445_v39  ;;  %1404 = vmatprep.mubr.f32.mxu0 %v5273_v9 }
 0xceb   :  { %4825 = vmatprep.subr.bf16.mxu0 %v5447_v40 }
 0xcee   :  { %4827 = vmatpush1.bf16.msra.mxu0 %v5464_v45 }
 0xcef   :  { %4829 = vmatprep.subr.bf16.mxu0 %v5468_v46 }
 0xcf2   :  { %4831 = vmatpush1.bf16.msra.mxu0 %v5484_v53 }
 0xcf3   :  { %4833 = vmatprep.subr.bf16.mxu0 %v5488_v54 }
 0xcf6   :  { %4835 = vmatpush1.bf16.msra.mxu0 %v5499_v57 }
 0xcf7   :  { %v1111_v56 = vpop.permute.xlu0 %1110  ;;  %4858 = vmatprep.subr.bf16.mxu0 %v5271_v2 }
 0xcf8   :  { %v1113_v58 = vsel %vm327_vm4, %v1107_v55, %v1111_v56 }
 0xcf9   :  { %4321 = vmatmul.mubr.msk.f32.vlgmr.msra.gmra.mrb[10].mxu1 %vm444_vm5, %v1113_v58 }
 0xcfa   :  { %4838 = vmatpush3.bf16.msra.mxu1 %v5392_v7  ;;  %4567 = vmatprep.mubr.msk.f32.mxu1 %vm5272_vm2, %v5273_v9 }
 0xcfb   :  { %4839 = vmatprep.subr.bf16.mxu1 %v5271_v2 }
 0xcfe   :  { %4841 = vmatpush3.bf16.msra.mxu1 %v5401_v10 }
 0xcff   :  { %4843 = vmatprep.subr.bf16.mxu1 %v5434_v35 }
 0xdbc   :  { %v1297_v59 = vpop.f32.mrb[20].mxu0 }
 0xdbd   :  { %v4558_v60 = vpop.f32.mrb[21].mxu0  ;;  %v1298_v1 = vadd.f32 %v5419_v16, %v1297_v59 }
 0xdbf   :  { %v1301_v6 = vadd.f32 %v1298_v1, %v1228_v3 }
 0xdc1   :  { %v1302_v11 = vmul.f32 0.5, %v1301_v6 }
 0xdc3   :  { %5143 = vtanh.f32 %v1302_v11 }
 0xdcc   :  { %v1183_v61 = vpop.f32.mrb[10].mxu1 }
 0xdcd   :  { %v1184_v62 = vadd.f32 %v1183_v61, %v5530_v4  ;;  %v1185_v63 = vpop.f32.mrb[11].mxu1  ;;  %v5144_v8 = vpop.eup %5143 }
 0xdce   :  { %v1186_v0 = vadd.f32 %v1185_v63, %v5532_v5  ;;  %v1304_v12 = vmul.f32 0.5, %v5144_v8 }
 0xdcf   :  { %1189 = vrot.lane.b32.xlu1 %v1184_v62, %s5276_s26 }
 0xdd0   :  { %1206 = vrot.lane.b32.xlu0 %v1186_v0, %s5275_s20  ;;  %v1305_v17 = vadd.f32 0.5, %v1304_v12 }
 0xdd3   :  { %1307 = vrot.lane.b32.xlu1 %v1298_v1, %s5274_s2  ;;  %v1451_v1 = vld [vmem:[#allocation2 + $0x28] sm:$0xff] }
 0xe41   :  { %v1190_v13 = vpop.permute.xlu1 %1189 }
 0xe42   :  { %v1192_v14 = vadd.f32 %v1190_v13, %v1184_v62  ;;  %v1207_v25 = vpop.permute.xlu0 %1206 }
 0xe44   :  { %v1193_v15 = vmul.f32 0.5, %v1192_v14 }
 0xe45   :  { %v1308_v18 = vpop.permute.xlu1 %1307 }
 0xe46   :  { %5145 = vtanh.f32 %v1193_v15  ;;  %v1310_v20 = vmul.f32 %v1308_v18, %v1305_v17 }
 0xe48   :  { %1312 = vrot.lane.b32.xlu1 %v1310_v20, %s5274_s2 }
 0xe50   :  { %v5146_v22 = vpop.eup %5145 }
 0xe51   :  { %v1195_v23 = vmul.f32 0.5, %v5146_v22 }
 0xe53   :  { %v1196_v24 = vadd.f32 0.5, %v1195_v23 }
 0xe55   :  { %v1209_v26 = vmul.f32 %v1207_v25, %v1196_v24 }
 0xe57   :  { %1211 = vrot.lane.b32.xlu0 %v1209_v26, %s5274_s2 }
 0xe5b   :  { %1198 = vrot.lane.b32.xlu0 %v1186_v0, %s5276_s26 }
 0xeba   :  { %v1313_v27 = vpop.permute.xlu1 %1312 }
 0xebb   :  { %v1315_v28 = vadd.f32 %v1313_v27, %v1228_v3 }
 0xebd   :  { %5147 = vtanh.f32 %v1315_v28 }
 0xec7   :  { %v5148_v29 = vpop.eup %5147 }
 0xec8   :  { %v1317_v30 = vsub.f32 %v1104_v51, %v5148_v29 }
 0xec9   :  { %v1212_v31 = vpop.permute.xlu0 %1211 }
 0xeca   :  { %v1214_v32 = vadd.f32 %v1212_v31, %v1184_v62  ;;  %1319 = vrot.lane.b32.xlu0 %v1317_v30, %s5275_s20 }
 0xecc   :  { %5149 = vtanh.f32 %v1214_v32 }
 0xecd   :  { %v1199_v36 = vpop.permute.xlu0 %1198 }
 0xece   :  { %v1201_v37 = vadd.f32 %v1199_v36, %v1184_v62 }
 0xed0   :  { %v1202_v38 = vmul.f32 0.5, %v1201_v37 }
 0xed2   :  { %5151 = vtanh.f32 %v1202_v38 }
 0xed6   :  { %v5150_v33 = vpop.eup %5149 }
 0xed7   :  { %v1216_v34 = vsub.f32 %v5712_v21, %v5150_v33 }
 0xed9   :  { %1218 = vrot.lane.b32.xlu1 %v1216_v34, %s5275_s20 }
 0xedc   :  { %v5152_v43 = vpop.eup %5151 }
 0xedd   :  { %v1204_v44 = vmul.f32 0.5, %v5152_v43 }
 0xedf   :  { %v1205_v47 = vadd.f32 0.5, %v1204_v44 }
 0xf3c   :  { %v1320_v41 = vpop.permute.xlu0 %1319 }
 0xf3d   :  { %v1322_v42 = vmul.f32 %v1320_v41, %v1305_v17 }
 0xf3f   :  { %1324 = vrot.lane.b32.xlu0 %v1322_v42, %s5276_s26 }
 0xf4b   :  { %v1219_v19 = vpop.permute.xlu1 %1218 }
 0xf4c   :  { %v1221_v48 = vmul.f32 %v1219_v19, %v1205_v47 }
 0xf4e   :  { %1223 = vrot.lane.b32.xlu1 %v1221_v48, %s5276_s26 }
 0xfb1   :  { %v1325_v49 = vpop.permute.xlu0 %1324 }
 0xfb2   :  { %v1327_v50 = vadd.f32 %v5148_v29, %v1325_v49 }
 0xfb4   :  { %1329 = vrot.lane.b32.xlu1 %v1327_v50, %s5274_s2 }
 0xfc0   :  { %v1224_v51 = vpop.permute.xlu1 %1223 }
 0xfc1   :  { %v5749_v52 = vadd.f32 %v5150_v33, %v1224_v51 }
 0xfc3   :  { %1333 = vrot.lane.b32.xlu0 %v5749_v52, %s5275_s20 }
0x1026   :  { %v1330_v21 = vpop.permute.xlu1 %1329 }
0x1027   :  { %4568 = vmatmul.mubr.msk.f32.vlgmr.msra.gmra.mrb[12].mxu1 %vm327_vm4, %v1330_v21 }
0x1028   :  { %4845 = vmatpush1.bf16.msra.mxu1 %v5445_v39  ;;  %1627 = vmatprep.mubr.f32.mxu1 %v5273_v9 }
0x1029   :  { %4847 = vmatprep.subr.bf16.mxu1 %v5447_v40 }
0x102c   :  { %4849 = vmatpush1.bf16.msra.mxu1 %v5464_v45 }
0x102d   :  { %4851 = vmatprep.subr.bf16.mxu1 %v5468_v46 }
0x1030   :  { %4853 = vmatpush1.bf16.msra.mxu1 %v5484_v53 }
0x1031   :  { %4855 = vmatprep.subr.bf16.mxu1 %v5488_v54 }
0x1034   :  { %4857 = vmatpush1.bf16.msra.mxu1 %v5499_v57 }
0x1035   :  { %v1334_v55 = vpop.permute.xlu0 %1333  ;;  %4880 = vmatprep.subr.bf16.mxu1 %v5271_v2 }
0x1036   :  { %v1336_v56 = vsel %vm327_vm4, %v1330_v21, %v1334_v55 }
0x1037   :  { %4323 = vmatmul.mubr.msk.f32.vlgmr.msra.gmra.mrb[22].mxu0 %vm444_vm5, %v1336_v56 }
0x1038   :  { %4860 = vmatpush3.bf16.msra.mxu0 %v5392_v7  ;;  %4578 = vmatprep.mubr.msk.f32.mxu0 %vm5272_vm2, %v5273_v9 }
0x1039   :  { %4861 = vmatprep.subr.bf16.mxu0 %v5271_v2 }
0x103c   :  { %4863 = vmatpush3.bf16.msra.mxu0 %v5401_v10 }
0x103d   :  { %4865 = vmatprep.subr.bf16.mxu0 %v5434_v35 }
0x10fa   :  { %v1520_v58 = vpop.f32.mrb[12].mxu1 }
0x10fb   :  { %v4569_v59 = vpop.f32.mrb[13].mxu1  ;;  %v1521_v0 = vadd.f32 %v5419_v16, %v1520_v58 }
0x10fd   :  { %v1524_v3 = vadd.f32 %v1521_v0, %v1451_v1 }
0x10ff   :  { %v1525_v6 = vmul.f32 0.5, %v1524_v3 }
0x1101   :  { %5153 = vtanh.f32 %v1525_v6 }
0x110a   :  { %v1406_v60 = vpop.f32.mrb[22].mxu0 }
0x110b   :  { %v1407_v61 = vadd.f32 %v1406_v60, %v5530_v4  ;;  %v1408_v62 = vpop.f32.mrb[23].mxu0  ;;  %v5154_v11 = vpop.eup %5153 }
0x110c   :  { %v1409_v63 = vadd.f32 %v1408_v62, %v5532_v5  ;;  %v1527_v8 = vmul.f32 0.5, %v5154_v11  ;;  %v5818_v62 = vld [vmem:[%s6267_s4] ss:$0 sm:$0xff] }
0x110d   :  { %1412 = vrot.lane.b32.xlu1 %v1407_v61, %s5276_s26 }
0x110e   :  { %1429 = vrot.lane.b32.xlu0 %v1409_v63, %s5275_s20  ;;  %v1528_v15 = vadd.f32 0.5, %v1527_v8 }
0x1111   :  { %1530 = vrot.lane.b32.xlu1 %v1521_v0, %s5274_s2  ;;  %v1674_v0 = vld [vmem:[#allocation2 + $0x30] sm:$0xff] }
0x117f   :  { %v1413_v12 = vpop.permute.xlu1 %1412 }
0x1180   :  { %v1415_v13 = vadd.f32 %v1413_v12, %v1407_v61  ;;  %v1430_v23 = vpop.permute.xlu0 %1429 }
0x1182   :  { %v1416_v14 = vmul.f32 0.5, %v1415_v13 }
0x1183   :  { %v1531_v17 = vpop.permute.xlu1 %1530 }
0x1184   :  { %5155 = vtanh.f32 %v1416_v14  ;;  %v1533_v18 = vmul.f32 %v1531_v17, %v1528_v15 }
0x1186   :  { %1535 = vrot.lane.b32.xlu1 %v1533_v18, %s5274_s2 }
0x118e   :  { %v5156_v20 = vpop.eup %5155 }
0x118f   :  { %v1418_v22 = vmul.f32 0.5, %v5156_v20 }
0x1191   :  { %v1419_v16 = vadd.f32 0.5, %v1418_v22 }
0x1193   :  { %v1432_v24 = vmul.f32 %v1430_v23, %v1419_v16 }
0x1195   :  { %1434 = vrot.lane.b32.xlu0 %v1432_v24, %s5274_s2 }
0x1199   :  { %1421 = vrot.lane.b32.xlu0 %v1409_v63, %s5276_s26 }
0x11f8   :  { %v1536_v25 = vpop.permute.xlu1 %1535 }
0x11f9   :  { %v1538_v26 = vadd.f32 %v1536_v25, %v1451_v1 }
0x11fb   :  { %5157 = vtanh.f32 %v1538_v26 }
0x1205   :  { %v5158_v27 = vpop.eup %5157 }
0x1206   :  { %v1540_v28 = vsub.f32 %v1327_v50, %v5158_v27 }
0x1207   :  { %v1435_v29 = vpop.permute.xlu0 %1434 }
0x1208   :  { %v1437_v30 = vadd.f32 %v1435_v29, %v1407_v61  ;;  %1542 = vrot.lane.b32.xlu0 %v1540_v28, %s5275_s20 }
0x120a   :  { %5159 = vtanh.f32 %v1437_v30 }
0x120b   :  { %v1422_v33 = vpop.permute.xlu0 %1421 }
0x120c   :  { %v1424_v34 = vadd.f32 %v1422_v33, %v1407_v61 }
0x120e   :  { %v1425_v36 = vmul.f32 0.5, %v1424_v34 }
0x1210   :  { %5161 = vtanh.f32 %v1425_v36 }
0x1214   :  { %v5160_v31 = vpop.eup %5159 }
0x1215   :  { %v1439_v32 = vsub.f32 %v5749_v52, %v5160_v31 }
0x1217   :  { %1441 = vrot.lane.b32.xlu1 %v1439_v32, %s5275_s20 }
0x121a   :  { %v5162_v41 = vpop.eup %5161 }
0x121b   :  { %v1427_v42 = vmul.f32 0.5, %v5162_v41 }
0x121d   :  { %v1428_v43 = vadd.f32 0.5, %v1427_v42 }
0x127a   :  { %v1543_v37 = vpop.permute.xlu0 %1542 }
0x127b   :  { %v1545_v38 = vmul.f32 %v1543_v37, %v1528_v15 }
0x127d   :  { %1547 = vrot.lane.b32.xlu0 %v1545_v38, %s5276_s26 }
0x1289   :  { %v1442_v44 = vpop.permute.xlu1 %1441 }
0x128a   :  { %v1444_v47 = vmul.f32 %v1442_v44, %v1428_v43 }
0x128c   :  { %1446 = vrot.lane.b32.xlu1 %v1444_v47, %s5276_s26 }
0x12ef   :  { %v1548_v19 = vpop.permute.xlu0 %1547 }
0x12f0   :  { %v5785_v48 = vadd.f32 %v5158_v27, %v1548_v19 }
0x12f2   :  { %1552 = vrot.lane.b32.xlu1 %v5785_v48, %s5274_s2 }
0x12fe   :  { %v1447_v49 = vpop.permute.xlu1 %1446 }
0x12ff   :  { %v5789_v50 = vadd.f32 %v5160_v31, %v1447_v49 }
0x1301   :  { %1556 = vrot.lane.b32.xlu0 %v5789_v50, %s5275_s20 }
0x1364   :  { %v1553_v51 = vpop.permute.xlu1 %1552 }
0x1365   :  { %4579 = vmatmul.mubr.msk.f32.vlgmr.msra.gmra.mrb[24].mxu0 %vm327_vm4, %v1553_v51 }
0x1366   :  { %4867 = vmatpush1.bf16.msra.mxu0 %v5445_v39  ;;  %1850 = vmatprep.mubr.f32.mxu0 %v5273_v9 }
0x1367   :  { %4869 = vmatprep.subr.bf16.mxu0 %v5447_v40 }
0x136a   :  { %4871 = vmatpush1.bf16.msra.mxu0 %v5464_v45 }
0x136b   :  { %4873 = vmatprep.subr.bf16.mxu0 %v5468_v46 }
0x136e   :  { %4875 = vmatpush1.bf16.msra.mxu0 %v5484_v53 }
0x136f   :  { %4877 = vmatprep.subr.bf16.mxu0 %v5488_v54 }
0x1372   :  { %4879 = vmatpush1.bf16.msra.mxu0 %v5499_v57 }
0x1373   :  { %v1557_v52 = vpop.permute.xlu0 %1556  ;;  %4902 = vmatprep.subr.bf16.mxu0 %v5271_v2 }
0x1374   :  { %v1559_v21 = vsel %vm327_vm4, %v1553_v51, %v1557_v52 }
0x1375   :  { %4325 = vmatmul.mubr.msk.f32.vlgmr.msra.gmra.mrb[14].mxu1 %vm444_vm5, %v1559_v21 }
0x1376   :  { %4882 = vmatpush3.bf16.msra.mxu1 %v5392_v7  ;;  %4589 = vmatprep.mubr.msk.f32.mxu1 %vm5272_vm2, %v5273_v9 }
0x1377   :  { %4883 = vmatprep.subr.bf16.mxu1 %v5271_v2 }
0x137a   :  { %4885 = vmatpush3.bf16.msra.mxu1 %v5401_v10 }
0x137b   :  { %4887 = vmatprep.subr.bf16.mxu1 %v5434_v35 }
0x1438   :  { %v1743_v55 = vpop.f32.mrb[24].mxu0 }
0x1439   :  { %v4580_v56 = vpop.f32.mrb[25].mxu0  ;;  %v1744_v63 = vadd.f32 %v5818_v62, %v1743_v55 }
0x143b   :  { %v1747_v1 = vadd.f32 %v1744_v63, %v1674_v0 }
0x143d   :  { %v1748_v3 = vmul.f32 0.5, %v1747_v1 }
0x143f   :  { %5163 = vtanh.f32 %v1748_v3 }
0x1448   :  { %v1629_v58 = vpop.f32.mrb[14].mxu1 }
0x1449   :  { %v1630_v59 = vadd.f32 %v1629_v58, %v5530_v4  ;;  %v1631_v60 = vpop.f32.mrb[15].mxu1  ;;  %v5164_v6 = vpop.eup %5163 }
0x144a   :  { %v1632_v61 = vadd.f32 %v1631_v60, %v5532_v5  ;;  %v1750_v11 = vmul.f32 0.5, %v5164_v6 }
0x144b   :  { %1635 = vrot.lane.b32.xlu1 %v1630_v59, %s5276_s26 }
0x144c   :  { %1652 = vrot.lane.b32.xlu0 %v1632_v61, %s5275_s20  ;;  %v1751_v14 = vadd.f32 0.5, %v1750_v11 }
0x144f   :  { %1753 = vrot.lane.b32.xlu1 %v1744_v63, %s5274_s2  ;;  %v1897_v63 = vld [vmem:[#allocation2 + $0x38] sm:$0xff] }
0x14bd   :  { %v1636_v8 = vpop.permute.xlu1 %1635 }
0x14be   :  { %v1638_v12 = vadd.f32 %v1636_v8, %v1630_v59  ;;  %v1653_v16 = vpop.permute.xlu0 %1652 }
0x14c0   :  { %v1639_v13 = vmul.f32 0.5, %v1638_v12 }
0x14c1   :  { %v1754_v15 = vpop.permute.xlu1 %1753 }
0x14c2   :  { %5165 = vtanh.f32 %v1639_v13  ;;  %v1756_v17 = vmul.f32 %v1754_v15, %v1751_v14 }
0x14c4   :  { %1758 = vrot.lane.b32.xlu1 %v1756_v17, %s5274_s2 }
0x14cc   :  { %v5166_v18 = vpop.eup %5165 }
0x14cd   :  { %v1641_v20 = vmul.f32 0.5, %v5166_v18 }
0x14cf   :  { %v1642_v22 = vadd.f32 0.5, %v1641_v20 }
0x14d1   :  { %v1655_v23 = vmul.f32 %v1653_v16, %v1642_v22 }
0x14d3   :  { %1657 = vrot.lane.b32.xlu0 %v1655_v23, %s5274_s2 }
0x14d7   :  { %1644 = vrot.lane.b32.xlu0 %v1632_v61, %s5276_s26 }
0x1536   :  { %v1759_v24 = vpop.permute.xlu1 %1758 }
0x1537   :  { %v1761_v25 = vadd.f32 %v1759_v24, %v1674_v0 }
0x1539   :  { %5167 = vtanh.f32 %v1761_v25 }
0x1543   :  { %v5168_v26 = vpop.eup %5167 }
0x1544   :  { %v1763_v27 = vsub.f32 %v5785_v48, %v5168_v26 }
0x1545   :  { %v1658_v28 = vpop.permute.xlu0 %1657 }
0x1546   :  { %v1660_v29 = vadd.f32 %v1658_v28, %v1630_v59  ;;  %1765 = vrot.lane.b32.xlu0 %v1763_v27, %s5275_s20 }
0x1548   :  { %5169 = vtanh.f32 %v1660_v29 }
0x1549   :  { %v1645_v32 = vpop.permute.xlu0 %1644 }
0x154a   :  { %v1647_v33 = vadd.f32 %v1645_v32, %v1630_v59 }
0x154c   :  { %v1648_v34 = vmul.f32 0.5, %v1647_v33 }
0x154e   :  { %5171 = vtanh.f32 %v1648_v34 }
0x1552   :  { %v5170_v30 = vpop.eup %5169 }
0x1553   :  { %v1662_v31 = vsub.f32 %v5789_v50, %v5170_v30 }
0x1555   :  { %1664 = vrot.lane.b32.xlu1 %v1662_v31, %s5275_s20 }
0x1558   :  { %v5172_v38 = vpop.eup %5171 }
0x1559   :  { %v1650_v41 = vmul.f32 0.5, %v5172_v38 }
0x155b   :  { %v1651_v42 = vadd.f32 0.5, %v1650_v41 }
0x15b8   :  { %v1766_v36 = vpop.permute.xlu0 %1765 }
0x15b9   :  { %v1768_v37 = vmul.f32 %v1766_v36, %v1751_v14 }
0x15bb   :  { %1770 = vrot.lane.b32.xlu0 %v1768_v37, %s5276_s26 }
0x15c7   :  { %v1665_v43 = vpop.permute.xlu1 %1664 }
0x15c8   :  { %v1667_v44 = vmul.f32 %v1665_v43, %v1651_v42 }
0x15ca   :  { %1669 = vrot.lane.b32.xlu1 %v1667_v44, %s5276_s26 }
0x162d   :  { %v1771_v47 = vpop.permute.xlu0 %1770 }
0x162e   :  { %v1773_v19 = vadd.f32 %v5168_v26, %v1771_v47 }
0x1630   :  { %1775 = vrot.lane.b32.xlu1 %v1773_v19, %s5274_s2 }
0x163c   :  { %v1670_v48 = vpop.permute.xlu1 %1669 }
0x163d   :  { %v5832_v49 = vadd.f32 %v5170_v30, %v1670_v48 }
0x163f   :  { %1779 = vrot.lane.b32.xlu0 %v5832_v49, %s5275_s20 }
0x16a2   :  { %v1776_v50 = vpop.permute.xlu1 %1775 }
0x16a3   :  { %4590 = vmatmul.mubr.msk.f32.vlgmr.msra.gmra.mrb[16].mxu1 %vm327_vm4, %v1776_v50 }
0x16a4   :  { %4889 = vmatpush1.bf16.msra.mxu1 %v5445_v39  ;;  %2073 = vmatprep.mubr.f32.mxu1 %v5273_v9 }
0x16a5   :  { %4891 = vmatprep.subr.bf16.mxu1 %v5447_v40 }
0x16a8   :  { %4893 = vmatpush1.bf16.msra.mxu1 %v5464_v45 }
0x16a9   :  { %4895 = vmatprep.subr.bf16.mxu1 %v5468_v46 }
0x16ac   :  { %4897 = vmatpush1.bf16.msra.mxu1 %v5484_v53 }
0x16ad   :  { %4899 = vmatprep.subr.bf16.mxu1 %v5488_v54 }
0x16b0   :  { %4901 = vmatpush1.bf16.msra.mxu1 %v5499_v57 }
0x16b1   :  { %v1780_v51 = vpop.permute.xlu0 %1779  ;;  %4924 = vmatprep.subr.bf16.mxu1 %v5271_v2 }
0x16b2   :  { %v1782_v52 = vsel %vm327_vm4, %v1776_v50, %v1780_v51 }
0x16b3   :  { %4327 = vmatmul.mubr.msk.f32.vlgmr.msra.gmra.mrb[26].mxu0 %vm444_vm5, %v1782_v52 }
0x16b4   :  { %4904 = vmatpush3.bf16.msra.mxu0 %v5392_v7  ;;  %4600 = vmatprep.mubr.msk.f32.mxu0 %vm5272_vm2, %v5273_v9 }
0x16b5   :  { %4905 = vmatprep.subr.bf16.mxu0 %v5271_v2 }
0x16b8   :  { %4907 = vmatpush3.bf16.msra.mxu0 %v5401_v10 }
0x16b9   :  { %4909 = vmatprep.subr.bf16.mxu0 %v5434_v35 }
0x1776   :  { %v1966_v21 = vpop.f32.mrb[16].mxu1 }
0x1777   :  { %v4591_v55 = vpop.f32.mrb[17].mxu1  ;;  %v1967_v61 = vadd.f32 %v5818_v62, %v1966_v21 }
0x1779   :  { %v1970_v0 = vadd.f32 %v1967_v61, %v1897_v63 }
0x177b   :  { %v1971_v1 = vmul.f32 0.5, %v1970_v0 }
0x177d   :  { %5173 = vtanh.f32 %v1971_v1 }
0x1786   :  { %v1852_v56 = vpop.f32.mrb[26].mxu0 }
0x1787   :  { %v1853_v58 = vadd.f32 %v1852_v56, %v5530_v4  ;;  %v1854_v59 = vpop.f32.mrb[27].mxu0  ;;  %v5174_v3 = vpop.eup %5173 }
0x1788   :  { %v1855_v60 = vadd.f32 %v1854_v59, %v5532_v5  ;;  %v1973_v6 = vmul.f32 0.5, %v5174_v3 }
0x1789   :  { %1858 = vrot.lane.b32.xlu1 %v1853_v58, %s5276_s26 }
0x178a   :  { %1875 = vrot.lane.b32.xlu0 %v1855_v60, %s5275_s20  ;;  %v1974_v13 = vadd.f32 0.5, %v1973_v6 }
0x178d   :  { %1976 = vrot.lane.b32.xlu1 %v1967_v61, %s5274_s2  ;;  %v2120_v61 = vld [vmem:[#allocation2 + $0x40] sm:$0xff] }
0x17fb   :  { %v1859_v11 = vpop.permute.xlu1 %1858 }
0x17fc   :  { %v1861_v8 = vadd.f32 %v1859_v11, %v1853_v58  ;;  %v1876_v22 = vpop.permute.xlu0 %1875 }
0x17fe   :  { %v1862_v12 = vmul.f32 0.5, %v1861_v8 }
0x17ff   :  { %v1977_v14 = vpop.permute.xlu1 %1976 }
0x1800   :  { %5175 = vtanh.f32 %v1862_v12  ;;  %v1979_v15 = vmul.f32 %v1977_v14, %v1974_v13 }
0x1802   :  { %1981 = vrot.lane.b32.xlu1 %v1979_v15, %s5274_s2 }
0x180a   :  { %v5176_v17 = vpop.eup %5175 }
0x180b   :  { %v1864_v18 = vmul.f32 0.5, %v5176_v17 }
0x180d   :  { %v1865_v20 = vadd.f32 0.5, %v1864_v18 }
0x180f   :  { %v1878_v16 = vmul.f32 %v1876_v22, %v1865_v20 }
0x1811   :  { %1880 = vrot.lane.b32.xlu0 %v1878_v16, %s5274_s2 }
0x1815   :  { %1867 = vrot.lane.b32.xlu0 %v1855_v60, %s5276_s26 }
0x1874   :  { %v1982_v23 = vpop.permute.xlu1 %1981 }
0x1875   :  { %v1984_v24 = vadd.f32 %v1982_v23, %v1897_v63 }
0x1877   :  { %5177 = vtanh.f32 %v1984_v24 }
0x1881   :  { %v5178_v25 = vpop.eup %5177 }
0x1882   :  { %v1986_v26 = vsub.f32 %v1773_v19, %v5178_v25 }
0x1883   :  { %v1881_v27 = vpop.permute.xlu0 %1880 }
0x1884   :  { %v1883_v28 = vadd.f32 %v1881_v27, %v1853_v58  ;;  %1988 = vrot.lane.b32.xlu0 %v1986_v26, %s5275_s20 }
0x1886   :  { %5179 = vtanh.f32 %v1883_v28 }
0x1887   :  { %v1868_v31 = vpop.permute.xlu0 %1867 }
0x1888   :  { %v1870_v32 = vadd.f32 %v1868_v31, %v1853_v58 }
0x188a   :  { %v1871_v33 = vmul.f32 0.5, %v1870_v32 }
0x188c   :  { %5181 = vtanh.f32 %v1871_v33 }
0x1890   :  { %v5180_v29 = vpop.eup %5179 }
0x1891   :  { %v1885_v30 = vsub.f32 %v5832_v49, %v5180_v29 }
0x1893   :  { %1887 = vrot.lane.b32.xlu1 %v1885_v30, %s5275_s20 }
0x1896   :  { %v5182_v37 = vpop.eup %5181 }
0x1897   :  { %v1873_v38 = vmul.f32 0.5, %v5182_v37 }
0x1899   :  { %v1874_v41 = vadd.f32 0.5, %v1873_v38 }
0x18f6   :  { %v1989_v34 = vpop.permute.xlu0 %1988 }
0x18f7   :  { %v1991_v36 = vmul.f32 %v1989_v34, %v1974_v13 }
0x18f9   :  { %1993 = vrot.lane.b32.xlu0 %v1991_v36, %s5276_s26 }
0x1905   :  { %v1888_v42 = vpop.permute.xlu1 %1887 }
0x1906   :  { %v1890_v43 = vmul.f32 %v1888_v42, %v1874_v41 }
0x1908   :  { %1892 = vrot.lane.b32.xlu1 %v1890_v43, %s5276_s26 }
0x196b   :  { %v1994_v44 = vpop.permute.xlu0 %1993 }
0x196c   :  { %v1996_v47 = vadd.f32 %v5178_v25, %v1994_v44 }
0x196e   :  { %1998 = vrot.lane.b32.xlu1 %v1996_v47, %s5274_s2 }
0x197a   :  { %v1893_v19 = vpop.permute.xlu1 %1892 }
0x197b   :  { %v5869_v48 = vadd.f32 %v5180_v29, %v1893_v19 }
0x197d   :  { %2002 = vrot.lane.b32.xlu0 %v5869_v48, %s5275_s20 }
0x19e0   :  { %v1999_v49 = vpop.permute.xlu1 %1998 }
0x19e1   :  { %4601 = vmatmul.mubr.msk.f32.vlgmr.msra.gmra.mrb[28].mxu0 %vm327_vm4, %v1999_v49 }
0x19e2   :  { %4911 = vmatpush1.bf16.msra.mxu0 %v5445_v39  ;;  %2296 = vmatprep.mubr.f32.mxu0 %v5273_v9 }
0x19e3   :  { %4913 = vmatprep.subr.bf16.mxu0 %v5447_v40 }
0x19e6   :  { %4915 = vmatpush1.bf16.msra.mxu0 %v5464_v45 }
0x19e7   :  { %4917 = vmatprep.subr.bf16.mxu0 %v5468_v46 }
0x19ea   :  { %4919 = vmatpush1.bf16.msra.mxu0 %v5484_v53 }
0x19eb   :  { %4921 = vmatprep.subr.bf16.mxu0 %v5488_v54 }
0x19ee   :  { %4923 = vmatpush1.bf16.msra.mxu0 %v5499_v57 }
0x19ef   :  { %v2003_v50 = vpop.permute.xlu0 %2002  ;;  %4946 = vmatprep.subr.bf16.mxu0 %v5271_v2 }
0x19f0   :  { %v2005_v51 = vsel %vm327_vm4, %v1999_v49, %v2003_v50 }
0x19f1   :  { %4329 = vmatmul.mubr.msk.f32.vlgmr.msra.gmra.mrb[18].mxu1 %vm444_vm5, %v2005_v51 }
0x19f2   :  { %4926 = vmatpush3.bf16.msra.mxu1 %v5392_v7  ;;  %4611 = vmatprep.mubr.msk.f32.mxu1 %vm5272_vm2, %v5273_v9 }
0x19f3   :  { %4927 = vmatprep.subr.bf16.mxu1 %v5271_v2 }
0x19f6   :  { %4929 = vmatpush3.bf16.msra.mxu1 %v5401_v10 }
0x19f7   :  { %4931 = vmatprep.subr.bf16.mxu1 %v5434_v35 }
0x1ab4   :  { %v2189_v52 = vpop.f32.mrb[28].mxu0 }
0x1ab5   :  { %v4602_v21 = vpop.f32.mrb[29].mxu0  ;;  %v2190_v60 = vadd.f32 %v5818_v62, %v2189_v52 }
0x1ab7   :  { %v2193_v63 = vadd.f32 %v2190_v60, %v2120_v61 }
0x1ab9   :  { %v2194_v0 = vmul.f32 0.5, %v2193_v63 }
0x1abb   :  { %5183 = vtanh.f32 %v2194_v0 }
0x1ac4   :  { %v2075_v55 = vpop.f32.mrb[18].mxu1 }
0x1ac5   :  { %v2076_v56 = vadd.f32 %v2075_v55, %v5530_v4  ;;  %v2077_v58 = vpop.f32.mrb[19].mxu1  ;;  %v5184_v1 = vpop.eup %5183 }
0x1ac6   :  { %v2078_v59 = vadd.f32 %v2077_v58, %v5532_v5  ;;  %v2196_v3 = vmul.f32 0.5, %v5184_v1 }
0x1ac7   :  { %2081 = vrot.lane.b32.xlu1 %v2076_v56, %s5276_s26 }
0x1ac8   :  { %2098 = vrot.lane.b32.xlu0 %v2078_v59, %s5275_s20  ;;  %v2197_v12 = vadd.f32 0.5, %v2196_v3 }
0x1acb   :  { %2199 = vrot.lane.b32.xlu1 %v2190_v60, %s5274_s2  ;;  %v2343_v60 = vld [vmem:[#allocation2 + $0x48] sm:$0xff] }
0x1b39   :  { %v2082_v6 = vpop.permute.xlu1 %2081 }
0x1b3a   :  { %v2084_v11 = vadd.f32 %v2082_v6, %v2076_v56  ;;  %v2099_v20 = vpop.permute.xlu0 %2098 }
0x1b3c   :  { %v2085_v8 = vmul.f32 0.5, %v2084_v11 }
0x1b3d   :  { %v2200_v13 = vpop.permute.xlu1 %2199 }
0x1b3e   :  { %5185 = vtanh.f32 %v2085_v8  ;;  %v2202_v14 = vmul.f32 %v2200_v13, %v2197_v12 }
0x1b40   :  { %2204 = vrot.lane.b32.xlu1 %v2202_v14, %s5274_s2 }
0x1b48   :  { %v5186_v15 = vpop.eup %5185 }
0x1b49   :  { %v2087_v17 = vmul.f32 0.5, %v5186_v15 }
0x1b4b   :  { %v2088_v18 = vadd.f32 0.5, %v2087_v17 }
0x1b4d   :  { %v2101_v22 = vmul.f32 %v2099_v20, %v2088_v18 }
0x1b4f   :  { %2103 = vrot.lane.b32.xlu0 %v2101_v22, %s5274_s2 }
0x1b53   :  { %2090 = vrot.lane.b32.xlu0 %v2078_v59, %s5276_s26 }
0x1bb2   :  { %v2205_v16 = vpop.permute.xlu1 %2204 }
0x1bb3   :  { %v2207_v23 = vadd.f32 %v2205_v16, %v2120_v61 }
0x1bb5   :  { %5187 = vtanh.f32 %v2207_v23 }
0x1bbf   :  { %v5188_v24 = vpop.eup %5187 }
0x1bc0   :  { %v2209_v25 = vsub.f32 %v1996_v47, %v5188_v24 }
0x1bc1   :  { %v2104_v26 = vpop.permute.xlu0 %2103 }
0x1bc2   :  { %v2106_v27 = vadd.f32 %v2104_v26, %v2076_v56  ;;  %2211 = vrot.lane.b32.xlu0 %v2209_v25, %s5275_s20 }
0x1bc4   :  { %5189 = vtanh.f32 %v2106_v27 }
0x1bc5   :  { %v2091_v30 = vpop.permute.xlu0 %2090 }
0x1bc6   :  { %v2093_v31 = vadd.f32 %v2091_v30, %v2076_v56 }
0x1bc8   :  { %v2094_v32 = vmul.f32 0.5, %v2093_v31 }
0x1bca   :  { %5191 = vtanh.f32 %v2094_v32 }
0x1bce   :  { %v5190_v28 = vpop.eup %5189 }
0x1bcf   :  { %v2108_v29 = vsub.f32 %v5869_v48, %v5190_v28 }
0x1bd1   :  { %2110 = vrot.lane.b32.xlu1 %v2108_v29, %s5275_s20 }
0x1bd4   :  { %v5192_v36 = vpop.eup %5191 }
0x1bd5   :  { %v2096_v37 = vmul.f32 0.5, %v5192_v36 }
0x1bd7   :  { %v2097_v38 = vadd.f32 0.5, %v2096_v37 }
0x1c34   :  { %v2212_v33 = vpop.permute.xlu0 %2211 }
0x1c35   :  { %v2214_v34 = vmul.f32 %v2212_v33, %v2197_v12 }
0x1c37   :  { %2216 = vrot.lane.b32.xlu0 %v2214_v34, %s5276_s26 }
0x1c43   :  { %v2111_v41 = vpop.permute.xlu1 %2110 }
0x1c44   :  { %v2113_v42 = vmul.f32 %v2111_v41, %v2097_v38 }
0x1c46   :  { %2115 = vrot.lane.b32.xlu1 %v2113_v42, %s5276_s26 }
0x1ca9   :  { %v2217_v43 = vpop.permute.xlu0 %2216 }
0x1caa   :  { %v2219_v44 = vadd.f32 %v5188_v24, %v2217_v43 }
0x1cac   :  { %2221 = vrot.lane.b32.xlu1 %v2219_v44, %s5274_s2 }
0x1cb8   :  { %v2116_v47 = vpop.permute.xlu1 %2115 }
0x1cb9   :  { %v5906_v19 = vadd.f32 %v5190_v28, %v2116_v47 }
0x1cbb   :  { %2225 = vrot.lane.b32.xlu0 %v5906_v19, %s5275_s20 }
0x1d1e   :  { %v2222_v48 = vpop.permute.xlu1 %2221 }
0x1d1f   :  { %4612 = vmatmul.mubr.msk.f32.vlgmr.msra.gmra.mrb[20].mxu1 %vm327_vm4, %v2222_v48 }
0x1d20   :  { %4933 = vmatpush1.bf16.msra.mxu1 %v5445_v39  ;;  %2519 = vmatprep.mubr.f32.mxu1 %v5273_v9 }
0x1d21   :  { %4935 = vmatprep.subr.bf16.mxu1 %v5447_v40 }
0x1d24   :  { %4937 = vmatpush1.bf16.msra.mxu1 %v5464_v45 }
0x1d25   :  { %4939 = vmatprep.subr.bf16.mxu1 %v5468_v46 }
0x1d28   :  { %4941 = vmatpush1.bf16.msra.mxu1 %v5484_v53 }
0x1d29   :  { %4943 = vmatprep.subr.bf16.mxu1 %v5488_v54 }
0x1d2c   :  { %4945 = vmatpush1.bf16.msra.mxu1 %v5499_v57 }
0x1d2d   :  { %v2226_v49 = vpop.permute.xlu0 %2225  ;;  %4968 = vmatprep.subr.bf16.mxu1 %v5271_v2 }
0x1d2e   :  { %v2228_v50 = vsel %vm327_vm4, %v2222_v48, %v2226_v49 }
0x1d2f   :  { %4331 = vmatmul.mubr.msk.f32.vlgmr.msra.gmra.mrb[30].mxu0 %vm444_vm5, %v2228_v50 }
0x1d30   :  { %4948 = vmatpush3.bf16.msra.mxu0 %v5392_v7  ;;  %4622 = vmatprep.mubr.msk.f32.mxu0 %vm5272_vm2, %v5273_v9 }
0x1d31   :  { %4949 = vmatprep.subr.bf16.mxu0 %v5271_v2 }
0x1d34   :  { %4951 = vmatpush3.bf16.msra.mxu0 %v5401_v10 }
0x1d35   :  { %4953 = vmatprep.subr.bf16.mxu0 %v5434_v35 }
0x1df2   :  { %v2412_v51 = vpop.f32.mrb[20].mxu1 }
0x1df3   :  { %v4613_v52 = vpop.f32.mrb[21].mxu1  ;;  %v2413_v59 = vadd.f32 %v5818_v62, %v2412_v51 }
0x1df5   :  { %v2416_v61 = vadd.f32 %v2413_v59, %v2343_v60 }
0x1df7   :  { %v2417_v63 = vmul.f32 0.5, %v2416_v61 }
0x1df9   :  { %5193 = vtanh.f32 %v2417_v63 }
0x1e02   :  { %v2298_v21 = vpop.f32.mrb[30].mxu0 }
0x1e03   :  { %v2299_v55 = vadd.f32 %v2298_v21, %v5530_v4  ;;  %v2300_v56 = vpop.f32.mrb[31].mxu0  ;;  %v5194_v0 = vpop.eup %5193 }
0x1e04   :  { %v2301_v58 = vadd.f32 %v2300_v56, %v5532_v5  ;;  %v2419_v1 = vmul.f32 0.5, %v5194_v0 }
0x1e05   :  { %2304 = vrot.lane.b32.xlu1 %v2299_v55, %s5276_s26 }
0x1e06   :  { %2321 = vrot.lane.b32.xlu0 %v2301_v58, %s5275_s20  ;;  %v2420_v8 = vadd.f32 0.5, %v2419_v1 }
0x1e09   :  { %2422 = vrot.lane.b32.xlu1 %v2413_v59, %s5274_s2  ;;  %v2566_v59 = vld [vmem:[#allocation2 + $0x50] sm:$0xff] }
0x1e77   :  { %v2305_v3 = vpop.permute.xlu1 %2304 }
0x1e78   :  { %v2307_v6 = vadd.f32 %v2305_v3, %v2299_v55  ;;  %v2322_v18 = vpop.permute.xlu0 %2321 }
0x1e7a   :  { %v2308_v11 = vmul.f32 0.5, %v2307_v6 }
0x1e7b   :  { %v2423_v12 = vpop.permute.xlu1 %2422 }
0x1e7c   :  { %5195 = vtanh.f32 %v2308_v11  ;;  %v2425_v13 = vmul.f32 %v2423_v12, %v2420_v8 }
0x1e7e   :  { %2427 = vrot.lane.b32.xlu1 %v2425_v13, %s5274_s2 }
0x1e86   :  { %v5196_v14 = vpop.eup %5195 }
0x1e87   :  { %v2310_v15 = vmul.f32 0.5, %v5196_v14 }
0x1e89   :  { %v2311_v17 = vadd.f32 0.5, %v2310_v15 }
0x1e8b   :  { %v2324_v20 = vmul.f32 %v2322_v18, %v2311_v17 }
0x1e8d   :  { %2326 = vrot.lane.b32.xlu0 %v2324_v20, %s5274_s2 }
0x1e91   :  { %2313 = vrot.lane.b32.xlu0 %v2301_v58, %s5276_s26 }
0x1ef0   :  { %v2428_v22 = vpop.permute.xlu1 %2427 }
0x1ef1   :  { %v2430_v16 = vadd.f32 %v2428_v22, %v2343_v60 }
0x1ef3   :  { %5197 = vtanh.f32 %v2430_v16 }
0x1efd   :  { %v5198_v23 = vpop.eup %5197 }
0x1efe   :  { %v2432_v24 = vsub.f32 %v2219_v44, %v5198_v23 }
0x1eff   :  { %v2327_v25 = vpop.permute.xlu0 %2326 }
0x1f00   :  { %v2329_v26 = vadd.f32 %v2327_v25, %v2299_v55  ;;  %2434 = vrot.lane.b32.xlu0 %v2432_v24, %s5275_s20 }
0x1f02   :  { %5199 = vtanh.f32 %v2329_v26 }
0x1f03   :  { %v2314_v29 = vpop.permute.xlu0 %2313 }
0x1f04   :  { %v2316_v30 = vadd.f32 %v2314_v29, %v2299_v55 }
0x1f06   :  { %v2317_v31 = vmul.f32 0.5, %v2316_v30 }
0x1f08   :  { %5201 = vtanh.f32 %v2317_v31 }
0x1f0c   :  { %v5200_v27 = vpop.eup %5199 }
0x1f0d   :  { %v2331_v28 = vsub.f32 %v5906_v19, %v5200_v27 }
0x1f0f   :  { %2333 = vrot.lane.b32.xlu1 %v2331_v28, %s5275_s20 }
0x1f12   :  { %v5202_v34 = vpop.eup %5201 }
0x1f13   :  { %v2319_v36 = vmul.f32 0.5, %v5202_v34 }
0x1f15   :  { %v2320_v37 = vadd.f32 0.5, %v2319_v36 }
0x1f72   :  { %v2435_v32 = vpop.permute.xlu0 %2434 }
0x1f73   :  { %v2437_v33 = vmul.f32 %v2435_v32, %v2420_v8 }
0x1f75   :  { %2439 = vrot.lane.b32.xlu0 %v2437_v33, %s5276_s26 }
0x1f81   :  { %v2334_v38 = vpop.permute.xlu1 %2333 }
0x1f82   :  { %v2336_v41 = vmul.f32 %v2334_v38, %v2320_v37 }
0x1f84   :  { %2338 = vrot.lane.b32.xlu1 %v2336_v41, %s5276_s26 }
0x1fe7   :  { %v2440_v42 = vpop.permute.xlu0 %2439 }
0x1fe8   :  { %v2442_v43 = vadd.f32 %v5198_v23, %v2440_v42 }
0x1fea   :  { %2444 = vrot.lane.b32.xlu1 %v2442_v43, %s5274_s2 }
0x1ff6   :  { %v2339_v44 = vpop.permute.xlu1 %2338 }
0x1ff7   :  { %v5943_v47 = vadd.f32 %v5200_v27, %v2339_v44 }
0x1ff9   :  { %2448 = vrot.lane.b32.xlu0 %v5943_v47, %s5275_s20 }
0x205c   :  { %v2445_v19 = vpop.permute.xlu1 %2444 }
0x205d   :  { %4623 = vmatmul.mubr.msk.f32.vlgmr.msra.gmra.mrb[32].mxu0 %vm327_vm4, %v2445_v19 }
0x205e   :  { %4955 = vmatpush1.bf16.msra.mxu0 %v5445_v39  ;;  %2742 = vmatprep.mubr.f32.mxu0 %v5273_v9 }
0x205f   :  { %4957 = vmatprep.subr.bf16.mxu0 %v5447_v40 }
0x2062   :  { %4959 = vmatpush1.bf16.msra.mxu0 %v5464_v45 }
0x2063   :  { %4961 = vmatprep.subr.bf16.mxu0 %v5468_v46 }
0x2066   :  { %4963 = vmatpush1.bf16.msra.mxu0 %v5484_v53 }
0x2067   :  { %4965 = vmatprep.subr.bf16.mxu0 %v5488_v54 }
0x206a   :  { %4967 = vmatpush1.bf16.msra.mxu0 %v5499_v57 }
0x206b   :  { %v2449_v48 = vpop.permute.xlu0 %2448  ;;  %4990 = vmatprep.subr.bf16.mxu0 %v5271_v2 }
0x206c   :  { %v2451_v49 = vsel %vm327_vm4, %v2445_v19, %v2449_v48 }
0x206d   :  { %4333 = vmatmul.mubr.msk.f32.vlgmr.msra.gmra.mrb[22].mxu1 %vm444_vm5, %v2451_v49 }
0x206e   :  { %4970 = vmatpush3.bf16.msra.mxu1 %v5392_v7  ;;  %4633 = vmatprep.mubr.msk.f32.mxu1 %vm5272_vm2, %v5273_v9 }
0x206f   :  { %4971 = vmatprep.subr.bf16.mxu1 %v5271_v2 }
0x2072   :  { %4973 = vmatpush3.bf16.msra.mxu1 %v5401_v10 }
0x2073   :  { %4975 = vmatprep.subr.bf16.mxu1 %v5434_v35 }
0x2130   :  { %v2635_v50 = vpop.f32.mrb[32].mxu0 }
0x2131   :  { %v4624_v51 = vpop.f32.mrb[33].mxu0  ;;  %v2636_v58 = vadd.f32 %v5818_v62, %v2635_v50 }
0x2133   :  { %v2639_v60 = vadd.f32 %v2636_v58, %v2566_v59 }
0x2135   :  { %v2640_v61 = vmul.f32 0.5, %v2639_v60 }
0x2137   :  { %5203 = vtanh.f32 %v2640_v61 }
0x2140   :  { %v2521_v52 = vpop.f32.mrb[22].mxu1 }
0x2141   :  { %v2522_v21 = vadd.f32 %v2521_v52, %v5530_v4  ;;  %v2523_v55 = vpop.f32.mrb[23].mxu1  ;;  %v5204_v63 = vpop.eup %5203 }
0x2142   :  { %v2524_v56 = vadd.f32 %v2523_v55, %v5532_v5  ;;  %v2642_v0 = vmul.f32 0.5, %v5204_v63 }
0x2143   :  { %2527 = vrot.lane.b32.xlu1 %v2522_v21, %s5276_s26 }
0x2144   :  { %2544 = vrot.lane.b32.xlu0 %v2524_v56, %s5275_s20  ;;  %v2643_v11 = vadd.f32 0.5, %v2642_v0 }
0x2147   :  { %2645 = vrot.lane.b32.xlu1 %v2636_v58, %s5274_s2  ;;  %v2789_v58 = vld [vmem:[#allocation2 + $0x58] sm:$0xff] }
0x21b5   :  { %v2528_v1 = vpop.permute.xlu1 %2527 }
0x21b6   :  { %v2530_v3 = vadd.f32 %v2528_v1, %v2522_v21  ;;  %v2545_v17 = vpop.permute.xlu0 %2544 }
0x21b8   :  { %v2531_v6 = vmul.f32 0.5, %v2530_v3 }
0x21b9   :  { %v2646_v8 = vpop.permute.xlu1 %2645 }
0x21ba   :  { %5205 = vtanh.f32 %v2531_v6  ;;  %v2648_v12 = vmul.f32 %v2646_v8, %v2643_v11 }
0x21bc   :  { %2650 = vrot.lane.b32.xlu1 %v2648_v12, %s5274_s2 }
0x21c4   :  { %v5206_v13 = vpop.eup %5205 }
0x21c5   :  { %v2533_v14 = vmul.f32 0.5, %v5206_v13 }
0x21c7   :  { %v2534_v15 = vadd.f32 0.5, %v2533_v14 }
0x21c9   :  { %v2547_v18 = vmul.f32 %v2545_v17, %v2534_v15 }
0x21cb   :  { %2549 = vrot.lane.b32.xlu0 %v2547_v18, %s5274_s2 }
0x21cf   :  { %2536 = vrot.lane.b32.xlu0 %v2524_v56, %s5276_s26 }
0x222e   :  { %v2651_v20 = vpop.permute.xlu1 %2650 }
0x222f   :  { %v2653_v22 = vadd.f32 %v2651_v20, %v2566_v59 }
0x2231   :  { %5207 = vtanh.f32 %v2653_v22 }
0x223b   :  { %v5208_v16 = vpop.eup %5207 }
0x223c   :  { %v2655_v23 = vsub.f32 %v2442_v43, %v5208_v16 }
0x223d   :  { %v2550_v24 = vpop.permute.xlu0 %2549 }
0x223e   :  { %v2552_v25 = vadd.f32 %v2550_v24, %v2522_v21  ;;  %2657 = vrot.lane.b32.xlu0 %v2655_v23, %s5275_s20 }
0x2240   :  { %5209 = vtanh.f32 %v2552_v25 }
0x2241   :  { %v2537_v28 = vpop.permute.xlu0 %2536 }
0x2242   :  { %v2539_v29 = vadd.f32 %v2537_v28, %v2522_v21 }
0x2244   :  { %v2540_v30 = vmul.f32 0.5, %v2539_v29 }
0x2246   :  { %5211 = vtanh.f32 %v2540_v30 }
0x224a   :  { %v5210_v26 = vpop.eup %5209 }
0x224b   :  { %v2554_v27 = vsub.f32 %v5943_v47, %v5210_v26 }
0x224d   :  { %2556 = vrot.lane.b32.xlu1 %v2554_v27, %s5275_s20 }
0x2250   :  { %v5212_v33 = vpop.eup %5211 }
0x2251   :  { %v2542_v34 = vmul.f32 0.5, %v5212_v33 }
0x2253   :  { %v2543_v36 = vadd.f32 0.5, %v2542_v34 }
0x22b0   :  { %v2658_v31 = vpop.permute.xlu0 %2657 }
0x22b1   :  { %v2660_v32 = vmul.f32 %v2658_v31, %v2643_v11 }
0x22b3   :  { %2662 = vrot.lane.b32.xlu0 %v2660_v32, %s5276_s26 }
0x22bf   :  { %v2557_v37 = vpop.permute.xlu1 %2556 }
0x22c0   :  { %v2559_v38 = vmul.f32 %v2557_v37, %v2543_v36 }
0x22c2   :  { %2561 = vrot.lane.b32.xlu1 %v2559_v38, %s5276_s26 }
0x2325   :  { %v2663_v41 = vpop.permute.xlu0 %2662 }
0x2326   :  { %v2665_v42 = vadd.f32 %v5208_v16, %v2663_v41 }
0x2328   :  { %2667 = vrot.lane.b32.xlu1 %v2665_v42, %s5274_s2 }
0x2334   :  { %v2562_v43 = vpop.permute.xlu1 %2561 }
0x2335   :  { %v5980_v44 = vadd.f32 %v5210_v26, %v2562_v43 }
0x2337   :  { %2671 = vrot.lane.b32.xlu0 %v5980_v44, %s5275_s20 }
0x239a   :  { %v2668_v47 = vpop.permute.xlu1 %2667 }
0x239b   :  { %4634 = vmatmul.mubr.msk.f32.vlgmr.msra.gmra.mrb[24].mxu1 %vm327_vm4, %v2668_v47 }
0x239c   :  { %4977 = vmatpush1.bf16.msra.mxu1 %v5445_v39  ;;  %2965 = vmatprep.mubr.f32.mxu1 %v5273_v9 }
0x239d   :  { %4979 = vmatprep.subr.bf16.mxu1 %v5447_v40 }
0x23a0   :  { %4981 = vmatpush1.bf16.msra.mxu1 %v5464_v45 }
0x23a1   :  { %4983 = vmatprep.subr.bf16.mxu1 %v5468_v46 }
0x23a4   :  { %4985 = vmatpush1.bf16.msra.mxu1 %v5484_v53 }
0x23a5   :  { %4987 = vmatprep.subr.bf16.mxu1 %v5488_v54 }
0x23a8   :  { %4989 = vmatpush1.bf16.msra.mxu1 %v5499_v57 }
0x23a9   :  { %v2672_v19 = vpop.permute.xlu0 %2671  ;;  %5012 = vmatprep.subr.bf16.mxu1 %v5271_v2 }
0x23aa   :  { %v2674_v48 = vsel %vm327_vm4, %v2668_v47, %v2672_v19 }
0x23ab   :  { %4335 = vmatmul.mubr.msk.f32.vlgmr.msra.gmra.mrb[34].mxu0 %vm444_vm5, %v2674_v48 }
0x23ac   :  { %4992 = vmatpush3.bf16.msra.mxu0 %v5392_v7  ;;  %4644 = vmatprep.mubr.msk.f32.mxu0 %vm5272_vm2, %v5273_v9 }
0x23ad   :  { %4993 = vmatprep.subr.bf16.mxu0 %v5271_v2 }
0x23b0   :  { %4995 = vmatpush3.bf16.msra.mxu0 %v5401_v10 }
0x23b1   :  { %4997 = vmatprep.subr.bf16.mxu0 %v5434_v35 }
0x246e   :  { %v2858_v49 = vpop.f32.mrb[24].mxu1 }
0x246f   :  { %v4635_v50 = vpop.f32.mrb[25].mxu1  ;;  %v2859_v56 = vadd.f32 %v5818_v62, %v2858_v49 }
0x2471   :  { %v2862_v59 = vadd.f32 %v2859_v56, %v2789_v58 }
0x2473   :  { %v2863_v60 = vmul.f32 0.5, %v2862_v59 }
0x2475   :  { %5213 = vtanh.f32 %v2863_v60 }
0x247e   :  { %v2744_v51 = vpop.f32.mrb[34].mxu0 }
0x247f   :  { %v2745_v52 = vadd.f32 %v2744_v51, %v5530_v4  ;;  %v2746_v21 = vpop.f32.mrb[35].mxu0  ;;  %v5214_v61 = vpop.eup %5213 }
0x2480   :  { %v2747_v55 = vadd.f32 %v2746_v21, %v5532_v5  ;;  %v2865_v63 = vmul.f32 0.5, %v5214_v61 }
0x2481   :  { %2750 = vrot.lane.b32.xlu1 %v2745_v52, %s5276_s26 }
0x2482   :  { %2767 = vrot.lane.b32.xlu0 %v2747_v55, %s5275_s20  ;;  %v2866_v6 = vadd.f32 0.5, %v2865_v63 }
0x2485   :  { %2868 = vrot.lane.b32.xlu1 %v2859_v56, %s5274_s2  ;;  %v3012_v56 = vld [vmem:[#allocation2 + $0x60] sm:$0xff] }
0x24f3   :  { %v2751_v0 = vpop.permute.xlu1 %2750 }
0x24f4   :  { %v2753_v1 = vadd.f32 %v2751_v0, %v2745_v52  ;;  %v2768_v15 = vpop.permute.xlu0 %2767 }
0x24f6   :  { %v2754_v3 = vmul.f32 0.5, %v2753_v1 }
0x24f7   :  { %v2869_v11 = vpop.permute.xlu1 %2868 }
0x24f8   :  { %5215 = vtanh.f32 %v2754_v3  ;;  %v2871_v8 = vmul.f32 %v2869_v11, %v2866_v6 }
0x24fa   :  { %2873 = vrot.lane.b32.xlu1 %v2871_v8, %s5274_s2 }
0x2502   :  { %v5216_v12 = vpop.eup %5215 }
0x2503   :  { %v2756_v13 = vmul.f32 0.5, %v5216_v12 }
0x2505   :  { %v2757_v14 = vadd.f32 0.5, %v2756_v13 }
0x2507   :  { %v2770_v17 = vmul.f32 %v2768_v15, %v2757_v14 }
0x2509   :  { %2772 = vrot.lane.b32.xlu0 %v2770_v17, %s5274_s2 }
0x250d   :  { %2759 = vrot.lane.b32.xlu0 %v2747_v55, %s5276_s26 }
0x256c   :  { %v2874_v18 = vpop.permute.xlu1 %2873 }
0x256d   :  { %v2876_v20 = vadd.f32 %v2874_v18, %v2789_v58 }
0x256f   :  { %5217 = vtanh.f32 %v2876_v20 }
0x2579   :  { %v5218_v22 = vpop.eup %5217 }
0x257a   :  { %v2878_v16 = vsub.f32 %v2665_v42, %v5218_v22 }
0x257b   :  { %v2773_v23 = vpop.permute.xlu0 %2772 }
0x257c   :  { %v2775_v24 = vadd.f32 %v2773_v23, %v2745_v52  ;;  %2880 = vrot.lane.b32.xlu0 %v2878_v16, %s5275_s20 }
0x257e   :  { %5219 = vtanh.f32 %v2775_v24 }
0x257f   :  { %v2760_v27 = vpop.permute.xlu0 %2759 }
0x2580   :  { %v2762_v28 = vadd.f32 %v2760_v27, %v2745_v52 }
0x2582   :  { %v2763_v29 = vmul.f32 0.5, %v2762_v28 }
0x2584   :  { %5221 = vtanh.f32 %v2763_v29 }
0x2588   :  { %v5220_v25 = vpop.eup %5219 }
0x2589   :  { %v2777_v26 = vsub.f32 %v5980_v44, %v5220_v25 }
0x258b   :  { %2779 = vrot.lane.b32.xlu1 %v2777_v26, %s5275_s20 }
0x258e   :  { %v5222_v32 = vpop.eup %5221 }
0x258f   :  { %v2765_v33 = vmul.f32 0.5, %v5222_v32 }
0x2591   :  { %v2766_v34 = vadd.f32 0.5, %v2765_v33 }
0x25ee   :  { %v2881_v30 = vpop.permute.xlu0 %2880 }
0x25ef   :  { %v2883_v31 = vmul.f32 %v2881_v30, %v2866_v6 }
0x25f1   :  { %2885 = vrot.lane.b32.xlu0 %v2883_v31, %s5276_s26 }
0x25fd   :  { %v2780_v36 = vpop.permute.xlu1 %2779 }
0x25fe   :  { %v2782_v37 = vmul.f32 %v2780_v36, %v2766_v34 }
0x2600   :  { %2784 = vrot.lane.b32.xlu1 %v2782_v37, %s5276_s26 }
0x2663   :  { %v2886_v38 = vpop.permute.xlu0 %2885 }
0x2664   :  { %v2888_v41 = vadd.f32 %v5218_v22, %v2886_v38 }
0x2666   :  { %2890 = vrot.lane.b32.xlu1 %v2888_v41, %s5274_s2 }
0x2672   :  { %v2785_v42 = vpop.permute.xlu1 %2784 }
0x2673   :  { %v6017_v43 = vadd.f32 %v5220_v25, %v2785_v42 }
0x2675   :  { %2894 = vrot.lane.b32.xlu0 %v6017_v43, %s5275_s20 }
0x26d8   :  { %v2891_v44 = vpop.permute.xlu1 %2890 }
0x26d9   :  { %4645 = vmatmul.mubr.msk.f32.vlgmr.msra.gmra.mrb[36].mxu0 %vm327_vm4, %v2891_v44 }
0x26da   :  { %4999 = vmatpush1.bf16.msra.mxu0 %v5445_v39  ;;  %3188 = vmatprep.mubr.f32.mxu0 %v5273_v9 }
0x26db   :  { %5001 = vmatprep.subr.bf16.mxu0 %v5447_v40 }
0x26de   :  { %5003 = vmatpush1.bf16.msra.mxu0 %v5464_v45 }
0x26df   :  { %5005 = vmatprep.subr.bf16.mxu0 %v5468_v46 }
0x26e2   :  { %5007 = vmatpush1.bf16.msra.mxu0 %v5484_v53 }
0x26e3   :  { %5009 = vmatprep.subr.bf16.mxu0 %v5488_v54 }
0x26e6   :  { %5011 = vmatpush1.bf16.msra.mxu0 %v5499_v57 }
0x26e7   :  { %v2895_v47 = vpop.permute.xlu0 %2894  ;;  %5034 = vmatprep.subr.bf16.mxu0 %v5271_v2 }
0x26e8   :  { %v2897_v19 = vsel %vm327_vm4, %v2891_v44, %v2895_v47 }
0x26e9   :  { %4337 = vmatmul.mubr.msk.f32.vlgmr.msra.gmra.mrb[26].mxu1 %vm444_vm5, %v2897_v19 }
0x26ea   :  { %5014 = vmatpush3.bf16.msra.mxu1 %v5392_v7  ;;  %4655 = vmatprep.mubr.msk.f32.mxu1 %vm5272_vm2, %v5273_v9 }
0x26eb   :  { %5015 = vmatprep.subr.bf16.mxu1 %v5271_v2 }
0x26ee   :  { %5017 = vmatpush3.bf16.msra.mxu1 %v5401_v10 }
0x26ef   :  { %5019 = vmatprep.subr.bf16.mxu1 %v5434_v35 }
0x27ac   :  { %v3081_v48 = vpop.f32.mrb[36].mxu0 }
0x27ad   :  { %v4646_v49 = vpop.f32.mrb[37].mxu0  ;;  %v3082_v55 = vadd.f32 %v5818_v62, %v3081_v48 }
0x27af   :  { %v3085_v58 = vadd.f32 %v3082_v55, %v3012_v56 }
0x27b1   :  { %v3086_v59 = vmul.f32 0.5, %v3085_v58 }
0x27b3   :  { %5223 = vtanh.f32 %v3086_v59 }
0x27bc   :  { %v2967_v50 = vpop.f32.mrb[26].mxu1 }
0x27bd   :  { %v2968_v51 = vadd.f32 %v2967_v50, %v5530_v4  ;;  %v2969_v52 = vpop.f32.mrb[27].mxu1  ;;  %v5224_v60 = vpop.eup %5223 }
0x27be   :  { %v2970_v21 = vadd.f32 %v2969_v52, %v5532_v5  ;;  %v3088_v61 = vmul.f32 0.5, %v5224_v60  ;;  %v6086_v52 = vld [vmem:[%s6267_s4] ss:$0 sm:$0xff] }
0x27bf   :  { %2973 = vrot.lane.b32.xlu1 %v2968_v51, %s5276_s26 }
0x27c0   :  { %2990 = vrot.lane.b32.xlu0 %v2970_v21, %s5275_s20  ;;  %v3089_v3 = vadd.f32 0.5, %v3088_v61 }
0x27c3   :  { %3091 = vrot.lane.b32.xlu1 %v3082_v55, %s5274_s2  ;;  %v3235_v55 = vld [vmem:[#allocation2 + $0x68] sm:$0xff] }
0x2831   :  { %v2974_v63 = vpop.permute.xlu1 %2973 }
0x2832   :  { %v2976_v0 = vadd.f32 %v2974_v63, %v2968_v51  ;;  %v2991_v13 = vpop.permute.xlu0 %2990 }
0x2834   :  { %v2977_v1 = vmul.f32 0.5, %v2976_v0 }
0x2835   :  { %v3092_v6 = vpop.permute.xlu1 %3091 }
0x2836   :  { %5225 = vtanh.f32 %v2977_v1  ;;  %v3094_v11 = vmul.f32 %v3092_v6, %v3089_v3 }
0x2838   :  { %3096 = vrot.lane.b32.xlu1 %v3094_v11, %s5274_s2 }
0x2840   :  { %v5226_v8 = vpop.eup %5225 }
0x2841   :  { %v2979_v12 = vmul.f32 0.5, %v5226_v8 }
0x2843   :  { %v2980_v62 = vadd.f32 0.5, %v2979_v12 }
0x2845   :  { %v2993_v14 = vmul.f32 %v2991_v13, %v2980_v62 }
0x2847   :  { %2995 = vrot.lane.b32.xlu0 %v2993_v14, %s5274_s2 }
0x284b   :  { %2982 = vrot.lane.b32.xlu0 %v2970_v21, %s5276_s26 }
0x28aa   :  { %v3097_v15 = vpop.permute.xlu1 %3096 }
0x28ab   :  { %v3099_v17 = vadd.f32 %v3097_v15, %v3012_v56 }
0x28ad   :  { %5227 = vtanh.f32 %v3099_v17 }
0x28b7   :  { %v5228_v18 = vpop.eup %5227 }
0x28b8   :  { %v3101_v20 = vsub.f32 %v2888_v41, %v5228_v18 }
0x28b9   :  { %v2996_v22 = vpop.permute.xlu0 %2995 }
0x28ba   :  { %v2998_v16 = vadd.f32 %v2996_v22, %v2968_v51  ;;  %3103 = vrot.lane.b32.xlu0 %v3101_v20, %s5275_s20 }
0x28bc   :  { %5229 = vtanh.f32 %v2998_v16 }
0x28bd   :  { %v2983_v25 = vpop.permute.xlu0 %2982 }
0x28be   :  { %v2985_v26 = vadd.f32 %v2983_v25, %v2968_v51 }
0x28c0   :  { %v2986_v27 = vmul.f32 0.5, %v2985_v26 }
0x28c2   :  { %5231 = vtanh.f32 %v2986_v27 }
0x28c6   :  { %v5230_v23 = vpop.eup %5229 }
0x28c7   :  { %v3000_v24 = vsub.f32 %v6017_v43, %v5230_v23 }
0x28c9   :  { %3002 = vrot.lane.b32.xlu1 %v3000_v24, %s5275_s20 }
0x28cc   :  { %v5232_v30 = vpop.eup %5231 }
0x28cd   :  { %v2988_v31 = vmul.f32 0.5, %v5232_v30 }
0x28cf   :  { %v2989_v32 = vadd.f32 0.5, %v2988_v31 }
0x292c   :  { %v3104_v28 = vpop.permute.xlu0 %3103 }
0x292d   :  { %v3106_v29 = vmul.f32 %v3104_v28, %v3089_v3 }
0x292f   :  { %3108 = vrot.lane.b32.xlu0 %v3106_v29, %s5276_s26 }
0x293b   :  { %v3003_v33 = vpop.permute.xlu1 %3002 }
0x293c   :  { %v3005_v34 = vmul.f32 %v3003_v33, %v2989_v32 }
0x293e   :  { %3007 = vrot.lane.b32.xlu1 %v3005_v34, %s5276_s26 }
0x29a1   :  { %v3109_v36 = vpop.permute.xlu0 %3108 }
0x29a2   :  { %v6053_v37 = vadd.f32 %v5228_v18, %v3109_v36 }
0x29a4   :  { %3113 = vrot.lane.b32.xlu1 %v6053_v37, %s5274_s2 }
0x29b0   :  { %v3008_v38 = vpop.permute.xlu1 %3007 }
0x29b1   :  { %v6057_v41 = vadd.f32 %v5230_v23, %v3008_v38 }
0x29b3   :  { %3117 = vrot.lane.b32.xlu0 %v6057_v41, %s5275_s20 }
0x2a16   :  { %v3114_v42 = vpop.permute.xlu1 %3113 }
0x2a17   :  { %4656 = vmatmul.mubr.msk.f32.vlgmr.msra.gmra.mrb[28].mxu1 %vm327_vm4, %v3114_v42 }
0x2a18   :  { %5021 = vmatpush1.bf16.msra.mxu1 %v5445_v39  ;;  %3411 = vmatprep.mubr.f32.mxu1 %v5273_v9 }
0x2a19   :  { %5023 = vmatprep.subr.bf16.mxu1 %v5447_v40 }
0x2a1c   :  { %5025 = vmatpush1.bf16.msra.mxu1 %v5464_v45 }
0x2a1d   :  { %5027 = vmatprep.subr.bf16.mxu1 %v5468_v46 }
0x2a20   :  { %5029 = vmatpush1.bf16.msra.mxu1 %v5484_v53 }
0x2a21   :  { %5031 = vmatprep.subr.bf16.mxu1 %v5488_v54 }
0x2a24   :  { %5033 = vmatpush1.bf16.msra.mxu1 %v5499_v57 }
0x2a25   :  { %v3118_v43 = vpop.permute.xlu0 %3117  ;;  %5056 = vmatprep.subr.bf16.mxu1 %v5271_v2 }
0x2a26   :  { %v3120_v44 = vsel %vm327_vm4, %v3114_v42, %v3118_v43 }
0x2a27   :  { %4339 = vmatmul.mubr.msk.f32.vlgmr.msra.gmra.mrb[38].mxu0 %vm444_vm5, %v3120_v44 }
0x2a28   :  { %5036 = vmatpush3.bf16.msra.mxu0 %v5392_v7  ;;  %4666 = vmatprep.mubr.msk.f32.mxu0 %vm5272_vm2, %v5273_v9 }
0x2a29   :  { %5037 = vmatprep.subr.bf16.mxu0 %v5271_v2 }
0x2a2c   :  { %5039 = vmatpush3.bf16.msra.mxu0 %v5401_v10 }
0x2a2d   :  { %5041 = vmatprep.subr.bf16.mxu0 %v5434_v35 }
0x2aea   :  { %v3304_v47 = vpop.f32.mrb[28].mxu1 }
0x2aeb   :  { %v4657_v19 = vpop.f32.mrb[29].mxu1  ;;  %v3305_v21 = vadd.f32 %v6086_v52, %v3304_v47 }
0x2aed   :  { %v3308_v56 = vadd.f32 %v3305_v21, %v3235_v55 }
0x2aef   :  { %v3309_v58 = vmul.f32 0.5, %v3308_v56 }
0x2af1   :  { %5233 = vtanh.f32 %v3309_v58 }
0x2afa   :  { %v3190_v48 = vpop.f32.mrb[38].mxu0 }
0x2afb   :  { %v3191_v49 = vadd.f32 %v3190_v48, %v5530_v4  ;;  %v3192_v50 = vpop.f32.mrb[39].mxu0  ;;  %v5234_v59 = vpop.eup %5233 }
0x2afc   :  { %v3193_v51 = vadd.f32 %v3192_v50, %v5532_v5  ;;  %v3311_v60 = vmul.f32 0.5, %v5234_v59 }
0x2afd   :  { %3196 = vrot.lane.b32.xlu1 %v3191_v49, %s5276_s26 }
0x2afe   :  { %3213 = vrot.lane.b32.xlu0 %v3193_v51, %s5275_s20  ;;  %v3312_v1 = vadd.f32 0.5, %v3311_v60 }
0x2b01   :  { %3314 = vrot.lane.b32.xlu1 %v3305_v21, %s5274_s2 }
0x2b6f   :  { %v3197_v61 = vpop.permute.xlu1 %3196 }
0x2b70   :  { %v3199_v63 = vadd.f32 %v3197_v61, %v3191_v49  ;;  %v3214_v62 = vpop.permute.xlu0 %3213 }
0x2b72   :  { %v3200_v0 = vmul.f32 0.5, %v3199_v63 }
0x2b73   :  { %v3315_v3 = vpop.permute.xlu1 %3314 }
0x2b74   :  { %5235 = vtanh.f32 %v3200_v0  ;;  %v3317_v6 = vmul.f32 %v3315_v3, %v3312_v1 }
0x2b76   :  { %3319 = vrot.lane.b32.xlu1 %v3317_v6, %s5274_s2 }
0x2b7e   :  { %v5236_v11 = vpop.eup %5235 }
0x2b7f   :  { %v3202_v8 = vmul.f32 0.5, %v5236_v11 }
0x2b81   :  { %v3203_v12 = vadd.f32 0.5, %v3202_v8 }
0x2b83   :  { %v3216_v13 = vmul.f32 %v3214_v62, %v3203_v12 }
0x2b85   :  { %3218 = vrot.lane.b32.xlu0 %v3216_v13, %s5274_s2 }
0x2b89   :  { %3205 = vrot.lane.b32.xlu0 %v3193_v51, %s5276_s26  ;;  %v3458_v51 = vld [vmem:[#allocation2 + $0x70] sm:$0xff] }
0x2be8   :  { %v3320_v14 = vpop.permute.xlu1 %3319 }
0x2be9   :  { %v3322_v15 = vadd.f32 %v3320_v14, %v3235_v55 }
0x2beb   :  { %5237 = vtanh.f32 %v3322_v15 }
0x2bf5   :  { %v5238_v17 = vpop.eup %5237 }
0x2bf6   :  { %v3324_v18 = vsub.f32 %v6053_v37, %v5238_v17 }
0x2bf7   :  { %v3219_v20 = vpop.permute.xlu0 %3218 }
0x2bf8   :  { %v3221_v22 = vadd.f32 %v3219_v20, %v3191_v49  ;;  %3326 = vrot.lane.b32.xlu0 %v3324_v18, %s5275_s20 }
0x2bfa   :  { %5239 = vtanh.f32 %v3221_v22 }
0x2bfb   :  { %v3206_v24 = vpop.permute.xlu0 %3205 }
0x2bfc   :  { %v3208_v25 = vadd.f32 %v3206_v24, %v3191_v49 }
0x2bfe   :  { %v3209_v26 = vmul.f32 0.5, %v3208_v25 }
0x2c00   :  { %5241 = vtanh.f32 %v3209_v26 }
0x2c04   :  { %v5240_v16 = vpop.eup %5239 }
0x2c05   :  { %v3223_v23 = vsub.f32 %v6057_v41, %v5240_v16 }
0x2c07   :  { %3225 = vrot.lane.b32.xlu1 %v3223_v23, %s5275_s20 }
0x2c0a   :  { %v5242_v29 = vpop.eup %5241 }
0x2c0b   :  { %v3211_v30 = vmul.f32 0.5, %v5242_v29 }
0x2c0d   :  { %v3212_v31 = vadd.f32 0.5, %v3211_v30 }
0x2c6a   :  { %v3327_v27 = vpop.permute.xlu0 %3326 }
0x2c6b   :  { %v3329_v28 = vmul.f32 %v3327_v27, %v3312_v1 }
0x2c6d   :  { %3331 = vrot.lane.b32.xlu0 %v3329_v28, %s5276_s26 }
0x2c79   :  { %v3226_v32 = vpop.permute.xlu1 %3225 }
0x2c7a   :  { %v3228_v33 = vmul.f32 %v3226_v32, %v3212_v31 }
0x2c7c   :  { %3230 = vrot.lane.b32.xlu1 %v3228_v33, %s5276_s26 }
0x2cdf   :  { %v3332_v34 = vpop.permute.xlu0 %3331 }
0x2ce0   :  { %v3334_v36 = vadd.f32 %v5238_v17, %v3332_v34 }
0x2ce2   :  { %3336 = vrot.lane.b32.xlu1 %v3334_v36, %s5274_s2 }
0x2cee   :  { %v3231_v37 = vpop.permute.xlu1 %3230 }
0x2cef   :  { %v3233_v38 = vadd.f32 %v5240_v16, %v3231_v37 }
0x2cf1   :  { %3340 = vrot.lane.b32.xlu0 %v3233_v38, %s5275_s20 }
0x2d54   :  { %v3337_v41 = vpop.permute.xlu1 %3336 }
0x2d55   :  { %4667 = vmatmul.mubr.msk.f32.vlgmr.msra.gmra.mrb[40].mxu0 %vm327_vm4, %v3337_v41 }
0x2d56   :  { %5043 = vmatpush1.bf16.msra.mxu0 %v5445_v39  ;;  %3634 = vmatprep.mubr.f32.mxu0 %v5273_v9 }
0x2d57   :  { %5045 = vmatprep.subr.bf16.mxu0 %v5447_v40 }
0x2d5a   :  { %5047 = vmatpush1.bf16.msra.mxu0 %v5464_v45 }
0x2d5b   :  { %5049 = vmatprep.subr.bf16.mxu0 %v5468_v46 }
0x2d5e   :  { %5051 = vmatpush1.bf16.msra.mxu0 %v5484_v53 }
0x2d5f   :  { %5053 = vmatprep.subr.bf16.mxu0 %v5488_v54 }
0x2d62   :  { %5055 = vmatpush1.bf16.msra.mxu0 %v5499_v57 }
0x2d63   :  { %v3341_v42 = vpop.permute.xlu0 %3340 }
0x2d64   :  { %v3343_v43 = vsel %vm327_vm4, %v3337_v41, %v3341_v42 }
0x2d65   :  { %4341 = vmatmul.mubr.msk.f32.vlgmr.msra.gmra.mrb[30].mxu1 %vm444_vm5, %v3343_v43 }
0x2d66   :  { %5058 = vmatpush3.bf16.msra.mxu1 %v5392_v7  ;;  %4677 = vmatprep.mubr.msk.f32.mxu1 %vm5272_vm2, %v5273_v9 }
0x2d67   :  { %5059 = vmatprep.subr.bf16.mxu1 %v5271_v2 }
0x2d6a   :  { %5061 = vmatpush3.bf16.msra.mxu1 %v5401_v10 }
0x2d6b   :  { %5063 = vmatprep.subr.bf16.mxu1 %v5434_v35 }
0x2e28   :  { %v3527_v44 = vpop.f32.mrb[40].mxu0 }
0x2e29   :  { %v4668_v47 = vpop.f32.mrb[41].mxu0  ;;  %v3528_v7 = vadd.f32 %v6086_v52, %v3527_v44 }
0x2e2b   :  { %v3531_v10 = vadd.f32 %v3528_v7, %v3458_v51 }
0x2e2d   :  { %v3532_v21 = vmul.f32 0.5, %v3531_v10 }
0x2e2f   :  { %5243 = vtanh.f32 %v3532_v21 }
0x2e38   :  { %v3413_v19 = vpop.f32.mrb[30].mxu1 }
0x2e39   :  { %v3414_v48 = vadd.f32 %v3413_v19, %v5530_v4  ;;  %v3415_v49 = vpop.f32.mrb[31].mxu1  ;;  %v5244_v35 = vpop.eup %5243 }
0x2e3a   :  { %v3416_v50 = vadd.f32 %v3415_v49, %v5532_v5  ;;  %v3534_v55 = vmul.f32 0.5, %v5244_v35 }
0x2e3b   :  { %3419 = vrot.lane.b32.xlu1 %v3414_v48, %s5276_s26 }
0x2e3c   :  { %3436 = vrot.lane.b32.xlu0 %v3416_v50, %s5275_s20  ;;  %v3535_v60 = vadd.f32 0.5, %v3534_v55 }
0x2e3f   :  { %3537 = vrot.lane.b32.xlu1 %v3528_v7, %s5274_s2 }
0x2ead   :  { %v3420_v56 = vpop.permute.xlu1 %3419 }
0x2eae   :  { %v3422_v58 = vadd.f32 %v3420_v56, %v3414_v48  ;;  %v3437_v6 = vpop.permute.xlu0 %3436 }
0x2eb0   :  { %v3423_v59 = vmul.f32 0.5, %v3422_v58 }
0x2eb1   :  { %v3538_v61 = vpop.permute.xlu1 %3537 }
0x2eb2   :  { %5245 = vtanh.f32 %v3423_v59  ;;  %v3540_v63 = vmul.f32 %v3538_v61, %v3535_v60 }
0x2eb4   :  { %3542 = vrot.lane.b32.xlu1 %v3540_v63, %s5274_s2 }
0x2ebc   :  { %v5246_v0 = vpop.eup %5245 }
0x2ebd   :  { %v3425_v1 = vmul.f32 0.5, %v5246_v0 }
0x2ebf   :  { %v3426_v3 = vadd.f32 0.5, %v3425_v1 }
0x2ec1   :  { %v3439_v11 = vmul.f32 %v3437_v6, %v3426_v3 }
0x2ec3   :  { %3441 = vrot.lane.b32.xlu0 %v3439_v11, %s5274_s2 }
0x2ec7   :  { %3428 = vrot.lane.b32.xlu0 %v3416_v50, %s5276_s26 }
0x2f26   :  { %v3543_v8 = vpop.permute.xlu1 %3542 }
0x2f27   :  { %v3545_v12 = vadd.f32 %v3543_v8, %v3458_v51 }
0x2f29   :  { %5247 = vtanh.f32 %v3545_v12 }
0x2f33   :  { %v5248_v62 = vpop.eup %5247 }
0x2f34   :  { %v3547_v13 = vsub.f32 %v3334_v36, %v5248_v62 }
0x2f35   :  { %v3442_v14 = vpop.permute.xlu0 %3441 }
0x2f36   :  { %v3444_v15 = vadd.f32 %v3442_v14, %v3414_v48  ;;  %3549 = vrot.lane.b32.xlu0 %v3547_v13, %s5275_s20 }
0x2f38   :  { %5249 = vtanh.f32 %v3444_v15 }
0x2f39   :  { %v3429_v20 = vpop.permute.xlu0 %3428 }
0x2f3a   :  { %v3431_v22 = vadd.f32 %v3429_v20, %v3414_v48 }
0x2f3c   :  { %v3432_v16 = vmul.f32 0.5, %v3431_v22 }
0x2f3e   :  { %5251 = vtanh.f32 %v3432_v16 }
0x2f42   :  { %v5250_v17 = vpop.eup %5249 }
0x2f43   :  { %v3446_v18 = vsub.f32 %v3233_v38, %v5250_v17 }
0x2f45   :  { %3448 = vrot.lane.b32.xlu1 %v3446_v18, %s5275_s20 }
0x2f48   :  { %v5252_v25 = vpop.eup %5251 }
0x2f49   :  { %v3434_v26 = vmul.f32 0.5, %v5252_v25 }
0x2f4b   :  { %v3435_v27 = vadd.f32 0.5, %v3434_v26 }
0x2fa8   :  { %v3550_v23 = vpop.permute.xlu0 %3549 }
0x2fa9   :  { %v3552_v24 = vmul.f32 %v3550_v23, %v3535_v60 }
0x2fab   :  { %3554 = vrot.lane.b32.xlu0 %v3552_v24, %s5276_s26 }
0x2fb7   :  { %v3449_v28 = vpop.permute.xlu1 %3448 }
0x2fb8   :  { %v3451_v29 = vmul.f32 %v3449_v28, %v3435_v27 }
0x2fba   :  { %3453 = vrot.lane.b32.xlu1 %v3451_v29, %s5276_s26 }
0x301d   :  { %v3555_v30 = vpop.permute.xlu0 %3554 }
0x301e   :  { %v3557_v31 = vadd.f32 %v5248_v62, %v3555_v30 }
0x3020   :  { %3559 = vrot.lane.b32.xlu1 %v3557_v31, %s5274_s2 }
0x302c   :  { %v3454_v32 = vpop.permute.xlu1 %3453 }
0x302d   :  { %v3456_v33 = vadd.f32 %v5250_v17, %v3454_v32 }
0x302f   :  { %3563 = vrot.lane.b32.xlu0 %v3456_v33, %s5275_s20 }
0x3092   :  { %v3560_v34 = vpop.permute.xlu1 %3559 }
0x3093   :  { %4678 = vmatmul.mubr.msk.f32.vlgmr.msra.gmra.mrb[32].mxu1 %vm327_vm4, %v3560_v34 }
0x3094   :  { %5065 = vmatpush1.bf16.msra.mxu1 %v5445_v39  ;;  %3857 = vmatprep.mubr.f32.mxu1 %v5273_v9 }
0x3095   :  { %5067 = vmatprep.subr.bf16.mxu1 %v5447_v40 }
0x3098   :  { %5069 = vmatpush1.bf16.msra.mxu1 %v5464_v45 }
0x3099   :  { %5071 = vmatprep.subr.bf16.mxu1 %v5468_v46 }
0x309c   :  { %5073 = vmatpush1.bf16.msra.mxu1 %v5484_v53 }
0x309d   :  { %5075 = vmatprep.subr.bf16.mxu1 %v5488_v54  ;;  %v3681_v54 = vld [vmem:[#allocation2 + $0x78] sm:$0xff] }
0x30a0   :  { %5077 = vmatpush1.bf16.msra.mxu1 %v5499_v57 }
0x30a1   :  { %v3564_v36 = vpop.permute.xlu0 %3563  ;;  %5094 = vmatprep.subr.bf16.mxu1 %v5271_v2 }
0x30a2   :  { %v3566_v37 = vsel %vm327_vm4, %v3560_v34, %v3564_v36 }
0x30a3   :  { %4343 = vmatmul.mubr.msk.f32.vlgmr.msra.gmra.mrb[42].mxu0 %vm444_vm5, %v3566_v37 }
0x3166   :  { %v3750_v39 = vpop.f32.mrb[32].mxu1 }
0x3167   :  { %v4679_v38 = vpop.f32.mrb[33].mxu1  ;;  %v3751_v53 = vadd.f32 %v6086_v52, %v3750_v39 }
0x3169   :  { %v3754_v57 = vadd.f32 %v3751_v53, %v3681_v54 }
0x316b   :  { %v3755_v42 = vmul.f32 0.5, %v3754_v57 }
0x316d   :  { %5253 = vtanh.f32 %v3755_v42 }
0x3176   :  { %v3636_v40 = vpop.f32.mrb[42].mxu0 }
0x3177   :  { %v3637_v45 = vadd.f32 %v3636_v40, %v5530_v4  ;;  %v3638_v41 = vpop.f32.mrb[43].mxu0  ;;  %v5254_v43 = vpop.eup %5253 }
0x3178   :  { %v3639_v46 = vadd.f32 %v3638_v41, %v5532_v5  ;;  %v3757_v44 = vmul.f32 0.5, %v5254_v43  ;;  %v3903_v43 = vld [vmem:[%s6270_s7] sm:$0xff] }
0x3179   :  { %3642 = vrot.lane.b32.xlu1 %v3637_v45, %s5276_s26  ;;  %4684 = vmatprep.mubr.msk.f32.mxu0 %vm3909_vm6, %v3903_v43 }
0x317a   :  { %3659 = vrot.lane.b32.xlu0 %v3639_v46, %s5275_s20  ;;  %v3758_v49 = vadd.f32 0.5, %v3757_v44 }
0x317d   :  { %3760 = vrot.lane.b32.xlu1 %v3751_v53, %s5274_s2 }
0x31eb   :  { %v3643_v47 = vpop.permute.xlu1 %3642 }
0x31ec   :  { %v3645_v19 = vadd.f32 %v3643_v47, %v3637_v45  ;;  %v3660_v21 = vpop.permute.xlu0 %3659 }
0x31ee   :  { %v3646_v48 = vmul.f32 0.5, %v3645_v19 }
0x31ef   :  { %v3761_v50 = vpop.permute.xlu1 %3760 }
0x31f0   :  { %5255 = vtanh.f32 %v3646_v48  ;;  %v3763_v7 = vmul.f32 %v3761_v50, %v3758_v49  ;;  %v3996_v50 = vld [vmem:[%s6271_s8] sm:$0xff] }
0x31f2   :  { %3765 = vrot.lane.b32.xlu1 %v3763_v7, %s5274_s2  ;;  %v3997_v7 = vld [vmem:[%s6271_s8 + $0x8] sm:$0xff] }
0x31fa   :  { %v5256_v51 = vpop.eup %5255 }
0x31fb   :  { %v3648_v10 = vmul.f32 0.5, %v5256_v51  ;;  %v3998_v51 = vld [vmem:[%s6271_s8 + $0x10] sm:$0xff] }
0x31fd   :  { %v3649_v52 = vadd.f32 0.5, %v3648_v10  ;;  %v5083_v10 = vpack.c.bf16 %v3997_v7, %v3996_v50 }
0x31ff   :  { %v3662_v35 = vmul.f32 %v3660_v21, %v3649_v52  ;;  %v3999_v52 = vld [vmem:[%s6271_s8 + $0x18] sm:$0xff] }
0x3200   :  { %v5086_v21 = vpack.c.bf16 %v3999_v52, %v3998_v51 }
0x3201   :  { %3664 = vrot.lane.b32.xlu0 %v3662_v35, %s5274_s2  ;;  %v4000_v35 = vld [vmem:[%s6271_s8 + $0x20] sm:$0xff] }
0x3205   :  { %3651 = vrot.lane.b32.xlu0 %v3639_v46, %s5276_s26 }
0x3264   :  { %v3766_v55 = vpop.permute.xlu1 %3765 }
0x3265   :  { %v3768_v56 = vadd.f32 %v3766_v55, %v3681_v54  ;;  %v4001_v55 = vld [vmem:[%s6271_s8 + $0x28] sm:$0xff] }
0x3267   :  { %5257 = vtanh.f32 %v3768_v56  ;;  %v5089_v56 = vpack.c.bf16 %v4001_v55, %v4000_v35 }
0x3271   :  { %v5258_v58 = vpop.eup %5257 }
0x3272   :  { %v3770_v59 = vsub.f32 %v3557_v31, %v5258_v58 }
0x3273   :  { %v3665_v60 = vpop.permute.xlu0 %3664 }
0x3274   :  { %v3667_v61 = vadd.f32 %v3665_v60, %v3637_v45  ;;  %3772 = vrot.lane.b32.xlu0 %v3770_v59, %s5275_s20  ;;  %v4003_v59 = vld [vmem:[%s6271_s8 + $0x38] sm:$0xff] }
0x3276   :  { %5259 = vtanh.f32 %v3667_v61 }
0x3277   :  { %v3652_v1 = vpop.permute.xlu0 %3651 }
0x3278   :  { %v3654_v3 = vadd.f32 %v3652_v1, %v3637_v45 }
0x327a   :  { %v3655_v6 = vmul.f32 0.5, %v3654_v3  ;;  %v4101_v3 = vld [vmem:[%s6272_s12] sm:$0xff] }
0x327c   :  { %5261 = vtanh.f32 %v3655_v6  ;;  %v4102_v6 = vld [vmem:[%s6272_s12 + $0x8] sm:$0xff] }
0x3280   :  { %v5260_v63 = vpop.eup %5259 }
0x3281   :  { %v3669_v0 = vsub.f32 %v3456_v33, %v5260_v63 }
0x3283   :  { %3671 = vrot.lane.b32.xlu1 %v3669_v0, %s5275_s20 }
0x3286   :  { %v5262_v12 = vpop.eup %5261 }
0x3287   :  { %v3657_v62 = vmul.f32 0.5, %v5262_v12  ;;  %v4104_v12 = vld [vmem:[%s6272_s12 + $0x18] sm:$0xff] }
0x3289   :  { %v3658_v13 = vadd.f32 0.5, %v3657_v62 }
0x32e6   :  { %v3773_v11 = vpop.permute.xlu0 %3772 }
0x32e7   :  { %v3775_v8 = vmul.f32 %v3773_v11, %v3758_v49  ;;  %v3904_v49 = vld [vmem:[%s6270_s7 + $0x8] sm:$0xff]  ;;  %v5095_v11 = vpack.c.bf16 %v4102_v6, %v4101_v3 }
0x32e9   :  { %3777 = vrot.lane.b32.xlu0 %v3775_v8, %s5276_s26  ;;  %v4103_v8 = vld [vmem:[%s6272_s12 + $0x10] sm:$0xff] }
0x32ea   :  { %v5098_v62 = vpack.c.bf16 %v4104_v12, %v4103_v8 }
0x32f5   :  { %v3672_v14 = vpop.permute.xlu1 %3671 }
0x32f6   :  { %v3674_v15 = vmul.f32 %v3672_v14, %v3658_v13  ;;  %v4348_v13 = vld [vmem:[%s6273_s9] ss:$0 sm:$0xff] }
0x32f8   :  { %3676 = vrot.lane.b32.xlu1 %v3674_v15, %s5276_s26  ;;  %v4350_v15 = vld [vmem:[%s6274_s10] ss:$0 sm:$0xff] }
0x335b   :  { %v3778_v17 = vpop.permute.xlu0 %3777 }
0x335c   :  { %v3780_v18 = vadd.f32 %v5258_v58, %v3778_v17  ;;  %v4002_v58 = vld [vmem:[%s6271_s8 + $0x30] sm:$0xff] }
0x335d   :  { %v5092_v60 = vpack.c.bf16 %v4003_v59, %v4002_v58 }
0x335e   :  { %3782 = vrot.lane.b32.xlu1 %v3780_v18, %s5274_s2  ;;  %v4351_v18 = vld [vmem:[%s6275_s11] ss:$0 sm:$0xff] }
0x336a   :  { %v3677_v20 = vpop.permute.xlu1 %3676 }
0x336b   :  { %v3679_v22 = vadd.f32 %v5260_v63, %v3677_v20 }
0x336d   :  { %3786 = vrot.lane.b32.xlu0 %v3679_v22, %s5275_s20 }
0x33d0   :  { %v3783_v16 = vpop.permute.xlu1 %3782 }
0x33df   :  { %v3787_v23 = vpop.permute.xlu0 %3786 }
0x33e0   :  { %v3789_v24 = vsel %vm327_vm4, %v3783_v16, %v3787_v23  ;;  %v4202_v23 = vld [vmem:[%s6276_s16] sm:$0xff] }
0x33e1   :  { %4345 = vmatmul.mubr.msk.f32.vlgmr.msra.gmra.mrb[34].mxu1 %vm444_vm5, %v3789_v24  ;;  %v4203_v24 = vld [vmem:[%s6276_s16 + $0x8] sm:$0xff] }
0x33e2   :  { %4714 = vmatprep.mubr.msk.f32.mxu1 %vm5272_vm2, %v5273_v9  ;;  %5096 = vmatpush3.bf16.msra.mxu1 %v5095_v11 }
0x33e3   :  { %5097 = vmatprep.subr.bf16.mxu1 %v5271_v2 }
0x33e6   :  { %5099 = vmatpush3.bf16.msra.mxu1 %v5098_v62 }
0x34b4   :  { %v3859_v25 = vpop.f32.mrb[34].mxu1 }
0x34b5   :  { %v3860_v26 = vadd.f32 %v3859_v25, %v5530_v4  ;;  %v3861_v27 = vpop.f32.mrb[35].mxu1  ;;  %v5101_v25 = vpack.c.bf16 %v4203_v24, %v4202_v23 }
0x34b6   :  { %v3862_v28 = vadd.f32 %v3861_v27, %v5532_v5  ;;  %v4352_v27 = vld [vmem:[%s6277_s13] ss:$0 sm:$0xff] }
0x34b7   :  { %3865 = vrot.lane.b32.xlu1 %v3860_v26, %s5276_s26 }
0x34b8   :  { %3882 = vrot.lane.b32.xlu0 %v3862_v28, %s5275_s20 }
0x34bc   :  { %3874 = vrot.lane.b32.xlu0 %v3862_v28, %s5276_s26 }
0x3529   :  { %v3866_v29 = vpop.permute.xlu1 %3865 }
0x352a   :  { %v3868_v30 = vadd.f32 %v3866_v29, %v3860_v26  ;;  %v3883_v36 = vpop.permute.xlu0 %3882  ;;  %v4354_v29 = vld [vmem:[%s6278_s14] ss:$0 sm:$0xff] }
0x352c   :  { %v3869_v31 = vmul.f32 0.5, %v3868_v30 }
0x352e   :  { %5263 = vtanh.f32 %v3869_v31  ;;  %v3875_v40 = vpop.permute.xlu0 %3874 }
0x352f   :  { %v3877_v45 = vadd.f32 %v3875_v40, %v3860_v26 }
0x3531   :  { %v3878_v41 = vmul.f32 0.5, %v3877_v45 }
0x3538   :  { %v5264_v32 = vpop.eup %5263 }
0x3539   :  { %v3871_v33 = vmul.f32 0.5, %v5264_v32 }
0x353b   :  { %v3872_v34 = vadd.f32 0.5, %v3871_v33 }
0x353d   :  { %v3885_v37 = vmul.f32 %v3883_v36, %v3872_v34  ;;  %v4356_v36 = vld [vmem:[%s6280_s17] ss:$0 sm:$0xff] }
0x353f   :  { %3887 = vrot.lane.b32.xlu1 %v3885_v37, %s5274_s2 }
0x35b1   :  { %v3888_v4 = vpop.permute.xlu1 %3887 }
0x35b2   :  { %v3890_v39 = vadd.f32 %v3888_v4, %v3860_v26  ;;  %v4204_v26 = vld [vmem:[%s6276_s16 + $0x10] sm:$0x3] }
0x35b4   :  { %5265 = vtanh.f32 %v3890_v39 }
0x35b5   :  { %5267 = vtanh.f32 %v3878_v41 }
0x35be   :  { %v5266_v5 = vpop.eup %5265 }
0x35bf   :  { %v3892_v38 = vsub.f32 %v3679_v22, %v5266_v5  ;;  %v5268_v46 = vpop.eup %5267 }
0x35c0   :  { %v3880_v53 = vmul.f32 0.5, %v5268_v46 }
0x35c1   :  { %3894 = vrot.lane.b32.xlu1 %v3892_v38, %s5275_s20 }
0x35c2   :  { %v3881_v54 = vadd.f32 0.5, %v3880_v53 }
0x3633   :  { %v3895_v57 = vpop.permute.xlu1 %3894 }
0x3634   :  { %v3897_v42 = vmul.f32 %v3895_v57, %v3881_v54 }
0x3636   :  { %3899 = vrot.lane.b32.xlu0 %v3897_v42, %s5276_s26 }
0x36a8   :  { %v3900_v44 = vpop.permute.xlu0 %3899 }
0x36a9   :  { %v3902_v47 = vadd.f32 %v5266_v5, %v3900_v44 }
0x36ab   :  { %3906 = vrot.lane.b32.xlu1 %v3902_v47, %s5274_s2 }
0x371d   :  { %v3907_v19 = vpop.permute.xlu1 %3906 }
0x371e   :  { %v5078_v48 = vpack.c.bf16 %v3907_v19, %v3783_v16 }
0x3720   :  { %5079 = vmatprep.subr.bf16.mxu0 %v5078_v48 }
0x3721   :  { %5081 = vmatpush3.bf16.msra.mxu0 %v5078_v48 }
0x3722   :  { %5082 = vmatprep.subr.bf16.mxu0 %v5271_v2 }
0x3724   :  { %4685 = vmatmul.mubr.msk.f32.vlgmr.msra.gmra.mrb[44].mxu0 %vm3909_vm6, %v3904_v49 }
0x3725   :  { %4703 = vmatprep.mubr.msk.f32.mxu0 %vm5272_vm2, %v5273_v9  ;;  %5084 = vmatpush3.bf16.msra.mxu0 %v5083_v10 }
0x3726   :  { %5085 = vmatprep.subr.bf16.mxu0 %v5271_v2 }
0x3729   :  { %5087 = vmatpush3.bf16.msra.mxu0 %v5086_v21 }
0x372a   :  { %5088 = vmatprep.subr.bf16.mxu0 %v5271_v2 }
0x372d   :  { %5090 = vmatpush3.bf16.msra.mxu0 %v5089_v56 }
0x372e   :  { %5091 = vmatprep.subr.bf16.mxu0 %v5271_v2 }
0x3731   :  { %5093 = vmatpush3.bf16.msra.mxu0 %v5092_v60 }
0x3732   :  { %5100 = vmatprep.subr.bf16.mxu0 %v5271_v2 }
0x37f7   :  { %v4686_v61 = vpop.f32.mrb[44].mxu0 }
0x37f8   :  { %3992 = vrot.lane.b32.xlu0 %v4686_v61, %s5276_s26  ;;  %v3982_v63 = vpop.f32.mrb[45].mxu0 }
0x386a   :  { %v3993_v0 = vpop.permute.xlu0 %3992 }
0x386b   :  { %v3995_v1 = vsel %vm327_vm4, %v3982_v63, %v3993_v0 }
0x386c   :  { %4704 = vmatmul.mubr.msk.f32.vlgmr.msra.gmra.mrb[46].mxu0 %vm444_vm5, %v3995_v1 }
0x386d   :  { %4723 = vmatprep.mubr.msk.f32.mxu0 %vm5272_vm2, %v5273_v9  ;;  %5102 = vmatpush3.bf16.msra.mxu0 %v5101_v25 }
0x386e   :  { %4721 = vmatprep.subr.mxu0 %v5273_v9  ;;  %v4355_v9 = vld [vmem:[%s6279_s15] ss:$0 sm:$0xff] }
0x3871   :  { %4722 = vmatpush3.msk.msra.mxu0 %vm4216_vm7, %v4204_v26 }
0x393f   :  { %v4080_v14 = vpop.f32.mrb[46].mxu0 }
0x3940   :  { %v4081_v2 = vadd.f32 %v4348_v13, %v4080_v14  ;;  %v4705_v17 = vpop.f32.mrb[47].mxu0 }
0x3942   :  { %v4091_v20 = vmul.f32 %v4350_v15, %v4081_v2 }
0x3944   :  { %v4099_v22 = vadd.f32 %v4351_v18, %v4091_v20 }
0x3946   :  { %v4100_v16 = vmax.f32 %v4099_v22, 0.0 }
0x3948   :  { %4715 = vmatmul.mubr.msk.f32.vlgmr.msra.gmra.mrb[36].mxu1 %vm327_vm4, %v4100_v16 }
0x3a1b   :  { %v4181_v28 = vpop.f32.mrb[36].mxu1 }
0x3a1c   :  { %v4182_v30 = vadd.f32 %v4352_v27, %v4181_v28  ;;  %v4716_v31 = vpop.f32.mrb[37].mxu1 }
0x3a1e   :  { %v4192_v32 = vmul.f32 %v4354_v29, %v4182_v30 }
0x3a20   :  { %v4200_v33 = vadd.f32 %v4355_v9, %v4192_v32 }
0x3a22   :  { %v4201_v34 = vmax.f32 %v4200_v33, 0.0 }
0x3a24   :  { %4724 = vmatmul.mubr.msk.f32.vlgmr.msra.gmra.mrb[48].mxu0 %vm4212_vm8, %v4201_v34 }
0x3af7   :  { %v4286_v37 = vpop.f32.mrb[48].mxu0 }
0x3af8   :  { %v4287_v4 = vadd.f32 %v4356_v36, %v4286_v37  ;;  %v4725_v39 = vpop.f32.mrb[49].mxu0 }
0x3afa   :  { %4291 = vst.msk [vmem:[%s6281_s18] sm:$0xff] %vm4290_vm9, %v4287_v4 }

</bundles_post_ra>
